<compile_context>
chip_gen: v7x
topology: tpu7x:2x2x1
jax: 0.10.0
libtpu: 0.0.40
codegen_flags: <defaults>
</compile_context>

<pallas_src>
import functools

import jax
import jax.numpy as jnp
from jax.experimental import pallas as pl
from jax.experimental.pallas import tpu as pltpu

_LANE = 128


def _round_up(v, m):
    return (v + m - 1) // m * m


def _pad_half(d):
    # Per-path lane padding: <=64-wide layers pad to 64 so the fused
    # (layer || gate) width is a single 128-lane vreg / one MXU tile;
    # wider layers pad to a full 128-lane multiple.
    return 64 if d <= 64 else _round_up(d, _LANE)


def _default_act_dtype():
    # v5e has no bf16 VPU/EUP -> keep inter-layer elementwise math in f32
    # there; v6e/v7x do, so bf16 halves VPU/EUP work and VMEM footprint.
    try:
        kind = jax.devices()[0].device_kind.lower()
    except Exception:
        return jnp.float32
    return jnp.bfloat16 if ("v6" in kind or "v7" in kind) else jnp.float32


def pack_gated_mlp_params(layer_params, gate_params):
    """One-time packing of per-layer (W, b) into fused, lane-padded tensors.

    Call once (outside the per-forward path) and reuse across calls.

      layer 0 : W = [lw || gw]              (in_feats, 2*hp0)   bf16
      layer i : W = block_diag(lw_i, gw_i)  (2*hp_{i-1}, 2*hp_i) bf16
      bias i  : b = [lb || gb]              (1, 2*hp_i)          f32

    Correctness invariant: padded weight/bias lanes stay exactly zero, so
    z=0 on pad lanes and silu(0)=0 keeps them zero through every layer;
    they never contaminate the gate product. Do not put nonzero values there.
    """
    depth = len(layer_params)
    assert len(gate_params) == depth and depth >= 1
    in_feats = layer_params[0][0].shape[0]
    out_dim = layer_params[-1][0].shape[1]
    halves = [_pad_half(lw.shape[1]) for lw, _ in layer_params]

    flat = []
    for i, ((lw, lb), (gw, gb)) in enumerate(zip(layer_params, gate_params)):
        in_d, out_d = lw.shape
        hp = halves[i]
        if i == 0:
            w = jnp.zeros((in_d, 2 * hp), jnp.float32)
            w = w.at[:, :out_d].set(lw.astype(jnp.float32))
            w = w.at[:, hp:hp + out_d].set(gw.astype(jnp.float32))
        else:
            hin = halves[i - 1]
            w = jnp.zeros((2 * hin, 2 * hp), jnp.float32)
            w = w.at[:in_d, :out_d].set(lw.astype(jnp.float32))
            w = w.at[hin:hin + in_d, hp:hp + out_d].set(gw.astype(jnp.float32))
        b = jnp.zeros((1, 2 * hp), jnp.float32)
        b = b.at[0, :out_d].set(lb.astype(jnp.float32))
        b = b.at[0, hp:hp + out_d].set(gb.astype(jnp.float32))
        flat.append(w.astype(jnp.bfloat16))
        flat.append(b)

    meta = dict(depth=depth, in_feats=in_feats, out_dim=out_dim,
                halves=tuple(halves))
    return flat, meta


def _gated_mlp_kernel(depth, activate_last, act_dtype, x_ref, *refs):
    """Fused GatedMLP: one MXU matmul per depth level.

    refs = (W0, b0, W1, b1, ..., W_{d-1}, b_{d-1}, out_ref)
    """
    out_ref = refs[-1]
    params = refs[:-1]

    # x streamed from HBM as f32; cast to bf16 in VMEM (no wrapper cast pass).
    h = x_ref[...].astype(jnp.bfloat16)
    for i in range(depth):
        w = params[2 * i][...]                      # bf16 fused weights
        b = params[2 * i + 1][...]                  # f32 fused bias (1, 2*hp)
        # bf16 operands into the MXU, f32 accumulation + f32 bias add.
        z = jnp.dot(h, w, preferred_element_type=jnp.float32) + b
        if i < depth - 1:
            # SiLU on both halves; bf16 on v6e/v7x, f32 on v5e.
            za = z.astype(act_dtype)
            h = (za * jax.nn.sigmoid(za)).astype(jnp.bfloat16)
        else:
            hp = z.shape[1] // 2
            # Bring the gate half onto the layer half's lanes with an XLU roll
            # (free slot) instead of a sub-lane slice.
            zg = pltpu.roll(z, shift=hp, axis=1)
            lay = z * jax.nn.sigmoid(z) if activate_last else z
            gate = jax.nn.sigmoid(zg)
            res = lay * gate                        # lanes [0:out_dim] are valid
            out_ref[...] = res[:, : out_ref.shape[-1]].astype(out_ref.dtype)


def gated_mlp(x, packed, meta, *, activate_last=True, block_rows=1024,
              act_dtype=None):
    """x: (N, in_feats) f32/bf16. packed/meta: from pack_gated_mlp_params."""
    depth = meta["depth"]
    in_feats = meta["in_feats"]
    out_dim = meta["out_dim"]
    n, in_f = x.shape
    assert in_f == in_feats
    if act_dtype is None:
        act_dtype = _default_act_dtype()

    # Batch tiling: big tiles (512-1024 rows) amortize the ~0.35us per-step
    # overhead of this HBM-bound kernel, but keep >= ~4 grid steps when the
    # batch allows so BlockSpec double-buffering overlaps x/out streaming with
    # compute and both v7x TensorCores get >=2 steps each.
    tb = min(block_rows, max(8, _round_up(n, 8)))
    while tb > 512 and pl.cdiv(n, tb) < 4:
        tb //= 2
    grid_n = pl.cdiv(n, tb)
    n_pad = grid_n * tb

    xk = x
    if n_pad != n:
        xk = jnp.pad(xk, ((0, n_pad - n), (0, 0)))

    x_spec = pl.BlockSpec((tb, in_feats), lambda i: (i, 0))
    # Constant index_maps -> weights/biases stay VMEM-resident across steps.
    param_specs = [pl.BlockSpec(p.shape, lambda i: (0, 0)) for p in packed]
    # Output at its true (unpadded) feature width: masked vst, but far less
    # HBM write traffic than a 128-lane-padded slab and no post-kernel
    # column slice.
    out_spec = pl.BlockSpec((tb, out_dim), lambda i: (i, 0))

    kernel = functools.partial(_gated_mlp_kernel, depth, activate_last, act_dtype)

    out = pl.pallas_call(
        kernel,
        out_shape=jax.ShapeDtypeStruct((n_pad, out_dim), x.dtype),
        grid_spec=pltpu.PrefetchScalarGridSpec(
            num_scalar_prefetch=0,
            grid=(grid_n,),
            in_specs=[x_spec] + param_specs,
            out_specs=out_spec,
        ),
        compiler_params=pltpu.CompilerParams(
            dimension_semantics=("parallel",),
            # Raise v5e's 16 MiB scoped-VMEM default so larger batch tiles /
            # real matgl dims still compile; well under any chip's physical.
            vmem_limit_bytes=48 * 1024 * 1024,
        ),
    )(xk, *packed)

    return out if n_pad == n else out[:n]


def gated_mlp_ref(x, layer_params, gate_params, *, activate_last=True):
    """Pure-JAX f32 reference (mirrors the PyTorch forward)."""
    depth = len(layer_params)
    hl = x.astype(jnp.float32)
    hg = x.astype(jnp.float32)
    for i in range(depth):
        lw, lb = layer_params[i]
        gw, gb = gate_params[i]
        zl = hl @ lw + lb
        zg = hg @ gw + gb
        if i < depth - 1:
            hl = jax.nn.silu(zl)
            hg = jax.nn.silu(zg)
        else:
            hl = jax.nn.silu(zl) if activate_last else zl
            hg = jax.nn.sigmoid(zg)
    return (hl * hg).astype(x.dtype)


def make_params(key, in_feats, dims):
    """Deterministic Linear params. W stored as (in_dim, out_dim). use_bias=True."""
    all_dims = [in_feats, *dims]
    layer_params, gate_params = [], []
    for in_dim, out_dim in zip(all_dims[:-1], all_dims[1:]):
        key, k1, k2, k3, k4 = jax.random.split(key, 5)
        bound = 1.0 / jnp.sqrt(in_dim)
        layer_params.append((
            jax.random.uniform(k1, (in_dim, out_dim), jnp.float32, -bound, bound),
            jax.random.uniform(k2, (out_dim,), jnp.float32, -bound, bound),
        ))
        gate_params.append((
            jax.random.uniform(k3, (in_dim, out_dim), jnp.float32, -bound, bound),
            jax.random.uniform(k4, (out_dim,), jnp.float32, -bound, bound),
        ))
    return layer_params, gate_params


if __name__ == "__main__":
    key = jax.random.PRNGKey(0)
    key, kx, kp = jax.random.split(key, 3)

    batch = 2048                 # -> 4 grid steps of 512 rows (2 per v7x TC)
    in_feats = 16
    dims = [32, 32, 16]          # GatedMLP(in_feats=16, dims=[32, 32, 16])
    activate_last = True

    x = jax.random.normal(kx, (batch, in_feats), jnp.float32)
    layer_params, gate_params = make_params(kp, in_feats, dims)

    # One-time param prep (outside the per-forward path).
    packed, meta = pack_gated_mlp_params(layer_params, gate_params)

    out = gated_mlp(x, packed, meta, activate_last=activate_last)
    out = jax.block_until_ready(out)

    ref = gated_mlp_ref(x, layer_params, gate_params, activate_last=activate_last)
    assert out.shape == (batch, dims[-1])
    # bf16 MXU operands (f32 accumulation) + bf16 intermediates on v6e/v7x
    # -> relaxed tolerance vs the f32 reference.
    assert jnp.allclose(out, ref, atol=4e-2, rtol=4e-2), "mismatch vs reference"

    print("KERNEL_OK")
</pallas_src>

<mosaic_0001>
module attributes {stable_mosaic.version = 11 : i64} {
  func.func @_gated_mlp_kernel(%arg0: i32, %arg1: memref<512x16xf32, #tpu.memory_space<vmem>>, %arg2: memref<16x128xbf16, #tpu.memory_space<vmem>>, %arg3: memref<1x128xf32, #tpu.memory_space<vmem>>, %arg4: memref<128x128xbf16, #tpu.memory_space<vmem>>, %arg5: memref<1x128xf32, #tpu.memory_space<vmem>>, %arg6: memref<128x128xbf16, #tpu.memory_space<vmem>>, %arg7: memref<1x128xf32, #tpu.memory_space<vmem>>, %arg8: memref<512x16xf32, #tpu.memory_space<vmem>>) attributes {dimension_semantics = [#tpu.dimension_semantics<parallel>], iteration_bounds = array<i64: 4>, scalar_prefetch = 0 : i64, scratch_operands = 0 : i64, tpu.core_type = #tpu.core_type<tc>, window_params = [{transform_indices = @transform_0, window_bounds = array<i64: 512, 16>}, {pipeline_mode = #tpu.pipeline_mode<synchronous>, transform_indices = @transform_1, window_bounds = array<i64: 16, 128>}, {pipeline_mode = #tpu.pipeline_mode<synchronous>, transform_indices = @transform_2, window_bounds = array<i64: 1, 128>}, {pipeline_mode = #tpu.pipeline_mode<synchronous>, transform_indices = @transform_3, window_bounds = array<i64: 128, 128>}, {pipeline_mode = #tpu.pipeline_mode<synchronous>, transform_indices = @transform_4, window_bounds = array<i64: 1, 128>}, {pipeline_mode = #tpu.pipeline_mode<synchronous>, transform_indices = @transform_5, window_bounds = array<i64: 128, 128>}, {pipeline_mode = #tpu.pipeline_mode<synchronous>, transform_indices = @transform_6, window_bounds = array<i64: 1, 128>}, {transform_indices = @transform_7, window_bounds = array<i64: 512, 16>}]} {
    %c0 = arith.constant 0 : index
    %c0_0 = arith.constant 0 : index
    %0 = vector.load %arg1[%c0, %c0_0] : memref<512x16xf32, #tpu.memory_space<vmem>>, vector<512x16xf32>
    %1 = arith.truncf %0 : vector<512x16xf32> to vector<512x16xbf16>
    %c0_1 = arith.constant 0 : index
    %c0_2 = arith.constant 0 : index
    %2 = vector.load %arg2[%c0_1, %c0_2] : memref<16x128xbf16, #tpu.memory_space<vmem>>, vector<16x128xbf16>
    %c0_3 = arith.constant 0 : index
    %c0_4 = arith.constant 0 : index
    %3 = vector.load %arg3[%c0_3, %c0_4] : memref<1x128xf32, #tpu.memory_space<vmem>>, vector<1x128xf32>
    %cst = arith.constant dense<0.000000e+00> : vector<512x128xf32>
    %4 = tpu.matmul %1, %2, %cst {dimension_numbers = #tpu.dot_dimension_numbers<[1], [0], [0], [1], [0, 0, 1, 1], [], []>} : vector<512x16xbf16>, vector<16x128xbf16>, vector<512x128xf32> -> vector<512x128xf32>
    %5 = vector.broadcast %3 : vector<1x128xf32> to vector<512x128xf32>
    %6 = arith.addf %4, %5 : vector<512x128xf32>
    %7 = arith.negf %6 : vector<512x128xf32>
    %8 = math.exp %7 : vector<512x128xf32>
    %cst_5 = arith.constant 1.000000e+00 : f32
    %9 = vector.broadcast %cst_5 : f32 to vector<512x128xf32>
    %10 = arith.addf %9, %8 : vector<512x128xf32>
    %11 = arith.divf %9, %10 : vector<512x128xf32>
    %12 = arith.mulf %6, %11 : vector<512x128xf32>
    %13 = arith.truncf %12 : vector<512x128xf32> to vector<512x128xbf16>
    %c0_6 = arith.constant 0 : index
    %c0_7 = arith.constant 0 : index
    %14 = vector.load %arg4[%c0_6, %c0_7] : memref<128x128xbf16, #tpu.memory_space<vmem>>, vector<128x128xbf16>
    %c0_8 = arith.constant 0 : index
    %c0_9 = arith.constant 0 : index
    %15 = vector.load %arg5[%c0_8, %c0_9] : memref<1x128xf32, #tpu.memory_space<vmem>>, vector<1x128xf32>
    %cst_10 = arith.constant dense<0.000000e+00> : vector<512x128xf32>
    %16 = tpu.matmul %13, %14, %cst_10 {dimension_numbers = #tpu.dot_dimension_numbers<[1], [0], [0], [1], [0, 0, 1, 1], [], []>} : vector<512x128xbf16>, vector<128x128xbf16>, vector<512x128xf32> -> vector<512x128xf32>
    %17 = vector.broadcast %15 : vector<1x128xf32> to vector<512x128xf32>
    %18 = arith.addf %16, %17 : vector<512x128xf32>
    %19 = arith.negf %18 : vector<512x128xf32>
    %20 = math.exp %19 : vector<512x128xf32>
    %cst_11 = arith.constant 1.000000e+00 : f32
    %21 = vector.broadcast %cst_11 : f32 to vector<512x128xf32>
    %22 = arith.addf %21, %20 : vector<512x128xf32>
    %23 = arith.divf %21, %22 : vector<512x128xf32>
    %24 = arith.mulf %18, %23 : vector<512x128xf32>
    %25 = arith.truncf %24 : vector<512x128xf32> to vector<512x128xbf16>
    %c0_12 = arith.constant 0 : index
    %c0_13 = arith.constant 0 : index
    %26 = vector.load %arg6[%c0_12, %c0_13] : memref<128x128xbf16, #tpu.memory_space<vmem>>, vector<128x128xbf16>
    %c0_14 = arith.constant 0 : index
    %c0_15 = arith.constant 0 : index
    %27 = vector.load %arg7[%c0_14, %c0_15] : memref<1x128xf32, #tpu.memory_space<vmem>>, vector<1x128xf32>
    %cst_16 = arith.constant dense<0.000000e+00> : vector<512x128xf32>
    %28 = tpu.matmul %25, %26, %cst_16 {dimension_numbers = #tpu.dot_dimension_numbers<[1], [0], [0], [1], [0, 0, 1, 1], [], []>} : vector<512x128xbf16>, vector<128x128xbf16>, vector<512x128xf32> -> vector<512x128xf32>
    %29 = vector.broadcast %27 : vector<1x128xf32> to vector<512x128xf32>
    %30 = arith.addf %28, %29 : vector<512x128xf32>
    %c64_i32 = arith.constant 64 : i32
    %31 = tpu.dynamic_rotate %30 by %c64_i32 dim 1 : vector<512x128xf32>, i32 -> vector<512x128xf32>
    %32 = arith.negf %30 : vector<512x128xf32>
    %33 = math.exp %32 : vector<512x128xf32>
    %cst_17 = arith.constant 1.000000e+00 : f32
    %34 = vector.broadcast %cst_17 : f32 to vector<512x128xf32>
    %35 = arith.addf %34, %33 : vector<512x128xf32>
    %36 = arith.divf %34, %35 : vector<512x128xf32>
    %37 = arith.mulf %30, %36 : vector<512x128xf32>
    %38 = arith.negf %31 : vector<512x128xf32>
    %39 = math.exp %38 : vector<512x128xf32>
    %cst_18 = arith.constant 1.000000e+00 : f32
    %40 = vector.broadcast %cst_18 : f32 to vector<512x128xf32>
    %41 = arith.addf %40, %39 : vector<512x128xf32>
    %42 = arith.divf %40, %41 : vector<512x128xf32>
    %43 = arith.mulf %37, %42 : vector<512x128xf32>
    %44 = vector.extract_strided_slice %43 {offsets = [0, 0], sizes = [512, 16], strides = [1, 1]} : vector<512x128xf32> to vector<512x16xf32>
    %c0_19 = arith.constant 0 : index
    %c0_20 = arith.constant 0 : index
    %45 = vector.load %arg8[%c0_19, %c0_20] : memref<512x16xf32, #tpu.memory_space<vmem>>, vector<512x16xf32>
    tpu.vector_store %arg8[%c0_19, %c0_20], %44 {strides = array<i32>} : memref<512x16xf32, #tpu.memory_space<vmem>>, vector<512x16xf32>,
    return
  }
  func.func @transform_0(%arg0: i32) -> (i32, i32) {
    %c0_i32 = arith.constant 0 : i32
    %c0_i32_0 = arith.constant 0 : i32
    return %arg0, %c0_i32 : i32, i32
  }
  func.func @transform_1(%arg0: i32) -> (i32, i32) {
    %c0_i32 = arith.constant 0 : i32
    %c0_i32_0 = arith.constant 0 : i32
    %c0_i32_1 = arith.constant 0 : i32
    return %c0_i32, %c0_i32_0 : i32, i32
  }
  func.func @transform_2(%arg0: i32) -> (i32, i32) {
    %c0_i32 = arith.constant 0 : i32
    %c0_i32_0 = arith.constant 0 : i32
    %c0_i32_1 = arith.constant 0 : i32
    return %c0_i32, %c0_i32_0 : i32, i32
  }
  func.func @transform_3(%arg0: i32) -> (i32, i32) {
    %c0_i32 = arith.constant 0 : i32
    %c0_i32_0 = arith.constant 0 : i32
    %c0_i32_1 = arith.constant 0 : i32
    return %c0_i32, %c0_i32_0 : i32, i32
  }
  func.func @transform_4(%arg0: i32) -> (i32, i32) {
    %c0_i32 = arith.constant 0 : i32
    %c0_i32_0 = arith.constant 0 : i32
    %c0_i32_1 = arith.constant 0 : i32
    return %c0_i32, %c0_i32_0 : i32, i32
  }
  func.func @transform_5(%arg0: i32) -> (i32, i32) {
    %c0_i32 = arith.constant 0 : i32
    %c0_i32_0 = arith.constant 0 : i32
    %c0_i32_1 = arith.constant 0 : i32
    return %c0_i32, %c0_i32_0 : i32, i32
  }
  func.func @transform_6(%arg0: i32) -> (i32, i32) {
    %c0_i32 = arith.constant 0 : i32
    %c0_i32_0 = arith.constant 0 : i32
    %c0_i32_1 = arith.constant 0 : i32
    return %c0_i32, %c0_i32_0 : i32, i32
  }
  func.func @transform_7(%arg0: i32) -> (i32, i32) {
    %c0_i32 = arith.constant 0 : i32
    %c0_i32_0 = arith.constant 0 : i32
    return %arg0, %c0_i32 : i32, i32
  }
}

</mosaic_0001>

<bundles_post_ra>
// kernel: tpu_custom_call.1
= control target key start
LH: loop header
LB: loop body
LE: loop exit
PB: predicated region body
PF: predicated region fallthrough
CT: control target
= control target key end

     0   :  { %s5366_s24 = smov 0   ;;  %s7291_s0 = inlined_call_operand.vmem [shape: f32[2048,16], index: 0, kind: input, shape index: {}]   ;;  %s7292_s1 = inlined_call_operand.vmem [shape: bf16[16,128], index: 1, kind: input, shape index: {}]   ;;  %s7293_s2 = inlined_call_operand.vmem [shape: f32[1,128], index: 2, kind: input, shape index: {}]   ;;  %s7294_s3 = inlined_call_operand.vmem [shape: bf16[128,128], index: 3, kind: input, shape index: {}]   ;;  %s7295_s4 = inlined_call_operand.vmem [shape: f32[1,128], index: 4, kind: input, shape index: {}]   ;;  %s7296_s5 = inlined_call_operand.vmem [shape: bf16[128,128], index: 5, kind: input, shape index: {}]   ;;  %s7297_s6 = inlined_call_operand.vmem [shape: f32[1,128], index: 6, kind: input, shape index: {}]   ;;  %s7298_s7 = inlined_call_operand.vmem [shape: f32[2048,16], index: 7, kind: output, shape index: {}]  }
   0x1 LB: > { %s3604_s25 = sadd.s32 4294967295, %s5323_s24   ;;  %p3608_p0 = scmp.ge.s32.totalorder %s5323_s24, 1  ;;  %s5323_s24 = sphi %s5366_s24, %s17_s24  }
   0x2   : > { %p238_p1 = scmp.lt.s32.totalorder %s5323_s24, 5 }
   0x4   : > { %p239_p2 = pnand %p3608_p0, %p238_p1 }
   0x6   : > { %242 = sbr.rel (%p239_p2) target bundleno = 1050 (0x41a), region = 48 }
   0xd   : > { %v4273_v0 = vld [vmem:[%s7292_s1] sm:$0xff]   ;;  %s3609_s28 = sshll.u32 %s3604_s25, 6  ;;  %vm394_vm0 = vcmask 130048   ;;  %v4275_v26 = vld [vmem:[%s7294_s3 + $0x8] sm:$0xff]   ;;  %v4276_v35 = vld [vmem:[%s7294_s3 + $0x10] sm:$0xff]   ;;  %s5325_s12 = smov 64  }
   0xe   : > { %p271_p3 = scmp.lt.s32.totalorder %s3609_s28, 255  ;;  %4036 = vmatprep.subr.bf16.mxu0 %v4273_v0  ;;  %4262 = vmatprep.subr.bf16.mxu1 %v4273_v0  ;;  %v4274_v1 = vld [vmem:[%s7294_s3] sm:$0xff]   ;;  %v4277_v40 = vld [vmem:[%s7294_s3 + $0x18] sm:$0xff]  }
   0xf   : > { %4037 = vmatpush3.bf16.msra.mxu0 %v4273_v0  ;;  %4263 = vmatpush3.bf16.msra.mxu1 %v4273_v0 }
  0x10   : > { %s7524_s28 = smov (!%p271_p3, %s3609_s28), 255  ;;  %4102 = vmatprep.subr.bf16.mxu1 %v4274_v1 }
  0x11   : > { %s3610_s8 = sshll.u32 %s7524_s28, 3 }
  0x12   : > { %s5388_s11 = scalar_lea.vmem %s7291_s0, %s3610_s8  ;;  %s6888_s17 = scalar_lea.vmem %s7298_s7, %s3610_s8 }
  0x13   : > { %v283_v2 = vld [vmem:[%s5388_s11] sm:$0xff]  ;;  %v284_v3 = vld [vmem:[%s5388_s11 + $0x8] sm:$0xff]  ;;  %v285_v4 = vld [vmem:[%s5388_s11 + $0x10] sm:$0xff] }
  0x14   : > { %v347_v5 = vpack.c.bf16 %v284_v3, %v283_v2  ;;  %v286_v6 = vld [vmem:[%s5388_s11 + $0x18] sm:$0xff]  ;;  %v287_v7 = vld [vmem:[%s5388_s11 + $0x20] sm:$0xff]  ;;  %v288_v8 = vld [vmem:[%s5388_s11 + $0x28] sm:$0xff] }
  0x15   : > { %v348_v9 = vpack.c.bf16 %v286_v6, %v285_v4  ;;  %v349_v10 = vpack.c.bf16 %v288_v8, %v287_v7  ;;  %v289_v11 = vld [vmem:[%s5388_s11 + $0x30] sm:$0xff]  ;;  %v290_v12 = vld [vmem:[%s5388_s11 + $0x38] sm:$0xff]  ;;  %v291_v13 = vld [vmem:[%s5388_s11 + $0x40] sm:$0xff] }
  0x16   : > { %4038 = vmatprep.mubr.msk.bf16.mxu0 %vm394_vm0, %v347_v5  ;;  %v292_v14 = vld [vmem:[%s5388_s11 + $0x48] sm:$0xff]  ;;  %v315_v15 = vld [vmem:[%s5388_s11 + $0x100] sm:$0xff]  ;;  %v317_v17 = vld [vmem:[%s5388_s11 + $0x110] sm:$0xff]  ;;  %v350_v19 = vpack.c.bf16 %v290_v12, %v289_v11 }
  0x17   : > { %4039 = vmatmul.mubr.msk.bf16.vlgmr.msra.gmra.mrb[0].mxu0 %vm394_vm0, %v348_v9  ;;  %v316_v16 = vld [vmem:[%s5388_s11 + $0x108] sm:$0xff]  ;;  %v318_v18 = vld [vmem:[%s5388_s11 + $0x118] sm:$0xff]  ;;  %v351_v22 = vpack.c.bf16 %v292_v14, %v291_v13  ;;  %v319_v23 = vld [vmem:[%s5388_s11 + $0x120] sm:$0xff] }
  0x18   : > { %4042 = vmatprep.mubr.msk.bf16.mxu0 %vm394_vm0, %v349_v10  ;;  %v363_v20 = vpack.c.bf16 %v316_v16, %v315_v15  ;;  %v364_v21 = vpack.c.bf16 %v318_v18, %v317_v17  ;;  %v320_v24 = vld [vmem:[%s5388_s11 + $0x128] sm:$0xff]  ;;  %v293_v27 = vld [vmem:[%s5388_s11 + $0x50] sm:$0xff]  ;;  %v322_v29 = vld [vmem:[%s5388_s11 + $0x138] sm:$0xff] }
  0x19   : > { %v365_v25 = vpack.c.bf16 %v320_v24, %v319_v23  ;;  %v321_v28 = vld [vmem:[%s5388_s11 + $0x130] sm:$0xff]  ;;  %v294_v30 = vld [vmem:[%s5388_s11 + $0x58] sm:$0xff]  ;;  %v323_v31 = vld [vmem:[%s5388_s11 + $0x140] sm:$0xff] }
  0x1a   : > { %4070 = vmatprep.mubr.msk.bf16.mxu1 %vm394_vm0, %v363_v20  ;;  %v324_v32 = vld [vmem:[%s5388_s11 + $0x148] sm:$0xff]  ;;  %v295_v33 = vld [vmem:[%s5388_s11 + $0x60] sm:$0xff]  ;;  %v366_v36 = vpack.c.bf16 %v322_v29, %v321_v28  ;;  %v352_v37 = vpack.c.bf16 %v294_v30, %v293_v27  ;;  %v297_v41 = vld [vmem:[%s5388_s11 + $0x70] sm:$0xff] }
  0x1b   : > { %4071 = vmatmul.mubr.msk.bf16.vlgmr.msra.gmra.mrb[0].mxu1 %vm394_vm0, %v364_v21  ;;  %v296_v34 = vld [vmem:[%s5388_s11 + $0x68] sm:$0xff]  ;;  %v367_v38 = vpack.c.bf16 %v324_v32, %v323_v31  ;;  %v298_v42 = vld [vmem:[%s5388_s11 + $0x78] sm:$0xff]  ;;  %v299_v43 = vld [vmem:[%s5388_s11 + $0x80] sm:$0xff] }
  0x1c   : > { %4074 = vmatprep.mubr.msk.bf16.mxu1 %vm394_vm0, %v365_v25  ;;  %4103 = vmatpush3.bf16.msra.mxu1 %v4274_v1  ;;  %v353_v39 = vpack.c.bf16 %v296_v34, %v295_v33  ;;  %v300_v44 = vld [vmem:[%s5388_s11 + $0x88] sm:$0xff]  ;;  %v325_v45 = vld [vmem:[%s5388_s11 + $0x150] sm:$0xff]  ;;  %v326_v46 = vld [vmem:[%s5388_s11 + $0x158] sm:$0xff]  ;;  %v354_v50 = vpack.c.bf16 %v298_v42, %v297_v41 }
  0x1d   : > { %4104 = vmatprep.subr.bf16.mxu1 %v4275_v26  ;;  %v327_v47 = vld [vmem:[%s5388_s11 + $0x160] sm:$0xff]  ;;  %v328_v48 = vld [vmem:[%s5388_s11 + $0x168] sm:$0xff]  ;;  %v368_v49 = vpack.c.bf16 %v326_v46, %v325_v45  ;;  %v355_v52 = vpack.c.bf16 %v300_v44, %v299_v43  ;;  %v301_v53 = vld [vmem:[%s5388_s11 + $0x90] sm:$0xff] }
  0x1e   : > { %v369_v51 = vpack.c.bf16 %v328_v48, %v327_v47  ;;  %v329_v54 = vld [vmem:[%s5388_s11 + $0x170] sm:$0xff]  ;;  %v330_v55 = vld [vmem:[%s5388_s11 + $0x178] sm:$0xff]  ;;  %v331_v57 = vld [vmem:[%s5388_s11 + $0x180] sm:$0xff] }
  0x1f   : > { %4043 = vmatmul.mubr.msk.bf16.gmra.mrb[4].mxu0 %vm394_vm0, %v350_v19  ;;  %v302_v56 = vld [vmem:[%s5388_s11 + $0x98] sm:$0xff]  ;;  %v332_v58 = vld [vmem:[%s5388_s11 + $0x188] sm:$0xff]  ;;  %v303_v59 = vld [vmem:[%s5388_s11 + $0xa0] sm:$0xff]  ;;  %v370_v61 = vpack.c.bf16 %v330_v55, %v329_v54 }
  0x20   : > { %4046 = vmatprep.mubr.msk.bf16.mxu0 %vm394_vm0, %v351_v22  ;;  %4105 = vmatpush3.bf16.msra.mxu1 %v4275_v26  ;;  %v304_v60 = vld [vmem:[%s5388_s11 + $0xa8] sm:$0xff]  ;;  %v356_v62 = vpack.c.bf16 %v302_v56, %v301_v53  ;;  %v371_v63 = vpack.c.bf16 %v332_v58, %v331_v57  ;;  %v305_v1 = vld [vmem:[%s5388_s11 + $0xb0] sm:$0xff]  ;;  %v334_v3 = vld [vmem:[%s5388_s11 + $0x198] sm:$0xff] }
  0x21   : > { %4106 = vmatprep.subr.bf16.mxu1 %v4276_v35  ;;  %v357_v0 = vpack.c.bf16 %v304_v60, %v303_v59  ;;  %v333_v2 = vld [vmem:[%s5388_s11 + $0x190] sm:$0xff]  ;;  %v306_v4 = vld [vmem:[%s5388_s11 + $0xb8] sm:$0xff]  ;;  %v335_v5 = vld [vmem:[%s5388_s11 + $0x1a0] sm:$0xff] }
  0x22   : > { %v336_v6 = vld [vmem:[%s5388_s11 + $0x1a8] sm:$0xff]  ;;  %v307_v7 = vld [vmem:[%s5388_s11 + $0xc0] sm:$0xff]  ;;  %v372_v9 = vpack.c.bf16 %v334_v3, %v333_v2  ;;  %v358_v10 = vpack.c.bf16 %v306_v4, %v305_v1  ;;  %v309_v13 = vld [vmem:[%s5388_s11 + $0xd0] sm:$0xff] }
  0x23   : > { %4075 = vmatmul.mubr.msk.bf16.gmra.mrb[4].mxu1 %vm394_vm0, %v366_v36  ;;  %v308_v8 = vld [vmem:[%s5388_s11 + $0xc8] sm:$0xff]  ;;  %v373_v11 = vpack.c.bf16 %v336_v6, %v335_v5  ;;  %v337_v14 = vld [vmem:[%s5388_s11 + $0x1b0] sm:$0xff]  ;;  %v338_v15 = vld [vmem:[%s5388_s11 + $0x1b8] sm:$0xff] }
  0x24   : > { %4078 = vmatprep.mubr.msk.bf16.mxu1 %vm394_vm0, %v367_v38  ;;  %4107 = vmatpush3.bf16.msra.mxu1 %v4276_v35  ;;  %v359_v12 = vpack.c.bf16 %v308_v8, %v307_v7  ;;  %v310_v16 = vld [vmem:[%s5388_s11 + $0xd8] sm:$0xff]  ;;  %v339_v17 = vld [vmem:[%s5388_s11 + $0x1c0] sm:$0xff]  ;;  %v340_v18 = vld [vmem:[%s5388_s11 + $0x1c8] sm:$0xff]  ;;  %v374_v21 = vpack.c.bf16 %v338_v15, %v337_v14 }
  0x25   : > { %4108 = vmatprep.subr.bf16.mxu1 %v4277_v40  ;;  %v311_v19 = vld [vmem:[%s5388_s11 + $0xe0] sm:$0xff]  ;;  %v312_v20 = vld [vmem:[%s5388_s11 + $0xe8] sm:$0xff]  ;;  %v360_v22 = vpack.c.bf16 %v310_v16, %v309_v13  ;;  %v375_v23 = vpack.c.bf16 %v340_v18, %v339_v17  ;;  %v313_v25 = vld [vmem:[%s5388_s11 + $0xf0] sm:$0xff] }
  0x26   : > { %v361_v24 = vpack.c.bf16 %v312_v20, %v311_v19  ;;  %v341_v26 = vld [vmem:[%s5388_s11 + $0x1d0] sm:$0xff]  ;;  %v342_v27 = vld [vmem:[%s5388_s11 + $0x1d8] sm:$0xff]  ;;  %v343_v29 = vld [vmem:[%s5388_s11 + $0x1e0] sm:$0xff] }
  0x27   : > { %4047 = vmatmul.mubr.msk.bf16.gmra.mrb[8].mxu0 %vm394_vm0, %v352_v37  ;;  %v314_v28 = vld [vmem:[%s5388_s11 + $0xf8] sm:$0xff]  ;;  %v344_v30 = vld [vmem:[%s5388_s11 + $0x1e8] sm:$0xff]  ;;  %v376_v31 = vpack.c.bf16 %v342_v27, %v341_v26  ;;  %v345_v34 = vld [vmem:[%s5388_s11 + $0x1f0] sm:$0xff] }
  0x28   : > { %4050 = vmatprep.mubr.msk.bf16.mxu0 %vm394_vm0, %v353_v39  ;;  %4109 = vmatpush3.bf16.msra.mxu1 %v4277_v40  ;;  %v362_v32 = vpack.c.bf16 %v314_v28, %v313_v25  ;;  %v377_v33 = vpack.c.bf16 %v344_v30, %v343_v29  ;;  %v346_v35 = vld [vmem:[%s5388_s11 + $0x1f8] sm:$0xff]  ;;  %v4278_v37 = vld [vmem:[%s7294_s3 + $0x20] sm:$0xff]   ;;  %v4279_v38 = vld [vmem:[%s7294_s3 + $0x28] sm:$0xff]  }
  0x29   : > { %v378_v36 = vpack.c.bf16 %v346_v35, %v345_v34  ;;  %4110 = vmatprep.subr.bf16.mxu1 %v4278_v37  ;;  %v4280_v39 = vld [vmem:[%s7294_s3 + $0x30] sm:$0xff]   ;;  %v4281_v40 = vld [vmem:[%s7294_s3 + $0x38] sm:$0xff]   ;;  %v5510_v41 = vld [vmem:[%s7293_s2] ss:$0 sm:$0xff] }
  0x2b   : > { %4079 = vmatmul.mubr.msk.bf16.gmra.mrb[8].mxu1 %vm394_vm0, %v368_v49 }
  0x2c   : > { %4082 = vmatprep.mubr.msk.bf16.mxu1 %vm394_vm0, %v369_v51  ;;  %4111 = vmatpush3.bf16.msra.mxu1 %v4278_v37 }
  0x2d   : > { %4112 = vmatprep.subr.bf16.mxu1 %v4279_v38 }
  0x2f   : > { %4051 = vmatmul.mubr.msk.bf16.gmra.mrb[12].mxu0 %vm394_vm0, %v354_v50 }
  0x30   : > { %4054 = vmatprep.mubr.msk.bf16.mxu0 %vm394_vm0, %v355_v52  ;;  %4113 = vmatpush3.bf16.msra.mxu1 %v4279_v38 }
  0x31   : > { %4114 = vmatprep.subr.bf16.mxu1 %v4280_v39 }
  0x33   : > { %4083 = vmatmul.mubr.msk.bf16.gmra.mrb[12].mxu1 %vm394_vm0, %v370_v61 }
  0x34   : > { %4086 = vmatprep.mubr.msk.bf16.mxu1 %vm394_vm0, %v371_v63  ;;  %4115 = vmatpush3.bf16.msra.mxu1 %v4280_v39 }
  0x35   : > { %4116 = vmatprep.subr.bf16.mxu1 %v4281_v40 }
  0x37   : > { %4055 = vmatmul.mubr.msk.bf16.gmra.mrb[16].mxu0 %vm394_vm0, %v356_v62 }
  0x38   : > { %4058 = vmatprep.mubr.msk.bf16.mxu0 %vm394_vm0, %v357_v0  ;;  %4117 = vmatpush3.bf16.msra.mxu1 %v4281_v40 }
  0x3b   : > { %4087 = vmatmul.mubr.msk.bf16.gmra.mrb[16].mxu1 %vm394_vm0, %v372_v9 }
  0x3c   : > { %4090 = vmatprep.mubr.msk.bf16.mxu1 %vm394_vm0, %v373_v11 }
  0x3f   : > { %4059 = vmatmul.mubr.msk.bf16.gmra.mrb[20].mxu0 %vm394_vm0, %v358_v10 }
  0x40   : > { %4062 = vmatprep.mubr.msk.bf16.mxu0 %vm394_vm0, %v359_v12 }
  0x43   : > { %4091 = vmatmul.mubr.msk.bf16.gmra.mrb[20].mxu1 %vm394_vm0, %v374_v21 }
  0x44   : > { %4094 = vmatprep.mubr.msk.bf16.mxu1 %vm394_vm0, %v375_v23 }
  0x47   : > { %4063 = vmatmul.mubr.msk.bf16.gmra.mrb[24].mxu0 %vm394_vm0, %v360_v22 }
  0x48   : > { %4066 = vmatprep.mubr.msk.bf16.mxu0 %vm394_vm0, %v361_v24 }
  0x4b   : > { %4095 = vmatmul.mubr.msk.bf16.gmra.mrb[24].mxu1 %vm394_vm0, %v376_v31 }
  0x4c   : > { %4098 = vmatprep.mubr.msk.bf16.mxu1 %vm394_vm0, %v377_v33 }
  0x4f   : > { %4067 = vmatmul.mubr.msk.bf16.gmra.mrb[28].mxu0 %vm394_vm0, %v362_v32 }
  0x53   : > { %4099 = vmatmul.mubr.msk.bf16.gmra.mrb[28].mxu1 %vm394_vm0, %v378_v36 }
  0xea   : > { %v4040_v42 = vpop.f32.mrb[0].mxu0 }
  0xeb   : > { %v5513_v43 = vadd.f32 %v4040_v42, %v5510_v41  ;;  %v525_v44 = vpop.f32.mrb[1].mxu0 }
  0xec   : > { %v5516_v45 = vadd.f32 %v5510_v41, %v525_v44  ;;  %v4041_v46 = vpop.f32.mrb[2].mxu0 }
  0xed   : > { %v3649_v47 = vmul.f32 -1.442695, %v5513_v43  ;;  %v5520_v48 = vadd.f32 %v4041_v46, %v5510_v41  ;;  %v528_v49 = vpop.f32.mrb[3].mxu0 }
  0xee   : > { %v3647_v50 = vmul.f32 -1.442695, %v5516_v45  ;;  %v5524_v51 = vadd.f32 %v5510_v41, %v528_v49  ;;  %v4072_v54 = vpop.f32.mrb[0].mxu1 }
  0xef   : > { %4290 = vpow2.f32 %v3649_v47  ;;  %v3650_v52 = vmul.f32 -1.442695, %v5520_v48  ;;  %v5529_v56 = vadd.f32 %v4072_v54, %v5510_v41  ;;  %v653_v57 = vpop.f32.mrb[1].mxu1 }
  0xf0   : > { %4292 = vpow2.f32 %v3647_v50  ;;  %v3648_v53 = vmul.f32 -1.442695, %v5524_v51  ;;  %v5535_v60 = vadd.f32 %v5510_v41, %v653_v57  ;;  %v5537_v61 = vpop.f32.mrb[2].mxu1 }
  0xf1   : > { %4294 = vpow2.f32 %v3650_v52  ;;  %v3681_v0 = vmul.f32 -1.442695, %v5529_v56  ;;  %v5543_v1 = vpop.f32.mrb[3].mxu1 }
  0xf2   : > { %4296 = vpow2.f32 %v3648_v53  ;;  %v4044_v55 = vpop.f32.mrb[4].mxu0  ;;  %v3679_v8 = vmul.f32 -1.442695, %v5535_v60 }
  0xf3   : > { %v5532_v58 = vadd.f32 %v4044_v55, %v5510_v41  ;;  %v541_v59 = vpop.f32.mrb[5].mxu0  ;;  %4298 = vpow2.f32 %v3681_v0 }
  0xf4   : > { %v5540_v62 = vadd.f32 %v5510_v41, %v541_v59  ;;  %v4045_v63 = vpop.f32.mrb[6].mxu0 }
  0xf5   : > { %v3653_v2 = vmul.f32 -1.442695, %v5532_v58  ;;  %v5547_v3 = vadd.f32 %v4045_v63, %v5510_v41  ;;  %v544_v4 = vpop.f32.mrb[7].mxu0 }
  0xf6   : > { %v3651_v5 = vmul.f32 -1.442695, %v5540_v62  ;;  %v5551_v6 = vadd.f32 %v5510_v41, %v544_v4  ;;  %v5556_v11 = vpop.f32.mrb[4].mxu1 }
  0xf7   : > { %4300 = vpow2.f32 %v3653_v2  ;;  %v3654_v7 = vmul.f32 -1.442695, %v5547_v3  ;;  %v5558_v15 = vpop.f32.mrb[5].mxu1 }
  0xf8   : > { %4302 = vpow2.f32 %v3651_v5  ;;  %v3652_v9 = vmul.f32 -1.442695, %v5551_v6  ;;  %v5563_v20 = vpop.f32.mrb[6].mxu1 }
  0xf9   : > { %v4291_v10 = vpop.eup %4290  ;;  %4304 = vpow2.f32 %v3654_v7  ;;  %v5568_v25 = vpop.f32.mrb[7].mxu1 }
  0xfa   : > { %v4293_v12 = vpop.eup %4292  ;;  %v974_v13 = vadd.f32 1.0, %v4291_v10  ;;  %4306 = vpow2.f32 %v3652_v9  ;;  %v4048_v14 = vpop.f32.mrb[8].mxu0 }
  0xfb   : > { %v4295_v16 = vpop.eup %4294  ;;  %v972_v17 = vadd.f32 1.0, %v4293_v12  ;;  %v5561_v18 = vadd.f32 %v4048_v14, %v5510_v41  ;;  %v557_v19 = vpop.f32.mrb[9].mxu0  ;;  %4308 = vpow2.f32 %v3679_v8 }
  0xfc   : > { %v4297_v21 = vpop.eup %4296  ;;  %4310 = vrcp.f32 %v974_v13  ;;  %v975_v22 = vadd.f32 1.0, %v4295_v16  ;;  %v5566_v23 = vadd.f32 %v5510_v41, %v557_v19  ;;  %v4049_v24 = vpop.f32.mrb[10].mxu0 }
  0xfd   : > { %4312 = vrcp.f32 %v972_v17  ;;  %v973_v26 = vadd.f32 1.0, %v4297_v21  ;;  %v3657_v27 = vmul.f32 -1.442695, %v5561_v18  ;;  %v5572_v28 = vadd.f32 %v4049_v24, %v5510_v41  ;;  %v560_v29 = vpop.f32.mrb[11].mxu0  ;;  %v4299_v33 = vpop.eup %4298 }
  0xfe   : > { %4314 = vrcp.f32 %v975_v22  ;;  %v3655_v30 = vmul.f32 -1.442695, %v5566_v23  ;;  %v5576_v31 = vadd.f32 %v5510_v41, %v560_v29  ;;  %v5580_v36 = vpop.f32.mrb[8].mxu1  ;;  %v1006_v13 = vadd.f32 1.0, %v4299_v33 }
  0xff   : > { %4316 = vrcp.f32 %v973_v26  ;;  %v3658_v32 = vmul.f32 -1.442695, %v5572_v28  ;;  %v5582_v40 = vpop.f32.mrb[9].mxu1 }
 0x100   : > { %4318 = vpow2.f32 %v3657_v27  ;;  %v3656_v34 = vmul.f32 -1.442695, %v5576_v31  ;;  %v5587_v49 = vpop.f32.mrb[10].mxu1 }
 0x101   : > { %v4301_v35 = vpop.eup %4300  ;;  %4320 = vpow2.f32 %v3655_v30  ;;  %v5592_v55 = vpop.f32.mrb[11].mxu1 }
 0x102   : > { %v4303_v37 = vpop.eup %4302  ;;  %v978_v38 = vadd.f32 1.0, %v4301_v35  ;;  %4322 = vpow2.f32 %v3658_v32  ;;  %v4052_v39 = vpop.f32.mrb[12].mxu0 }
 0x103   : > { %v4305_v42 = vpop.eup %4304  ;;  %v976_v44 = vadd.f32 1.0, %v4303_v37  ;;  %4324 = vpow2.f32 %v3656_v34  ;;  %v5585_v46 = vadd.f32 %v4052_v39, %v5510_v41  ;;  %v573_v47 = vpop.f32.mrb[13].mxu0 }
 0x104   : > { %v4307_v50 = vpop.eup %4306  ;;  %4326 = vrcp.f32 %v978_v38  ;;  %v979_v52 = vadd.f32 1.0, %v4305_v42  ;;  %v5590_v53 = vadd.f32 %v5510_v41, %v573_v47  ;;  %v4053_v54 = vpop.f32.mrb[14].mxu0 }
 0x105   : > { %v5594_v57 = vpop.eup %4308  ;;  %4328 = vrcp.f32 %v976_v44  ;;  %v977_v59 = vadd.f32 1.0, %v4307_v50  ;;  %v3661_v63 = vmul.f32 -1.442695, %v5585_v46  ;;  %v5598_v0 = vadd.f32 %v4053_v54, %v5510_v41  ;;  %v576_v2 = vpop.f32.mrb[15].mxu0 }
 0x106   : > { %v4311_v4 = vpop.eup %4310  ;;  %4330 = vrcp.f32 %v979_v52  ;;  %v3659_v5 = vmul.f32 -1.442695, %v5590_v53  ;;  %v5602_v7 = vadd.f32 %v5510_v41, %v576_v2  ;;  %v5608_v19 = vpop.f32.mrb[12].mxu1 }
 0x107   : > { %v4313_v8 = vpop.eup %4312  ;;  %4332 = vrcp.f32 %v977_v59  ;;  %v3662_v9 = vmul.f32 -1.442695, %v5598_v0  ;;  %v1166_v16 = vmul.f32 %v4311_v4, %v5513_v43  ;;  %v5612_v27 = vpop.f32.mrb[13].mxu1 }
 0x108   : > { %v4315_v10 = vpop.eup %4314  ;;  %4334 = vpow2.f32 %v3661_v63  ;;  %v3660_v12 = vmul.f32 -1.442695, %v5602_v7  ;;  %v1164_v22 = vmul.f32 %v4313_v8, %v5516_v45  ;;  %v5617_v33 = vpop.f32.mrb[14].mxu1 }
 0x109   : > { %v4317_v14 = vpop.eup %4316  ;;  %v1167_v17 = vmul.f32 %v4315_v10, %v5520_v48  ;;  %4336 = vpow2.f32 %v3659_v5  ;;  %v5622_v38 = vpop.f32.mrb[15].mxu1 }
 0x10a   : > { %v4319_v21 = vpop.eup %4318  ;;  %v1165_v24 = vmul.f32 %v4317_v14, %v5524_v51  ;;  %4338 = vpow2.f32 %v3662_v9  ;;  %v4056_v26 = vpop.f32.mrb[16].mxu0 }
 0x10b   : > { %v4321_v29 = vpop.eup %4320  ;;  %v1229_v30 = vpack.c.bf16 %v1167_v17, %v1166_v16  ;;  %v982_v32 = vadd.f32 1.0, %v4319_v21  ;;  %4340 = vpow2.f32 %v3660_v12  ;;  %v5615_v43 = vadd.f32 %v4056_v26, %v5510_v41  ;;  %v589_v48 = vpop.f32.mrb[17].mxu0 }
 0x10c   : > { %v4323_v34 = vpop.eup %4322  ;;  %v980_v35 = vadd.f32 1.0, %v4321_v29  ;;  %v5620_v45 = vadd.f32 %v5510_v41, %v589_v48  ;;  %v4057_v51 = vpop.f32.mrb[18].mxu0  ;;  %4342 = vrcp.f32 %v1006_v13  ;;  %v1228_v37 = vpack.c.bf16 %v1165_v24, %v1164_v22 }
 0x10d   : > { %v4325_v39 = vpop.eup %4324  ;;  %4344 = vrcp.f32 %v982_v32  ;;  %v983_v42 = vadd.f32 1.0, %v4323_v34  ;;  %v3665_v44 = vmul.f32 -1.442695, %v5615_v43  ;;  %v5626_v47 = vadd.f32 %v4057_v51, %v5510_v41  ;;  %v592_v50 = vpop.f32.mrb[19].mxu0 }
 0x10e   : > { %v4327_v52 = vpop.eup %4326  ;;  %4346 = vrcp.f32 %v980_v35  ;;  %v981_v54 = vadd.f32 1.0, %v4325_v39  ;;  %v3663_v59 = vmul.f32 -1.442695, %v5620_v45  ;;  %v5630_v63 = vadd.f32 %v5510_v41, %v592_v50  ;;  %4118 = vmatprep.mubr.bf16.mxu1 %v1228_v37  ;;  %v5636_v13 = vpop.f32.mrb[16].mxu1 }
 0x10f   : > { %v4329_v2 = vpop.eup %4328  ;;  %4348 = vrcp.f32 %v983_v42  ;;  %v3666_v4 = vmul.f32 -1.442695, %v5626_v47  ;;  %4119 = vmatmul.mubr.bf16.vlgmr.msra.gmra.mrb[32].mxu1 %v1229_v30  ;;  %v1170_v10 = vmul.f32 %v4327_v52, %v5532_v58  ;;  %v5642_v21 = vadd.f32 %v5537_v61, %v5510_v41  ;;  %v5644_v24 = vpop.f32.mrb[17].mxu1 }
 0x110   : > { %v4331_v5 = vpop.eup %4330  ;;  %4350 = vrcp.f32 %v981_v54  ;;  %v3664_v8 = vmul.f32 -1.442695, %v5630_v63  ;;  %v1168_v16 = vmul.f32 %v4329_v2, %v5540_v62  ;;  %v5650_v62 = vpop.f32.mrb[18].mxu1 }
 0x111   : > { %v4333_v9 = vpop.eup %4332  ;;  %v1171_v12 = vmul.f32 %v4331_v5, %v5547_v3  ;;  %4352 = vpow2.f32 %v3665_v44  ;;  %v5648_v3 = vadd.f32 %v5510_v41, %v5543_v1  ;;  %v5655_v35 = vpop.f32.mrb[19].mxu1  ;;  %v1004_v1 = vadd.f32 1.0, %v5594_v57 }
 0x112   : > { %v4335_v14 = vpop.eup %4334  ;;  %v1169_v17 = vmul.f32 %v4333_v9, %v5551_v6  ;;  %4354 = vpow2.f32 %v3663_v59  ;;  %v4060_v22 = vpop.f32.mrb[20].mxu0  ;;  %v3682_v52 = vmul.f32 -1.442695, %v5642_v21 }
 0x113   : > { %v4337_v26 = vpop.eup %4336  ;;  %v986_v58 = vadd.f32 1.0, %v4335_v14  ;;  %4356 = vpow2.f32 %v3666_v4  ;;  %v605_v29 = vpop.f32.mrb[21].mxu0  ;;  %v1231_v30 = vpack.c.bf16 %v1171_v12, %v1170_v10  ;;  %v5653_v61 = vadd.f32 %v4060_v22, %v5510_v41 }
 0x114   : > { %v4339_v6 = vpop.eup %4338  ;;  %v984_v32 = vadd.f32 1.0, %v4337_v26  ;;  %4358 = vpow2.f32 %v3664_v8  ;;  %v4061_v48 = vpop.f32.mrb[22].mxu0  ;;  %v1230_v34 = vpack.c.bf16 %v1169_v17, %v1168_v16  ;;  %v5659_v39 = vadd.f32 %v5510_v41, %v605_v29 }
 0x115   : > { %v4341_v51 = vpop.eup %4340  ;;  %4360 = vrcp.f32 %v986_v58  ;;  %v987_v37 = vadd.f32 1.0, %v4339_v6  ;;  %v608_v42 = vpop.f32.mrb[23].mxu0  ;;  %v3680_v59 = vmul.f32 -1.442695, %v5648_v3  ;;  %v3669_v57 = vmul.f32 -1.442695, %v5653_v61 }
 0x116   : > { %v5661_v44 = vpop.eup %4342  ;;  %4362 = vrcp.f32 %v984_v32  ;;  %v985_v50 = vadd.f32 1.0, %v4341_v51  ;;  %4122 = vmatprep.mubr.bf16.mxu1 %v1230_v34  ;;  %v3667_v5 = vmul.f32 -1.442695, %v5659_v39  ;;  %v5667_v8 = vpop.f32.mrb[20].mxu1  ;;  %v5672_v14 = vadd.f32 %v4061_v48, %v5510_v41 }
 0x117   : > { %v4345_v54 = vpop.eup %4344  ;;  %4364 = vrcp.f32 %v987_v37  ;;  %4123 = vmatmul.mubr.bf16.gmra.mrb[36].mxu1 %v1231_v30  ;;  %v5674_v17 = vpop.f32.mrb[21].mxu1  ;;  %v5678_v58 = vadd.f32 %v5510_v41, %v608_v42  ;;  %v5686_v6 = vadd.f32 %v5556_v11, %v5510_v41  ;;  %v4282_v11 = vld [vmem:[%s7296_s5] sm:$0xff]  }
 0x118   : > { %v4347_v2 = vpop.eup %4346  ;;  %4366 = vrcp.f32 %v985_v50  ;;  %v1174_v10 = vmul.f32 %v4345_v54, %v5561_v18  ;;  %v5682_v30 = vpop.f32.mrb[22].mxu1  ;;  %v4283_v50 = vld [vmem:[%s7296_s5 + $0x8] sm:$0xff]   ;;  %4182 = vmatprep.subr.bf16.mxu0 %v4282_v11 }
 0x119   : > { %v4349_v4 = vpop.eup %4348  ;;  %4368 = vrcp.f32 %v1004_v1  ;;  %v5690_v34 = vpop.f32.mrb[23].mxu1  ;;  %v1172_v51 = vmul.f32 %v4347_v2, %v5566_v23  ;;  %v5695_v1 = vadd.f32 %v5510_v41, %v5558_v15  ;;  %v3670_v23 = vmul.f32 -1.442695, %v5672_v14  ;;  %4183 = vmatpush3.bf16.msra.mxu0 %v4282_v11 }
 0x11a   : > { %v4351_v9 = vpop.eup %4350  ;;  %v1175_v12 = vmul.f32 %v4349_v4, %v5572_v28  ;;  %4370 = vpow2.f32 %v3682_v52  ;;  %v4064_v16 = vpop.f32.mrb[24].mxu0  ;;  %4184 = vmatprep.subr.bf16.mxu0 %v4283_v50 }
 0x11b   : > { %v4353_v22 = vpop.eup %4352  ;;  %v1173_v26 = vmul.f32 %v4351_v9, %v5576_v31  ;;  %4372 = vpow2.f32 %v3680_v59  ;;  %v5680_v29 = vpop.f32.mrb[25].mxu0  ;;  %v5708_v59 = vadd.f32 %v5563_v20, %v5510_v41  ;;  %v3685_v9 = vmul.f32 -1.442695, %v5686_v6  ;;  %v4284_v20 = vld [vmem:[%s7296_s5 + $0x10] sm:$0xff]  }
 0x11c   : > { %v4355_v18 = vpop.eup %4354  ;;  %v990_v28 = vadd.f32 1.0, %v4353_v22  ;;  %4374 = vpow2.f32 %v3669_v57  ;;  %v5688_v32 = vpop.f32.mrb[26].mxu0  ;;  %v1233_v48 = vpack.c.bf16 %v1175_v12, %v1174_v10  ;;  %v3668_v57 = vmul.f32 -1.442695, %v5678_v58 }
 0x11d   : > { %v4357_v31 = vpop.eup %4356  ;;  %v988_v37 = vadd.f32 1.0, %v4355_v18  ;;  %4376 = vpow2.f32 %v3667_v5  ;;  %v5697_v42 = vpop.f32.mrb[27].mxu0  ;;  %v1232_v4 = vpack.c.bf16 %v1173_v26, %v1172_v51  ;;  %v3683_v12 = vmul.f32 -1.442695, %v5695_v1  ;;  %4185 = vmatpush3.bf16.msra.mxu0 %v4283_v50 }
 0x11e   : > { %v4359_v52 = vpop.eup %4358  ;;  %4378 = vrcp.f32 %v990_v28  ;;  %v991_v54 = vadd.f32 1.0, %v4357_v31  ;;  %v5713_v22 = vpop.f32.mrb[24].mxu1  ;;  %v3686_v31 = vmul.f32 -1.442695, %v5708_v59  ;;  %4186 = vmatprep.subr.bf16.mxu0 %v4284_v20  ;;  %v5755_v50 = vadd.f32 %v5688_v32, %v5510_v41 }
 0x11f   : > { %v4361_v15 = vpop.eup %4360  ;;  %4380 = vrcp.f32 %v988_v37  ;;  %v989_v2 = vadd.f32 1.0, %v4359_v52  ;;  %4126 = vmatprep.mubr.bf16.mxu1 %v1232_v4  ;;  %v5723_v37 = vpop.f32.mrb[25].mxu1 }
 0x120   : > { %v4363_v5 = vpop.eup %4362  ;;  %4382 = vrcp.f32 %v991_v54  ;;  %v1178_v26 = vmul.f32 %v4361_v15, %v5585_v46  ;;  %4127 = vmatmul.mubr.bf16.gmra.mrb[40].mxu1 %v1233_v48  ;;  %v5730_v54 = vadd.f32 %v5510_v41, %v5568_v25  ;;  %v5737_v48 = vadd.f32 %v4064_v16, %v5510_v41  ;;  %v4285_v16 = vld [vmem:[%s7296_s5 + $0x18] sm:$0xff]  }
 0x121   : > { %v4365_v10 = vpop.eup %4364  ;;  %4384 = vrcp.f32 %v989_v2  ;;  %4187 = vmatpush3.bf16.msra.mxu0 %v4284_v20 }
 0x122   : > { %v4367_v18 = vpop.eup %4366  ;;  %v1179_v28 = vmul.f32 %v4365_v10, %v5598_v0  ;;  %4386 = vpow2.f32 %v3670_v23  ;;  %v5721_v51 = vpop.f32.mrb[28].mxu0  ;;  %v5746_v10 = vadd.f32 %v5510_v41, %v5680_v29  ;;  %v3684_v29 = vmul.f32 -1.442695, %v5730_v54  ;;  %4188 = vmatprep.subr.bf16.mxu0 %v4285_v16 }
 0x123   : > { %v5725_v11 = vpop.eup %4368  ;;  %v1177_v52 = vmul.f32 %v4367_v18, %v5602_v7  ;;  %4388 = vpow2.f32 %v3668_v57  ;;  %v5732_v46 = vpop.f32.mrb[29].mxu0  ;;  %v1176_v57 = vmul.f32 %v4363_v5, %v5590_v53 }
 0x124   : > { %v5734_v0 = vpop.f32.mrb[26].mxu1  ;;  %v4371_v23 = vpop.eup %4370  ;;  %4390 = vpow2.f32 %v3685_v9  ;;  %v1235_v2 = vpack.c.bf16 %v1179_v28, %v1178_v26 }
 0x125   : > { %7347 = vst [vmem:[#allocation2_spill] sm:$0xff] %v5734_v0  ;;  %v5739_v15 = vpop.f32.mrb[30].mxu0  ;;  %v5741_v4 = vpop.f32.mrb[27].mxu1  ;;  %v1007_v25 = vadd.f32 1.0, %v4371_v23  ;;  %4392 = vpow2.f32 %v3683_v12  ;;  %v1234_v12 = vpack.c.bf16 %v1177_v52, %v1176_v57  ;;  %4189 = vmatpush3.bf16.msra.mxu0 %v4285_v16  ;;  %v5787_v16 = vadd.f32 %v5587_v49, %v5510_v41 }
 0x126   : > { %7348 = vst [vmem:[#allocation3_spill] sm:$0xff] %v5741_v4  ;;  %v4373_v7 = vpop.eup %4372  ;;  %v5748_v18 = vpop.f32.mrb[31].mxu0  ;;  %4394 = vpow2.f32 %v3686_v31  ;;  %v3673_v4 = vmul.f32 -1.442695, %v5737_v48  ;;  %v3671_v31 = vmul.f32 -1.442695, %v5746_v10 }
 0x127   : > { %v4375_v9 = vpop.eup %4374  ;;  %v1005_v26 = vadd.f32 1.0, %v4373_v7  ;;  %4396 = vrcp.f32 %v1007_v25  ;;  %4130 = vmatprep.mubr.bf16.mxu1 %v1234_v12  ;;  %v5760_v7 = vpop.f32.mrb[28].mxu1  ;;  %v3674_v25 = vmul.f32 -1.442695, %v5755_v50 }
 0x128   : > { %v4377_v53 = vpop.eup %4376  ;;  %v994_v5 = vadd.f32 1.0, %v4375_v9  ;;  %4131 = vmatmul.mubr.bf16.gmra.mrb[44].mxu1 %v1235_v2  ;;  %v5763_v52 = vpop.f32.mrb[29].mxu1 }
 0x129   : > { %v4379_v28 = vpop.eup %4378  ;;  %4398 = vrcp.f32 %v1005_v26  ;;  %v992_v23 = vadd.f32 1.0, %v4377_v53  ;;  %7349 = vst [vmem:[#allocation4_spill] sm:$0xff] %v5763_v52  ;;  %v5767_v26 = vpop.f32.mrb[30].mxu1 }
 0x12a   : > { %v4381_v0 = vpop.eup %4380  ;;  %4400 = vrcp.f32 %v994_v5  ;;  %v1182_v9 = vmul.f32 %v4379_v28, %v5615_v43  ;;  %v5775_v2 = vpop.f32.mrb[31].mxu1 }
 0x12b   : > { %v4383_v32 = vpop.eup %4382  ;;  %4402 = vrcp.f32 %v992_v23  ;;  %v1180_v5 = vmul.f32 %v4381_v0, %v5620_v45  ;;  %v5773_v23 = vadd.f32 %v5510_v41, %v5697_v42 }
 0x12c   : > { %v4385_v57 = vpop.eup %4384  ;;  %v1183_v20 = vmul.f32 %v4383_v32, %v5626_v47  ;;  %4404 = vpow2.f32 %v3684_v29  ;;  %v5779_v47 = vadd.f32 %v5580_v36, %v5510_v41  ;;  %v5791_v36 = vmul.f32 %v5661_v44, %v5529_v56 }
 0x12d   : > { %v4387_v53 = vpop.eup %4386  ;;  %v1181_v12 = vmul.f32 %v4385_v57, %v5630_v63  ;;  %4406 = vpow2.f32 %v3673_v4  ;;  %v5783_v63 = vadd.f32 %v5510_v41, %v5582_v40 }
 0x12e   : > { %v4389_v52 = vpop.eup %4388  ;;  %v995_v43 = vadd.f32 1.0, %v4387_v53  ;;  %4408 = vpow2.f32 %v3671_v31  ;;  %v1237_v29 = vpack.c.bf16 %v1183_v20, %v1182_v9  ;;  %v3689_v49 = vmul.f32 -1.442695, %v5779_v47 }
 0x12f   : > { %v4391_v28 = vpop.eup %4390  ;;  %v993_v45 = vadd.f32 1.0, %v4389_v52  ;;  %4410 = vpow2.f32 %v3674_v25  ;;  %v1236_v42 = vpack.c.bf16 %v1181_v12, %v1180_v5  ;;  %v3672_v25 = vmul.f32 -1.442695, %v5773_v23 }
 0x130   : > { %v4393_v0 = vpop.eup %4392  ;;  %4412 = vrcp.f32 %v995_v43  ;;  %v1010_v4 = vadd.f32 1.0, %v4391_v28  ;;  %v5796_v52 = vmul.f32 %v5725_v11, %v5535_v60  ;;  %v3687_v56 = vmul.f32 -1.442695, %v5783_v63 }
 0x131   : > { %v4395_v31 = vpop.eup %4394  ;;  %4414 = vrcp.f32 %v993_v45  ;;  %v1008_v32 = vadd.f32 1.0, %v4393_v0  ;;  %4134 = vmatprep.mubr.bf16.mxu1 %v1236_v42  ;;  %v3690_v60 = vmul.f32 -1.442695, %v5787_v16  ;;  %v5809_v5 = vadd.f32 %v5510_v41, %v5592_v55 }
 0x132   : > { %v4397_v40 = vpop.eup %4396  ;;  %4416 = vrcp.f32 %v1010_v4  ;;  %v1011_v57 = vadd.f32 1.0, %v4395_v31  ;;  %4135 = vmatmul.mubr.bf16.gmra.mrb[48].mxu1 %v1237_v29  ;;  %v5815_v43 = vadd.f32 %v5721_v51, %v5510_v41  ;;  %v5821_v45 = vadd.f32 %v5510_v41, %v5732_v46 }
 0x133   : > { %v4399_v9 = vpop.eup %4398  ;;  %v5800_v20 = vmul.f32 %v4397_v40, %v5642_v21  ;;  %4418 = vrcp.f32 %v1008_v32  ;;  %v5825_v0 = vadd.f32 %v5739_v15, %v5510_v41  ;;  %v3688_v31 = vmul.f32 -1.442695, %v5809_v5 }
 0x134   : > { %v4401_v44 = vpop.eup %4400  ;;  %v5804_v53 = vmul.f32 %v4399_v9, %v5648_v3  ;;  %4420 = vrcp.f32 %v1011_v57  ;;  %v5830_v32 = vadd.f32 %v5510_v41, %v5748_v18  ;;  %v3677_v40 = vmul.f32 -1.442695, %v5815_v43 }
 0x135   : > { %v4403_v11 = vpop.eup %4402  ;;  %4422 = vpow2.f32 %v3672_v25  ;;  %v1245_v21 = vpack.c.bf16 %v5800_v20, %v5791_v36  ;;  %v3675_v9 = vmul.f32 -1.442695, %v5821_v45  ;;  %v3678_v18 = vmul.f32 -1.442695, %v5825_v0 }
 0x136   : > { %v4405_v12 = vpop.eup %4404  ;;  %4424 = vpow2.f32 %v3689_v49  ;;  %v1244_v3 = vpack.c.bf16 %v5804_v53, %v5796_v52  ;;  %v1186_v49 = vmul.f32 %v4401_v44, %v5653_v61  ;;  %v3676_v61 = vmul.f32 -1.442695, %v5830_v32 }
 0x137   : > { %v4407_v29 = vpop.eup %4406  ;;  %v1009_v28 = vadd.f32 1.0, %v4405_v12  ;;  %4426 = vpow2.f32 %v3687_v56 }
 0x138   : > { %v4409_v55 = vpop.eup %4408  ;;  %v998_v42 = vadd.f32 1.0, %v4407_v29  ;;  %4428 = vpow2.f32 %v3690_v60  ;;  %v1184_v60 = vmul.f32 %v4403_v11, %v5659_v39 }
 0x139   : > { %v4411_v4 = vpop.eup %4410  ;;  %4430 = vrcp.f32 %v1009_v28  ;;  %v996_v51 = vadd.f32 1.0, %v4409_v55  ;;  %v5845_v55 = vadd.f32 %v5608_v19, %v5510_v41 }
 0x13a   : > { %v4413_v25 = vpop.eup %4412  ;;  %4432 = vrcp.f32 %v998_v42  ;;  %v999_v46 = vadd.f32 1.0, %v4411_v4 }
 0x13b   : > { %v4415_v57 = vpop.eup %4414  ;;  %v1187_v15 = vmul.f32 %v4413_v25, %v5672_v14  ;;  %4434 = vrcp.f32 %v996_v51  ;;  %v5856_v51 = vadd.f32 %v5617_v33, %v5510_v41  ;;  %v3693_v33 = vmul.f32 -1.442695, %v5845_v55 }
 0x13c   : > { %v4417_v56 = vpop.eup %4416  ;;  %v1185_v12 = vmul.f32 %v4415_v57, %v5678_v58  ;;  %4436 = vrcp.f32 %v999_v46 }
 0x13d   : > { %v4419_v29 = vpop.eup %4418  ;;  %v5840_v28 = vmul.f32 %v4417_v56, %v5686_v6  ;;  %4438 = vpow2.f32 %v3688_v31  ;;  %v1239_v44 = vpack.c.bf16 %v1187_v15, %v1186_v49  ;;  %v5852_v6 = vadd.f32 %v5510_v41, %v5612_v27 }
 0x13e   : > { %v4421_v14 = vpop.eup %4420  ;;  %4440 = vpow2.f32 %v3677_v40  ;;  %v1238_v39 = vpack.c.bf16 %v1185_v12, %v1184_v60  ;;  %v5865_v46 = vmul.f32 %v4419_v29, %v5695_v1  ;;  %v3694_v56 = vmul.f32 -1.442695, %v5856_v51 }
 0x13f   : > { %v4423_v11 = vpop.eup %4422  ;;  %v5848_v58 = vmul.f32 %v4421_v14, %v5708_v59  ;;  %4442 = vpow2.f32 %v3675_v9  ;;  %v5860_v59 = vadd.f32 %v5510_v41, %v5622_v38  ;;  %v3691_v15 = vmul.f32 -1.442695, %v5852_v6 }
 0x140   : > { %v4425_v42 = vpop.eup %4424  ;;  %v997_v4 = vadd.f32 1.0, %v4423_v11  ;;  %4444 = vpow2.f32 %v3678_v18  ;;  %4138 = vmatprep.mubr.bf16.mxu1 %v1238_v39  ;;  %v5884_v11 = vadd.f32 %v5510_v41, %v5644_v24 }
 0x141   : > { %v4427_v19 = vpop.eup %4426  ;;  %v1014_v31 = vadd.f32 1.0, %v4425_v42  ;;  %4446 = vpow2.f32 %v3676_v61  ;;  %4139 = vmatmul.mubr.bf16.gmra.mrb[52].mxu1 %v1239_v44  ;;  %v1247_v27 = vpack.c.bf16 %v5848_v58, %v5840_v28  ;;  %v3692_v1 = vmul.f32 -1.442695, %v5860_v59 }
 0x142   : > { %v4429_v25 = vpop.eup %4428  ;;  %4448 = vrcp.f32 %v997_v4  ;;  %v1012_v40 = vadd.f32 1.0, %v4427_v19  ;;  %v5888_v42 = vadd.f32 %v5650_v62, %v5510_v41 }
 0x143   : > { %v4431_v57 = vpop.eup %4430  ;;  %4450 = vrcp.f32 %v1014_v31  ;;  %v1015_v49 = vadd.f32 1.0, %v4429_v25 }
 0x144   : > { %v4433_v9 = vpop.eup %4432  ;;  %v5870_v38 = vmul.f32 %v4431_v57, %v5730_v54  ;;  %4452 = vrcp.f32 %v1012_v40  ;;  %v5880_v54 = vadd.f32 %v5636_v13, %v5510_v41  ;;  %v5892_v13 = vadd.f32 %v5510_v41, %v5655_v35 }
 0x145   : > { %v4435_v60 = vpop.eup %4434  ;;  %4454 = vrcp.f32 %v1015_v49  ;;  %v1190_v61 = vmul.f32 %v4433_v9, %v5737_v48  ;;  %v3695_v57 = vmul.f32 -1.442695, %v5884_v11  ;;  %v3698_v49 = vmul.f32 -1.442695, %v5888_v42 }
 0x146   : > { %v4437_v12 = vpop.eup %4436  ;;  %4456 = vpow2.f32 %v3693_v33  ;;  %v1246_v18 = vpack.c.bf16 %v5870_v38, %v5865_v46  ;;  %v3697_v24 = vmul.f32 -1.442695, %v5880_v54  ;;  %v1188_v9 = vmul.f32 %v4435_v60, %v5746_v10 }
 0x147   : > { %v4439_v29 = vpop.eup %4438  ;;  %v1191_v44 = vmul.f32 %v4437_v12, %v5755_v50  ;;  %4458 = vpow2.f32 %v3691_v15  ;;  %v5901_v35 = vadd.f32 %v5667_v8, %v5510_v41 }
 0x148   : > { %v4441_v14 = vpop.eup %4440  ;;  %v1013_v39 = vadd.f32 1.0, %v4439_v29  ;;  %4460 = vpow2.f32 %v3694_v56  ;;  %v3696_v29 = vmul.f32 -1.442695, %v5892_v13 }
 0x149   : > { %v4443_v4 = vpop.eup %4442  ;;  %v1002_v48 = vadd.f32 1.0, %v4441_v14  ;;  %4462 = vpow2.f32 %v3692_v1  ;;  %v1241_v50 = vpack.c.bf16 %v1191_v44, %v1190_v61 }
 0x14a   : > { %v4445_v19 = vpop.eup %4444  ;;  %4464 = vrcp.f32 %v1013_v39  ;;  %v1000_v31 = vadd.f32 1.0, %v4443_v4  ;;  %v5917_v39 = vadd.f32 %v5682_v30, %v5510_v41  ;;  %v5930_v30 = vadd.f32 %v5713_v22, %v5510_v41 }
 0x14b   : > { %v4447_v25 = vpop.eup %4446  ;;  %4466 = vrcp.f32 %v1002_v48  ;;  %v1003_v40 = vadd.f32 1.0, %v4445_v19 }
 0x14c   : > { %v4449_v33 = vpop.eup %4448  ;;  %4468 = vrcp.f32 %v1000_v31  ;;  %v1001_v62 = vadd.f32 1.0, %v4447_v25  ;;  %v3705_v22 = vmul.f32 -1.442695, %v5930_v30 }
 0x14d   : > { %v4451_v15 = vpop.eup %4450  ;;  %v1189_v56 = vmul.f32 %v4449_v33, %v5773_v23  ;;  %4470 = vrcp.f32 %v1003_v40  ;;  %v5912_v23 = vadd.f32 %v5510_v41, %v5674_v17 }
 0x14e   : > { %v4453_v1 = vpop.eup %4452  ;;  %v5904_v12 = vmul.f32 %v4451_v15, %v5779_v47  ;;  %4472 = vrcp.f32 %v1001_v62  ;;  %v3701_v47 = vmul.f32 -1.442695, %v5901_v35  ;;  %v3702_v62 = vmul.f32 -1.442695, %v5917_v39 }
 0x14f   : > { %v4455_v61 = vpop.eup %4454  ;;  %4474 = vpow2.f32 %v3697_v24  ;;  %v1240_v44 = vpack.c.bf16 %v1189_v56, %v1188_v9  ;;  %v5926_v31 = vmul.f32 %v4453_v1, %v5783_v63  ;;  %v5945_v1 = vadd.f32 %v5510_v41, %v5723_v37 }
 0x150   : > { %v4457_v14 = vpop.eup %4456  ;;  %v5908_v10 = vmul.f32 %v4455_v61, %v5787_v16  ;;  %4476 = vpow2.f32 %v3695_v57  ;;  %v5921_v16 = vadd.f32 %v5510_v41, %v5690_v34  ;;  %v3699_v34 = vmul.f32 -1.442695, %v5912_v23 }
 0x151   : > { %v4459_v8 = vpop.eup %4458  ;;  %v1018_v60 = vadd.f32 1.0, %v4457_v14  ;;  %4478 = vpow2.f32 %v3698_v49  ;;  %4142 = vmatprep.mubr.bf16.mxu1 %v1240_v44  ;;  %v5314_v14 = vld [vmem:[%s7293_s2] ss:$0 sm:$0xff] }
 0x152   : > { %v4461_v4 = vpop.eup %4460  ;;  %v1016_v48 = vadd.f32 1.0, %v4459_v8  ;;  %4480 = vpow2.f32 %v3696_v29  ;;  %4143 = vmatmul.mubr.bf16.gmra.mrb[56].mxu1 %v1241_v50  ;;  %v1249_v17 = vpack.c.bf16 %v5908_v10, %v5904_v12  ;;  %v3700_v57 = vmul.f32 -1.442695, %v5921_v16  ;;  %v7350_v8 = vld [vmem:[#allocation2_spill] sm:$0xff] }
 0x153   : > { %v4463_v19 = vpop.eup %4462  ;;  %4482 = vrcp.f32 %v1018_v60  ;;  %v1019_v25 = vadd.f32 1.0, %v4461_v4  ;;  %v5953_v60 = vadd.f32 %v5314_v14, %v7350_v8  ;;  %v5984_v8 = vadd.f32 %v5314_v14, %v5767_v26 }
 0x154   : > { %v4465_v40 = vpop.eup %4464  ;;  %4484 = vrcp.f32 %v1016_v48  ;;  %v1017_v24 = vadd.f32 1.0, %v4463_v19 }
 0x155   : > { %v4467_v33 = vpop.eup %4466  ;;  %v5934_v50 = vmul.f32 %v4465_v40, %v5809_v5  ;;  %4486 = vrcp.f32 %v1019_v25  ;;  %v3703_v40 = vmul.f32 -1.442695, %v5945_v1 }
 0x156   : > { %v4469_v63 = vpop.eup %4468  ;;  %4488 = vrcp.f32 %v1017_v24  ;;  %v1194_v56 = vmul.f32 %v4467_v33, %v5815_v43  ;;  %v3706_v33 = vmul.f32 -1.442695, %v5953_v60 }
 0x157   : > { %v4471_v49 = vpop.eup %4470  ;;  %4490 = vpow2.f32 %v3701_v47  ;;  %v1248_v15 = vpack.c.bf16 %v5934_v50, %v5926_v31  ;;  %v1192_v61 = vmul.f32 %v4469_v63, %v5821_v45  ;;  %v7351_v47 = vld [vmem:[#allocation3_spill] sm:$0xff]  ;;  %v5959_v45 = vadd.f32 %v5314_v14, %v5760_v7 }
 0x158   : > { %v4473_v9 = vpop.eup %4472  ;;  %v1195_v5 = vmul.f32 %v4471_v49, %v5825_v0  ;;  %4492 = vpow2.f32 %v3699_v34  ;;  %v5956_v4 = vadd.f32 %v5314_v14, %v7351_v47 }
 0x159   : > { %v4475_v29 = vpop.eup %4474  ;;  %v1193_v44 = vmul.f32 %v4473_v9, %v5830_v32  ;;  %4494 = vpow2.f32 %v3702_v62 }
 0x15a   : > { %v4477_v43 = vpop.eup %4476  ;;  %v1022_v0 = vadd.f32 1.0, %v4475_v29  ;;  %4496 = vpow2.f32 %v3700_v57  ;;  %v1243_v41 = vpack.c.bf16 %v1195_v5, %v1194_v56  ;;  %v3704_v7 = vmul.f32 -1.442695, %v5956_v4  ;;  %v7352_v29 = vld [vmem:[#allocation4_spill] sm:$0xff] }
 0x15b   : > { %v4479_v37 = vpop.eup %4478  ;;  %v1020_v48 = vadd.f32 1.0, %v4477_v43  ;;  %4498 = vpow2.f32 %v3705_v22  ;;  %v1242_v32 = vpack.c.bf16 %v1193_v44, %v1192_v61  ;;  %v3709_v22 = vmul.f32 -1.442695, %v5959_v45 }
 0x15c   : > { %v4481_v19 = vpop.eup %4480  ;;  %4500 = vrcp.f32 %v1022_v0  ;;  %v1023_v25 = vadd.f32 1.0, %v4479_v37 }
 0x15d   : > { %v4483_v24 = vpop.eup %4482  ;;  %4502 = vrcp.f32 %v1020_v48  ;;  %v1021_v34 = vadd.f32 1.0, %v4481_v19  ;;  %4146 = vmatprep.mubr.bf16.mxu1 %v1242_v32  ;;  %v3710_v32 = vmul.f32 -1.442695, %v5984_v8 }
 0x15e   : > { %v4485_v62 = vpop.eup %4484  ;;  %v5964_v63 = vmul.f32 %v4483_v24, %v5845_v55  ;;  %4504 = vrcp.f32 %v1023_v25  ;;  %4147 = vmatmul.mubr.bf16.gmra.mrb[60].mxu1 %v1243_v41 }
 0x15f   : > { %v4487_v57 = vpop.eup %4486  ;;  %v5968_v49 = vmul.f32 %v4485_v62, %v5852_v6  ;;  %4506 = vrcp.f32 %v1021_v34  ;;  %4150 = vmatprep.mubr.bf16.mxu1 %v1244_v3  ;;  %v5981_v6 = vadd.f32 %v5314_v14, %v7352_v29 }
 0x160   : > { %v4489_v9 = vpop.eup %4488  ;;  %v5975_v56 = vmul.f32 %v4487_v57, %v5856_v51  ;;  %4508 = vpow2.f32 %v3703_v40  ;;  %v5989_v51 = vadd.f32 %v5314_v14, %v5775_v2 }
 0x161   : > { %v4491_v55 = vpop.eup %4490  ;;  %v5978_v5 = vmul.f32 %v4489_v9, %v5860_v59  ;;  %4510 = vpow2.f32 %v3706_v33  ;;  %v3707_v26 = vmul.f32 -1.442695, %v5981_v6 }
 0x162   : > { %v4493_v61 = vpop.eup %4492  ;;  %v1026_v44 = vadd.f32 1.0, %v4491_v55  ;;  %4512 = vpow2.f32 %v3704_v7  ;;  %v1251_v52 = vpack.c.bf16 %v5975_v56, %v5964_v63  ;;  %v3708_v19 = vmul.f32 -1.442695, %v5989_v51  ;;  %v4288_v63 = vld [vmem:[%s7296_s5 + $0x30] sm:$0xff]   ;;  %v4289_v56 = vld [vmem:[%s7296_s5 + $0x38] sm:$0xff]  }
 0x163   : > { %v4495_v53 = vpop.eup %4494  ;;  %v1024_v3 = vadd.f32 1.0, %v4493_v61  ;;  %4514 = vpow2.f32 %v3709_v22  ;;  %v1250_v59 = vpack.c.bf16 %v5978_v5, %v5968_v49 }
 0x164   : > { %v4497_v43 = vpop.eup %4496  ;;  %4516 = vrcp.f32 %v1026_v44  ;;  %v1027_v0 = vadd.f32 1.0, %v4495_v53 }
 0x165   : > { %v4499_v47 = vpop.eup %4498  ;;  %4518 = vrcp.f32 %v1024_v3  ;;  %v1025_v41 = vadd.f32 1.0, %v4497_v43 }
 0x166   : > { %v4501_v37 = vpop.eup %4500  ;;  %4520 = vrcp.f32 %v1027_v0  ;;  %v1030_v48 = vadd.f32 1.0, %v4499_v47  ;;  %4151 = vmatmul.mubr.bf16.gmra.mrb[64].mxu1 %v1245_v21 }
 0x167   : > { %v4503_v2 = vpop.eup %4502  ;;  %v5999_v14 = vmul.f32 %v4501_v37, %v5880_v54  ;;  %4522 = vrcp.f32 %v1025_v41  ;;  %4154 = vmatprep.mubr.bf16.mxu1 %v1246_v18 }
 0x168   : > { %v4505_v25 = vpop.eup %4504  ;;  %v1212_v40 = vmul.f32 %v4503_v2, %v5884_v11  ;;  %4524 = vrcp.f32 %v1030_v48 }
 0x169   : > { %v4507_v24 = vpop.eup %4506  ;;  %v6007_v34 = vmul.f32 %v4505_v25, %v5888_v42  ;;  %4526 = vpow2.f32 %v3707_v26  ;;  %v4286_v26 = vld [vmem:[%s7296_s5 + $0x20] sm:$0xff]  }
 0x16a   : > { %v4509_v36 = vpop.eup %4508  ;;  %v1213_v20 = vmul.f32 %v4507_v24, %v5892_v13  ;;  %4528 = vpow2.f32 %v3710_v32  ;;  %4190 = vmatprep.subr.bf16.mxu0 %v4286_v26 }
 0x16b   : > { %v4511_v21 = vpop.eup %4510  ;;  %v1028_v54 = vadd.f32 1.0, %v4509_v36  ;;  %4530 = vpow2.f32 %v3708_v19  ;;  %v1253_v46 = vpack.c.bf16 %v6007_v34, %v5999_v14  ;;  %4191 = vmatpush3.bf16.msra.mxu0 %v4286_v26 }
 0x16c   : > { %v4513_v38 = vpop.eup %4512  ;;  %v1031_v18 = vadd.f32 1.0, %v4511_v21  ;;  %v1252_v33 = vpack.c.bf16 %v1213_v20, %v1212_v40 }
 0x16d   : > { %v4515_v11 = vpop.eup %4514  ;;  %4532 = vrcp.f32 %v1028_v54  ;;  %v1029_v62 = vadd.f32 1.0, %v4513_v38 }
 0x16e   : > { %v4517_v7 = vpop.eup %4516  ;;  %4534 = vrcp.f32 %v1031_v18  ;;  %4155 = vmatmul.mubr.bf16.gmra.mrb[68].mxu1 %v1247_v27  ;;  %v1034_v57 = vadd.f32 1.0, %v4515_v11 }
 0x16f   : > { %v4519_v42 = vpop.eup %4518  ;;  %v1218_v13 = vmul.f32 %v4517_v7, %v5901_v35  ;;  %4536 = vrcp.f32 %v1029_v62  ;;  %4158 = vmatprep.mubr.bf16.mxu1 %v1248_v15 }
 0x170   : > { %v4521_v22 = vpop.eup %4520  ;;  %v1216_v9 = vmul.f32 %v4519_v42, %v5912_v23  ;;  %4538 = vrcp.f32 %v1034_v57 }
 0x171   : > { %v4523_v55 = vpop.eup %4522  ;;  %v1219_v29 = vmul.f32 %v4521_v22, %v5917_v39 }
 0x172   : > { %v4525_v61 = vpop.eup %4524  ;;  %v1217_v44 = vmul.f32 %v4523_v55, %v5921_v16 }
 0x173   : > { %v4527_v28 = vpop.eup %4526  ;;  %v1255_v58 = vpack.c.bf16 %v1219_v29, %v1218_v13  ;;  %v1222_v39 = vmul.f32 %v4525_v61, %v5930_v30 }
 0x174   : > { %v4529_v27 = vpop.eup %4528  ;;  %v1032_v35 = vadd.f32 1.0, %v4527_v28  ;;  %v1254_v53 = vpack.c.bf16 %v1217_v44, %v1216_v9 }
 0x175   : > { %v4531_v3 = vpop.eup %4530  ;;  %v1035_v43 = vadd.f32 1.0, %v4529_v27 }
 0x176   : > { %4540 = vrcp.f32 %v1032_v35  ;;  %v1033_v31 = vadd.f32 1.0, %v4531_v3  ;;  %4159 = vmatmul.mubr.bf16.gmra.mrb[72].mxu1 %v1249_v17 }
 0x177   : > { %v4533_v23 = vpop.eup %4532  ;;  %4542 = vrcp.f32 %v1035_v43  ;;  %4162 = vmatprep.mubr.bf16.mxu1 %v1250_v59 }
 0x178   : > { %v4535_v16 = vpop.eup %4534  ;;  %v1220_v50 = vmul.f32 %v4533_v23, %v5945_v1  ;;  %4544 = vrcp.f32 %v1033_v31 }
 0x179   : > { %v4537_v15 = vpop.eup %4536  ;;  %v1223_v0 = vmul.f32 %v4535_v16, %v5953_v60 }
 0x17a   : > { %v1221_v47 = vmul.f32 %v4537_v15, %v5956_v4  ;;  %v4539_v10 = vpop.eup %4538 }
 0x17b   : > { %v1257_v41 = vpack.c.bf16 %v1223_v0, %v1222_v39  ;;  %v1226_v30 = vmul.f32 %v4539_v10, %v5959_v45  ;;  %v4287_v45 = vld [vmem:[%s7296_s5 + $0x28] sm:$0xff]  }
 0x17c   : > { %v1256_v12 = vpack.c.bf16 %v1221_v47, %v1220_v50  ;;  %4192 = vmatprep.subr.bf16.mxu0 %v4287_v45 }
 0x17d   : > { %4193 = vmatpush3.bf16.msra.mxu0 %v4287_v45 }
 0x17e   : > { %4163 = vmatmul.mubr.bf16.gmra.mrb[76].mxu1 %v1251_v52  ;;  %4194 = vmatprep.subr.bf16.mxu0 %v4288_v63 }
 0x17f   : > { %4166 = vmatprep.mubr.bf16.mxu1 %v1252_v33 }
 0x180   : > { %v4541_v17 = vpop.eup %4540 }
 0x181   : > { %v4543_v49 = vpop.eup %4542  ;;  %v1224_v1 = vmul.f32 %v4541_v17, %v5981_v6  ;;  %4195 = vmatpush3.bf16.msra.mxu0 %v4288_v63  ;;  %v6054_v6 = vld [vmem:[%s7295_s4] ss:$0 sm:$0xff] }
 0x182   : > { %v4545_v5 = vpop.eup %4544  ;;  %v1227_v59 = vmul.f32 %v4543_v49, %v5984_v8  ;;  %4196 = vmatprep.subr.bf16.mxu0 %v4289_v56 }
 0x183   : > { %v1225_v60 = vmul.f32 %v4545_v5, %v5989_v51 }
 0x184   : > { %v1259_v4 = vpack.c.bf16 %v1227_v59, %v1226_v30 }
 0x185   : > { %v1258_v37 = vpack.c.bf16 %v1225_v60, %v1224_v1  ;;  %4197 = vmatpush3.bf16.msra.mxu0 %v4289_v56 }
 0x186   : > { %4167 = vmatmul.mubr.bf16.gmra.mrb[80].mxu1 %v1253_v46 }
 0x187   : > { %4170 = vmatprep.mubr.bf16.mxu1 %v1254_v53 }
 0x18e   : > { %4171 = vmatmul.mubr.bf16.gmra.mrb[84].mxu1 %v1255_v58 }
 0x18f   : > { %4174 = vmatprep.mubr.bf16.mxu1 %v1256_v12 }
 0x196   : > { %4175 = vmatmul.mubr.bf16.gmra.mrb[88].mxu1 %v1257_v41 }
 0x197   : > { %4178 = vmatprep.mubr.bf16.mxu1 %v1258_v37 }
 0x19e   : > { %4179 = vmatmul.mubr.bf16.gmra.mrb[92].mxu1 %v1259_v4 }
 0x1e2   : > { %v4120_v8 = vpop.f32.mrb[32].mxu1 }
 0x1e3   : > { %v6057_v52 = vadd.f32 %v4120_v8, %v6054_v6  ;;  %v1365_v51 = vpop.f32.mrb[33].mxu1 }
 0x1e4   : > { %v6060_v48 = vadd.f32 %v6054_v6, %v1365_v51  ;;  %v4121_v32 = vpop.f32.mrb[34].mxu1 }
 0x1e5   : > { %v3722_v2 = vmul.f32 -1.442695, %v6057_v52  ;;  %v6064_v14 = vadd.f32 %v4121_v32, %v6054_v6  ;;  %v1368_v19 = vpop.f32.mrb[35].mxu1 }
 0x1e6   : > { %v3720_v25 = vmul.f32 -1.442695, %v6060_v48  ;;  %v6068_v40 = vadd.f32 %v6054_v6, %v1368_v19 }
 0x1e7   : > { %4546 = vpow2.f32 %v3722_v2  ;;  %v3723_v24 = vmul.f32 -1.442695, %v6064_v14 }
 0x1e8   : > { %4548 = vpow2.f32 %v3720_v25  ;;  %v3721_v34 = vmul.f32 -1.442695, %v6068_v40 }
 0x1e9   : > { %4550 = vpow2.f32 %v3723_v24 }
 0x1ea   : > { %4552 = vpow2.f32 %v3721_v34  ;;  %v4124_v36 = vpop.f32.mrb[36].mxu1 }
 0x1eb   : > { %v6073_v20 = vadd.f32 %v4124_v36, %v6054_v6  ;;  %v1381_v21 = vpop.f32.mrb[37].mxu1 }
 0x1ec   : > { %v6076_v54 = vadd.f32 %v6054_v6, %v1381_v21  ;;  %v4125_v46 = vpop.f32.mrb[38].mxu1 }
 0x1ed   : > { %v3726_v38 = vmul.f32 -1.442695, %v6073_v20  ;;  %v6080_v18 = vadd.f32 %v4125_v46, %v6054_v6  ;;  %v1384_v33 = vpop.f32.mrb[39].mxu1 }
 0x1ee   : > { %v3724_v11 = vmul.f32 -1.442695, %v6076_v54  ;;  %v6084_v62 = vadd.f32 %v6054_v6, %v1384_v33 }
 0x1ef   : > { %4554 = vpow2.f32 %v3726_v38  ;;  %v3727_v7 = vmul.f32 -1.442695, %v6080_v18 }
 0x1f0   : > { %4556 = vpow2.f32 %v3724_v11  ;;  %v3725_v42 = vmul.f32 -1.442695, %v6084_v62 }
 0x1f1   : > { %v4547_v13 = vpop.eup %4546  ;;  %4558 = vpow2.f32 %v3727_v7 }
 0x1f2   : > { %v4549_v57 = vpop.eup %4548  ;;  %v1814_v22 = vadd.f32 1.0, %v4547_v13  ;;  %4560 = vpow2.f32 %v3725_v42 }
 0x1f3   : > { %v4551_v9 = vpop.eup %4550  ;;  %v1812_v55 = vadd.f32 1.0, %v4549_v57  ;;  %v4128_v28 = vpop.f32.mrb[40].mxu1 }
 0x1f4   : > { %v4553_v29 = vpop.eup %4552  ;;  %4562 = vrcp.f32 %v1814_v22  ;;  %v1815_v61 = vadd.f32 1.0, %v4551_v9  ;;  %v6089_v58 = vadd.f32 %v4128_v28, %v6054_v6  ;;  %v1397_v27 = vpop.f32.mrb[41].mxu1 }
 0x1f5   : > { %4564 = vrcp.f32 %v1812_v55  ;;  %v1813_v44 = vadd.f32 1.0, %v4553_v29  ;;  %v6092_v35 = vadd.f32 %v6054_v6, %v1397_v27  ;;  %v4129_v53 = vpop.f32.mrb[42].mxu1 }
 0x1f6   : > { %4566 = vrcp.f32 %v1815_v61  ;;  %v3730_v3 = vmul.f32 -1.442695, %v6089_v58  ;;  %v6096_v43 = vadd.f32 %v4129_v53, %v6054_v6  ;;  %v1400_v31 = vpop.f32.mrb[43].mxu1 }
 0x1f7   : > { %4568 = vrcp.f32 %v1813_v44  ;;  %v3728_v39 = vmul.f32 -1.442695, %v6092_v35  ;;  %v6100_v16 = vadd.f32 %v6054_v6, %v1400_v31 }
 0x1f8   : > { %4570 = vpow2.f32 %v3730_v3  ;;  %v3731_v10 = vmul.f32 -1.442695, %v6096_v43 }
 0x1f9   : > { %v4555_v23 = vpop.eup %4554  ;;  %4572 = vpow2.f32 %v3728_v39  ;;  %v3729_v30 = vmul.f32 -1.442695, %v6100_v16 }
 0x1fa   : > { %v4557_v50 = vpop.eup %4556  ;;  %v1818_v15 = vadd.f32 1.0, %v4555_v23 }
 0x1fb   : > { %v4559_v0 = vpop.eup %4558  ;;  %v1816_v47 = vadd.f32 1.0, %v4557_v50  ;;  %v4132_v49 = vpop.f32.mrb[44].mxu1 }
 0x1fc   : > { %v4561_v41 = vpop.eup %4560  ;;  %4574 = vrcp.f32 %v1818_v15  ;;  %v1819_v12 = vadd.f32 1.0, %v4559_v0  ;;  %v6105_v5 = vadd.f32 %v4132_v49, %v6054_v6  ;;  %v1413_v59 = vpop.f32.mrb[45].mxu1 }
 0x1fd   : > { %4576 = vrcp.f32 %v1816_v47  ;;  %v1817_v17 = vadd.f32 1.0, %v4561_v41  ;;  %v6108_v4 = vadd.f32 %v6054_v6, %v1413_v59  ;;  %v4133_v26 = vpop.f32.mrb[46].mxu1 }
 0x1fe   : > { %v4563_v1 = vpop.eup %4562  ;;  %4578 = vrcp.f32 %v1819_v12  ;;  %v3734_v63 = vmul.f32 -1.442695, %v6105_v5  ;;  %v6113_v56 = vadd.f32 %v4133_v26, %v6054_v6  ;;  %v1416_v8 = vpop.f32.mrb[47].mxu1 }
 0x1ff   : > { %v4565_v60 = vpop.eup %4564  ;;  %4580 = vrcp.f32 %v1817_v17  ;;  %v2006_v45 = vmul.f32 %v4563_v1, %v6057_v52  ;;  %v3732_v2 = vmul.f32 -1.442695, %v6108_v4  ;;  %v6118_v19 = vadd.f32 %v6054_v6, %v1416_v8 }
 0x200   : > { %v4567_v37 = vpop.eup %4566  ;;  %4582 = vpow2.f32 %v3731_v10  ;;  %v2004_v25 = vmul.f32 %v4565_v60, %v6060_v48  ;;  %v3735_v24 = vmul.f32 -1.442695, %v6113_v56 }
 0x201   : > { %v4569_v51 = vpop.eup %4568  ;;  %v2007_v32 = vmul.f32 %v4567_v37, %v6064_v14  ;;  %4584 = vpow2.f32 %v3729_v30  ;;  %v3733_v36 = vmul.f32 -1.442695, %v6118_v19 }
 0x202   : > { %v2005_v52 = vmul.f32 %v4569_v51, %v6068_v40  ;;  %4586 = vpow2.f32 %v3734_v63  ;;  %v4571_v21 = vpop.eup %4570 }
 0x203   : > { %v2069_v34 = vpack.c.bf16 %v2007_v32, %v2006_v45  ;;  %4588 = vpow2.f32 %v3732_v2  ;;  %v4573_v46 = vpop.eup %4572  ;;  %v1822_v38 = vadd.f32 1.0, %v4571_v21 }
 0x204   : > { %4590 = vpow2.f32 %v3735_v24  ;;  %v2068_v14 = vpack.c.bf16 %v2005_v52, %v2004_v25  ;;  %v1820_v7 = vadd.f32 1.0, %v4573_v46 }
 0x205   : > { %4592 = vpow2.f32 %v3733_v36  ;;  %v4136_v33 = vpop.f32.mrb[48].mxu1 }
 0x206   : > { %v4575_v11 = vpop.eup %4574  ;;  %v6125_v48 = vadd.f32 %v4136_v33, %v6054_v6  ;;  %v1429_v40 = vpop.f32.mrb[49].mxu1  ;;  %4198 = vmatprep.mubr.bf16.mxu0 %v2068_v14  ;;  %4594 = vrcp.f32 %v1822_v38 }
 0x207   : > { %v4577_v42 = vpop.eup %4576  ;;  %v6128_v13 = vadd.f32 %v6054_v6, %v1429_v40  ;;  %v4137_v57 = vpop.f32.mrb[50].mxu1  ;;  %4199 = vmatmul.mubr.bf16.vlgmr.msra.gmra.mrb[32].mxu0 %v2069_v34  ;;  %v2010_v44 = vmul.f32 %v4575_v11, %v6073_v20  ;;  %4596 = vrcp.f32 %v1820_v7 }
 0x208   : > { %v4579_v22 = vpop.eup %4578  ;;  %v3738_v9 = vmul.f32 -1.442695, %v6125_v48  ;;  %v6132_v55 = vadd.f32 %v4137_v57, %v6054_v6  ;;  %v1432_v29 = vpop.f32.mrb[51].mxu1  ;;  %v2008_v3 = vmul.f32 %v4577_v42, %v6076_v54 }
 0x209   : > { %v4581_v61 = vpop.eup %4580  ;;  %v2011_v28 = vmul.f32 %v4579_v22, %v6080_v18  ;;  %v3736_v27 = vmul.f32 -1.442695, %v6128_v13  ;;  %v6141_v15 = vadd.f32 %v6054_v6, %v1432_v29 }
 0x20a   : > { %v4583_v53 = vpop.eup %4582  ;;  %v2009_v31 = vmul.f32 %v4581_v61, %v6084_v62  ;;  %4598 = vpow2.f32 %v3738_v9  ;;  %v3739_v23 = vmul.f32 -1.442695, %v6132_v55 }
 0x20b   : > { %v4585_v39 = vpop.eup %4584  ;;  %v1823_v50 = vadd.f32 1.0, %v4583_v53  ;;  %4600 = vpow2.f32 %v3736_v27  ;;  %v2071_v20 = vpack.c.bf16 %v2011_v28, %v2010_v44  ;;  %v3737_v30 = vmul.f32 -1.442695, %v6141_v15 }
 0x20c   : > { %v4587_v0 = vpop.eup %4586  ;;  %v1821_v18 = vadd.f32 1.0, %v4585_v39  ;;  %4602 = vpow2.f32 %v3739_v23  ;;  %v2070_v47 = vpack.c.bf16 %v2009_v31, %v2008_v3 }
 0x20d   : > { %v4589_v41 = vpop.eup %4588  ;;  %4604 = vrcp.f32 %v1823_v50  ;;  %v1826_v12 = vadd.f32 1.0, %v4587_v0 }
 0x20e   : > { %v4591_v54 = vpop.eup %4590  ;;  %4606 = vrcp.f32 %v1821_v18  ;;  %v1824_v62 = vadd.f32 1.0, %v4589_v41  ;;  %4202 = vmatprep.mubr.bf16.mxu0 %v2070_v47 }
 0x20f   : > { %v4593_v10 = vpop.eup %4592  ;;  %4608 = vrcp.f32 %v1826_v12  ;;  %v1827_v17 = vadd.f32 1.0, %v4591_v54  ;;  %4203 = vmatmul.mubr.bf16.gmra.mrb[36].mxu0 %v2071_v20 }
 0x210   : > { %4610 = vrcp.f32 %v1824_v62  ;;  %v1825_v49 = vadd.f32 1.0, %v4593_v10  ;;  %v4595_v1 = vpop.eup %4594 }
 0x211   : > { %4612 = vrcp.f32 %v1827_v17  ;;  %v4597_v59 = vpop.eup %4596  ;;  %v2014_v38 = vmul.f32 %v4595_v1, %v6089_v58 }
 0x212   : > { %4614 = vrcp.f32 %v1825_v49  ;;  %v2012_v40 = vmul.f32 %v4597_v59, %v6092_v35 }
 0x213   : > { %4616 = vpow2.f32 %v3737_v30 }
 0x214   : > { %v4140_v60 = vpop.f32.mrb[52].mxu1  ;;  %v4599_v26 = vpop.eup %4598 }
 0x215   : > { %v6145_v37 = vadd.f32 %v4140_v60, %v6054_v6  ;;  %v1445_v45 = vpop.f32.mrb[53].mxu1  ;;  %v4601_v63 = vpop.eup %4600  ;;  %v1830_v8 = vadd.f32 1.0, %v4599_v26 }
 0x216   : > { %v6148_v51 = vadd.f32 %v6054_v6, %v1445_v45  ;;  %v4141_v32 = vpop.f32.mrb[54].mxu1  ;;  %v4603_v2 = vpop.eup %4602  ;;  %v1828_v9 = vadd.f32 1.0, %v4601_v63 }
 0x217   : > { %v3742_v25 = vmul.f32 -1.442695, %v6145_v37  ;;  %v6152_v52 = vadd.f32 %v4141_v32, %v6054_v6  ;;  %v1448_v24 = vpop.f32.mrb[55].mxu1  ;;  %v4605_v34 = vpop.eup %4604  ;;  %4618 = vrcp.f32 %v1830_v8  ;;  %v1831_v36 = vadd.f32 1.0, %v4603_v2 }
 0x218   : > { %v3740_v21 = vmul.f32 -1.442695, %v6148_v51  ;;  %v6156_v14 = vadd.f32 %v6054_v6, %v1448_v24  ;;  %v4607_v46 = vpop.eup %4606  ;;  %v2015_v33 = vmul.f32 %v4605_v34, %v6096_v43 }
 0x219   : > { %v3743_v11 = vmul.f32 -1.442695, %v6152_v52  ;;  %v4609_v7 = vpop.eup %4608  ;;  %v2013_v42 = vmul.f32 %v4607_v46, %v6100_v16  ;;  %4620 = vrcp.f32 %v1831_v36 }
 0x21a   : > { %v3741_v57 = vmul.f32 -1.442695, %v6156_v14  ;;  %v4611_v22 = vpop.eup %4610  ;;  %4622 = vpow2.f32 %v3742_v25  ;;  %v2073_v29 = vpack.c.bf16 %v2015_v33, %v2014_v38  ;;  %v2018_v43 = vmul.f32 %v4609_v7, %v6105_v5 }
 0x21b   : > { %v4613_v61 = vpop.eup %4612  ;;  %4624 = vpow2.f32 %v3740_v21  ;;  %v2072_v44 = vpack.c.bf16 %v2013_v42, %v2012_v40  ;;  %v2016_v35 = vmul.f32 %v4611_v22, %v6108_v4 }
 0x21c   : > { %v4615_v58 = vpop.eup %4614  ;;  %v2019_v28 = vmul.f32 %v4613_v61, %v6113_v56  ;;  %4626 = vpow2.f32 %v3743_v11 }
 0x21d   : > { %v4617_v27 = vpop.eup %4616  ;;  %v2017_v16 = vmul.f32 %v4615_v58, %v6118_v19  ;;  %4628 = vpow2.f32 %v3741_v57  ;;  %4206 = vmatprep.mubr.bf16.mxu0 %v2072_v44 }
 0x21e   : > { %4630 = vrcp.f32 %v1828_v9  ;;  %v1829_v53 = vadd.f32 1.0, %v4617_v27  ;;  %4207 = vmatmul.mubr.bf16.gmra.mrb[40].mxu0 %v2073_v29  ;;  %v2075_v3 = vpack.c.bf16 %v2019_v28, %v2018_v43 }
 0x21f   : > { %v2074_v31 = vpack.c.bf16 %v2017_v16, %v2016_v35 }
 0x220   : > { %4632 = vrcp.f32 %v1829_v53 }
 0x221   : > { %v4619_v23 = vpop.eup %4618  ;;  %4210 = vmatprep.mubr.bf16.mxu0 %v2074_v31 }
 0x222   : > { %v2022_v56 = vmul.f32 %v4619_v23, %v6125_v48 }
 0x223   : > { %v4621_v39 = vpop.eup %4620 }
 0x224   : > { %v4623_v5 = vpop.eup %4622  ;;  %v2023_v50 = vmul.f32 %v4621_v39, %v6132_v55 }
 0x225   : > { %v4144_v20 = vpop.f32.mrb[56].mxu1  ;;  %v4625_v4 = vpop.eup %4624  ;;  %v1834_v0 = vadd.f32 1.0, %v4623_v5 }
 0x226   : > { %v6171_v19 = vadd.f32 %v4144_v20, %v6054_v6  ;;  %v1461_v18 = vpop.f32.mrb[57].mxu1  ;;  %v4627_v47 = vpop.eup %4626  ;;  %v1832_v41 = vadd.f32 1.0, %v4625_v4  ;;  %4211 = vmatmul.mubr.bf16.gmra.mrb[44].mxu0 %v2075_v3  ;;  %v2077_v62 = vpack.c.bf16 %v2023_v50, %v2022_v56 }
 0x227   : > { %v6174_v12 = vadd.f32 %v6054_v6, %v1461_v18  ;;  %v4145_v54 = vpop.f32.mrb[58].mxu1  ;;  %v4629_v10 = vpop.eup %4628  ;;  %4634 = vrcp.f32 %v1834_v0  ;;  %v1835_v48 = vadd.f32 1.0, %v4627_v47 }
 0x228   : > { %v3746_v55 = vmul.f32 -1.442695, %v6171_v19  ;;  %v6178_v17 = vadd.f32 %v4145_v54, %v6054_v6  ;;  %v1464_v30 = vpop.f32.mrb[59].mxu1  ;;  %v4631_v49 = vpop.eup %4630  ;;  %4636 = vrcp.f32 %v1832_v41  ;;  %v1833_v1 = vadd.f32 1.0, %v4629_v10 }
 0x229   : > { %v3744_v59 = vmul.f32 -1.442695, %v6174_v12  ;;  %v6182_v60 = vadd.f32 %v6054_v6, %v1464_v30  ;;  %4638 = vrcp.f32 %v1835_v48  ;;  %v2020_v8 = vmul.f32 %v4631_v49, %v6128_v13 }
 0x22a   : > { %v3747_v26 = vmul.f32 -1.442695, %v6178_v17  ;;  %v4633_v45 = vpop.eup %4632  ;;  %4640 = vrcp.f32 %v1833_v1 }
 0x22b   : > { %v3745_v63 = vmul.f32 -1.442695, %v6182_v60  ;;  %v2021_v32 = vmul.f32 %v4633_v45, %v6141_v15  ;;  %4642 = vpow2.f32 %v3746_v55 }
 0x22c   : > { %4644 = vpow2.f32 %v3744_v59 }
 0x22d   : > { %4646 = vpow2.f32 %v3747_v26  ;;  %v2076_v2 = vpack.c.bf16 %v2021_v32, %v2020_v8 }
 0x22e   : > { %4648 = vpow2.f32 %v3745_v63 }
 0x22f   : > { %4214 = vmatprep.mubr.bf16.mxu0 %v2076_v2 }
 0x230   : > { %4215 = vmatmul.mubr.bf16.gmra.mrb[48].mxu0 %v2077_v62 }
 0x231   : > { %v4148_v25 = vpop.f32.mrb[60].mxu1  ;;  %v4635_v24 = vpop.eup %4634 }
 0x232   : > { %v6189_v34 = vadd.f32 %v4148_v25, %v6054_v6  ;;  %v1477_v36 = vpop.f32.mrb[61].mxu1  ;;  %v4637_v21 = vpop.eup %4636  ;;  %v2026_v40 = vmul.f32 %v4635_v24, %v6145_v37 }
 0x233   : > { %v6192_v46 = vadd.f32 %v6054_v6, %v1477_v36  ;;  %v4149_v13 = vpop.f32.mrb[62].mxu1  ;;  %v4639_v38 = vpop.eup %4638  ;;  %v2024_v29 = vmul.f32 %v4637_v21, %v6148_v51 }
 0x234   : > { %v3750_v15 = vmul.f32 -1.442695, %v6189_v34  ;;  %v6196_v33 = vadd.f32 %v4149_v13, %v6054_v6  ;;  %v1480_v11 = vpop.f32.mrb[63].mxu1  ;;  %v4641_v7 = vpop.eup %4640  ;;  %v2027_v42 = vmul.f32 %v4639_v38, %v6152_v52 }
 0x235   : > { %v3748_v57 = vmul.f32 -1.442695, %v6192_v46  ;;  %v6202_v22 = vadd.f32 %v6054_v6, %v1480_v11  ;;  %v4643_v9 = vpop.eup %4642  ;;  %v2025_v61 = vmul.f32 %v4641_v7, %v6156_v14 }
 0x236   : > { %4650 = vpow2.f32 %v3750_v15  ;;  %v3751_v44 = vmul.f32 -1.442695, %v6196_v33  ;;  %v4645_v58 = vpop.eup %4644  ;;  %v1838_v43 = vadd.f32 1.0, %v4643_v9  ;;  %v2079_v28 = vpack.c.bf16 %v2027_v42, %v2026_v40 }
 0x237   : > { %4652 = vpow2.f32 %v3748_v57  ;;  %v4647_v37 = vpop.eup %4646  ;;  %v1836_v27 = vadd.f32 1.0, %v4645_v58  ;;  %v2078_v52 = vpack.c.bf16 %v2025_v61, %v2024_v29  ;;  %v3749_v53 = vmul.f32 -1.442695, %v6202_v22 }
 0x238   : > { %4654 = vpow2.f32 %v3751_v44  ;;  %v4649_v35 = vpop.eup %4648  ;;  %v1839_v16 = vadd.f32 1.0, %v4647_v37 }
 0x239   : > { %4656 = vrcp.f32 %v1838_v43  ;;  %v4152_v3 = vpop.f32.mrb[64].mxu1  ;;  %v1837_v51 = vadd.f32 1.0, %v4649_v35  ;;  %4218 = vmatprep.mubr.bf16.mxu0 %v2078_v52 }
 0x23a   : > { %4658 = vrcp.f32 %v1836_v27  ;;  %v6209_v14 = vadd.f32 %v4152_v3, %v6054_v6  ;;  %v1493_v31 = vpop.f32.mrb[65].mxu1  ;;  %4219 = vmatmul.mubr.bf16.gmra.mrb[52].mxu0 %v2079_v28 }
 0x23b   : > { %4660 = vrcp.f32 %v1839_v16  ;;  %v6212_v23 = vadd.f32 %v6054_v6, %v1493_v31  ;;  %v4153_v39 = vpop.f32.mrb[66].mxu1 }
 0x23c   : > { %4662 = vrcp.f32 %v1837_v51  ;;  %v3754_v5 = vmul.f32 -1.442695, %v6209_v14  ;;  %v6216_v56 = vadd.f32 %v4153_v39, %v6054_v6  ;;  %v1496_v50 = vpop.f32.mrb[67].mxu1 }
 0x23d   : > { %4664 = vpow2.f32 %v3749_v53  ;;  %v3752_v20 = vmul.f32 -1.442695, %v6212_v23  ;;  %v6220_v4 = vadd.f32 %v6054_v6, %v1496_v50 }
 0x23e   : > { %4666 = vpow2.f32 %v3754_v5  ;;  %v3755_v0 = vmul.f32 -1.442695, %v6216_v56 }
 0x23f   : > { %4668 = vpow2.f32 %v3752_v20  ;;  %v3753_v18 = vmul.f32 -1.442695, %v6220_v4 }
 0x240   : > { %v4651_v47 = vpop.eup %4650  ;;  %4670 = vpow2.f32 %v3755_v0 }
 0x241   : > { %v4653_v41 = vpop.eup %4652  ;;  %v1842_v54 = vadd.f32 1.0, %v4651_v47  ;;  %4672 = vpow2.f32 %v3753_v18  ;;  %v4156_v62 = vpop.f32.mrb[68].mxu1 }
 0x242   : > { %v4655_v10 = vpop.eup %4654  ;;  %v1840_v48 = vadd.f32 1.0, %v4653_v41  ;;  %v6225_v55 = vadd.f32 %v4156_v62, %v6054_v6  ;;  %v1509_v30 = vpop.f32.mrb[69].mxu1 }
 0x243   : > { %v4657_v49 = vpop.eup %4656  ;;  %4674 = vrcp.f32 %v1842_v54  ;;  %v1843_v1 = vadd.f32 1.0, %v4655_v10  ;;  %v6228_v59 = vadd.f32 %v6054_v6, %v1509_v30  ;;  %v4157_v26 = vpop.f32.mrb[70].mxu1 }
 0x244   : > { %v4659_v45 = vpop.eup %4658  ;;  %4676 = vrcp.f32 %v1840_v48  ;;  %v3758_v63 = vmul.f32 -1.442695, %v6225_v55  ;;  %v6232_v8 = vadd.f32 %v4157_v26, %v6054_v6  ;;  %v1512_v32 = vpop.f32.mrb[71].mxu1  ;;  %v2030_v21 = vmul.f32 %v4657_v49, %v6171_v19 }
 0x245   : > { %v4661_v2 = vpop.eup %4660  ;;  %4678 = vrcp.f32 %v1843_v1  ;;  %v3756_v25 = vmul.f32 -1.442695, %v6228_v59  ;;  %v6236_v24 = vadd.f32 %v6054_v6, %v1512_v32  ;;  %v2028_v11 = vmul.f32 %v4659_v45, %v6174_v12 }
 0x246   : > { %v4663_v36 = vpop.eup %4662  ;;  %v2031_v13 = vmul.f32 %v4661_v2, %v6178_v17  ;;  %4680 = vpow2.f32 %v3758_v63  ;;  %v3759_v38 = vmul.f32 -1.442695, %v6232_v8 }
 0x247   : > { %v4665_v15 = vpop.eup %4664  ;;  %v2029_v7 = vmul.f32 %v4663_v36, %v6182_v60  ;;  %4682 = vpow2.f32 %v3756_v25  ;;  %v3757_v40 = vmul.f32 -1.442695, %v6236_v24 }
 0x248   : > { %v4667_v42 = vpop.eup %4666  ;;  %v1841_v57 = vadd.f32 1.0, %v4665_v15  ;;  %4684 = vpow2.f32 %v3759_v38  ;;  %v2081_v9 = vpack.c.bf16 %v2031_v13, %v2030_v21 }
 0x249   : > { %v4669_v29 = vpop.eup %4668  ;;  %v1846_v61 = vadd.f32 1.0, %v4667_v42  ;;  %4686 = vpow2.f32 %v3757_v40  ;;  %v4160_v19 = vpop.f32.mrb[72].mxu1  ;;  %v2080_v17 = vpack.c.bf16 %v2029_v7, %v2028_v11 }
 0x24a   : > { %v4671_v44 = vpop.eup %4670  ;;  %4688 = vrcp.f32 %v1841_v57  ;;  %v1844_v58 = vadd.f32 1.0, %v4669_v29  ;;  %v6245_v43 = vadd.f32 %v4160_v19, %v6054_v6  ;;  %v1525_v12 = vpop.f32.mrb[73].mxu1 }
 0x24b   : > { %v4673_v60 = vpop.eup %4672  ;;  %4690 = vrcp.f32 %v1846_v61  ;;  %v1847_v28 = vadd.f32 1.0, %v4671_v44  ;;  %v6248_v37 = vadd.f32 %v6054_v6, %v1525_v12  ;;  %v4161_v27 = vpop.f32.mrb[74].mxu1  ;;  %4222 = vmatprep.mubr.bf16.mxu0 %v2080_v17 }
 0x24c   : > { %4692 = vrcp.f32 %v1844_v58  ;;  %v1845_v52 = vadd.f32 1.0, %v4673_v60  ;;  %v3762_v35 = vmul.f32 -1.442695, %v6245_v43  ;;  %v6252_v16 = vadd.f32 %v4161_v27, %v6054_v6  ;;  %v1528_v53 = vpop.f32.mrb[75].mxu1  ;;  %4223 = vmatmul.mubr.bf16.gmra.mrb[56].mxu0 %v2081_v9 }
 0x24d   : > { %v4675_v3 = vpop.eup %4674  ;;  %4694 = vrcp.f32 %v1847_v28  ;;  %v3760_v51 = vmul.f32 -1.442695, %v6248_v37  ;;  %v6256_v31 = vadd.f32 %v6054_v6, %v1528_v53 }
 0x24e   : > { %v4677_v39 = vpop.eup %4676  ;;  %4696 = vrcp.f32 %v1845_v52  ;;  %v3763_v5 = vmul.f32 -1.442695, %v6252_v16  ;;  %v2034_v18 = vmul.f32 %v4675_v3, %v6189_v34 }
 0x24f   : > { %v4679_v50 = vpop.eup %4678  ;;  %4698 = vpow2.f32 %v3762_v35  ;;  %v3761_v20 = vmul.f32 -1.442695, %v6256_v31  ;;  %v2032_v45 = vmul.f32 %v4677_v39, %v6192_v46 }
 0x250   : > { %v4681_v0 = vpop.eup %4680  ;;  %v2035_v47 = vmul.f32 %v4679_v50, %v6196_v33  ;;  %4700 = vpow2.f32 %v3760_v51 }
 0x251   : > { %v4683_v41 = vpop.eup %4682  ;;  %v1850_v54 = vadd.f32 1.0, %v4681_v0  ;;  %4702 = vpow2.f32 %v3763_v5  ;;  %v4164_v62 = vpop.f32.mrb[76].mxu1 }
 0x252   : > { %v4685_v10 = vpop.eup %4684  ;;  %v1848_v48 = vadd.f32 1.0, %v4683_v41  ;;  %4704 = vpow2.f32 %v3761_v20  ;;  %v6263_v30 = vadd.f32 %v4164_v62, %v6054_v6  ;;  %v1541_v49 = vpop.f32.mrb[77].mxu1  ;;  %v2083_v1 = vpack.c.bf16 %v2035_v47, %v2034_v18 }
 0x253   : > { %v4687_v26 = vpop.eup %4686  ;;  %4706 = vrcp.f32 %v1850_v54  ;;  %v1851_v34 = vadd.f32 1.0, %v4685_v10  ;;  %v6267_v33 = vadd.f32 %v6054_v6, %v1541_v49  ;;  %v4165_v63 = vpop.f32.mrb[78].mxu1 }
 0x254   : > { %v4689_v32 = vpop.eup %4688  ;;  %4708 = vrcp.f32 %v1848_v48  ;;  %v1849_v2 = vadd.f32 1.0, %v4687_v26  ;;  %v3766_v25 = vmul.f32 -1.442695, %v6263_v30  ;;  %v6271_v36 = vadd.f32 %v4165_v63, %v6054_v6  ;;  %v1544_v21 = vpop.f32.mrb[79].mxu1 }
 0x255   : > { %v4691_v13 = vpop.eup %4690  ;;  %v2033_v38 = vmul.f32 %v4689_v32, %v6202_v22  ;;  %4710 = vrcp.f32 %v1851_v34  ;;  %v3764_v46 = vmul.f32 -1.442695, %v6267_v33  ;;  %v6276_v15 = vadd.f32 %v6054_v6, %v1544_v21 }
 0x256   : > { %v4693_v11 = vpop.eup %4692  ;;  %4712 = vrcp.f32 %v1849_v2  ;;  %v3767_v7 = vmul.f32 -1.442695, %v6271_v36  ;;  %v2038_v29 = vmul.f32 %v4691_v13, %v6209_v14 }
 0x257   : > { %v4695_v40 = vpop.eup %4694  ;;  %4714 = vpow2.f32 %v3766_v25  ;;  %v3765_v42 = vmul.f32 -1.442695, %v6276_v15  ;;  %v2082_v57 = vpack.c.bf16 %v2033_v38, %v2032_v45  ;;  %v2036_v19 = vmul.f32 %v4693_v11, %v6212_v23 }
 0x258   : > { %v4697_v9 = vpop.eup %4696  ;;  %v2039_v22 = vmul.f32 %v4695_v40, %v6216_v56  ;;  %4716 = vpow2.f32 %v3764_v46 }
 0x259   : > { %v4699_v61 = vpop.eup %4698  ;;  %v2037_v17 = vmul.f32 %v4697_v9, %v6220_v4  ;;  %4718 = vpow2.f32 %v3767_v7  ;;  %4226 = vmatprep.mubr.bf16.mxu0 %v2082_v57  ;;  %v4168_v44 = vpop.f32.mrb[80].mxu1 }
 0x25a   : > { %v4701_v58 = vpop.eup %4700  ;;  %v1854_v12 = vadd.f32 1.0, %v4699_v61  ;;  %4720 = vpow2.f32 %v3765_v42  ;;  %4227 = vmatmul.mubr.bf16.gmra.mrb[60].mxu0 %v2083_v1  ;;  %v6285_v60 = vadd.f32 %v4168_v44, %v6054_v6  ;;  %v1557_v28 = vpop.f32.mrb[81].mxu1  ;;  %v2085_v14 = vpack.c.bf16 %v2039_v22, %v2038_v29 }
 0x25b   : > { %v4703_v27 = vpop.eup %4702  ;;  %v1852_v56 = vadd.f32 1.0, %v4701_v58  ;;  %v6288_v52 = vadd.f32 %v6054_v6, %v1557_v28  ;;  %v4169_v23 = vpop.f32.mrb[82].mxu1  ;;  %v2084_v35 = vpack.c.bf16 %v2037_v17, %v2036_v19 }
 0x25c   : > { %v4705_v4 = vpop.eup %4704  ;;  %4722 = vrcp.f32 %v1854_v12  ;;  %v1855_v53 = vadd.f32 1.0, %v4703_v27  ;;  %v3770_v3 = vmul.f32 -1.442695, %v6285_v60  ;;  %v6292_v51 = vadd.f32 %v4169_v23, %v6054_v6  ;;  %v1560_v39 = vpop.f32.mrb[83].mxu1 }
 0x25d   : > { %v4707_v5 = vpop.eup %4706  ;;  %4724 = vrcp.f32 %v1852_v56  ;;  %v1853_v50 = vadd.f32 1.0, %v4705_v4  ;;  %v3768_v20 = vmul.f32 -1.442695, %v6288_v52  ;;  %v6296_v0 = vadd.f32 %v6054_v6, %v1560_v39  ;;  %4230 = vmatprep.mubr.bf16.mxu0 %v2084_v35 }
 0x25e   : > { %v4709_v18 = vpop.eup %4708  ;;  %4726 = vrcp.f32 %v1855_v53  ;;  %v3771_v47 = vmul.f32 -1.442695, %v6292_v51  ;;  %v2042_v10 = vmul.f32 %v4707_v5, %v6225_v55 }
 0x25f   : > { %v4711_v41 = vpop.eup %4710  ;;  %4728 = vrcp.f32 %v1853_v50  ;;  %v3769_v54 = vmul.f32 -1.442695, %v6296_v0  ;;  %v2040_v1 = vmul.f32 %v4709_v18, %v6228_v59 }
 0x260   : > { %v4713_v62 = vpop.eup %4712  ;;  %v2043_v48 = vmul.f32 %v4711_v41, %v6232_v8  ;;  %4730 = vpow2.f32 %v3770_v3 }
 0x261   : > { %v4715_v49 = vpop.eup %4714  ;;  %v2041_v26 = vmul.f32 %v4713_v62, %v6236_v24  ;;  %4732 = vpow2.f32 %v3768_v20  ;;  %v4172_v45 = vpop.f32.mrb[84].mxu1 }
 0x262   : > { %v4717_v34 = vpop.eup %4716  ;;  %v1858_v63 = vadd.f32 1.0, %v4715_v49  ;;  %4734 = vpow2.f32 %v3771_v47  ;;  %4231 = vmatmul.mubr.bf16.gmra.mrb[64].mxu0 %v2085_v14  ;;  %v6305_v32 = vadd.f32 %v4172_v45, %v6054_v6  ;;  %v1573_v2 = vpop.f32.mrb[85].mxu1  ;;  %v2087_v25 = vpack.c.bf16 %v2043_v48, %v2042_v10  ;;  %v5315_v47 = vld [vmem:[%s7295_s4] ss:$0 sm:$0xff] }
 0x263   : > { %v4719_v55 = vpop.eup %4718  ;;  %v1856_v21 = vadd.f32 1.0, %v4717_v34  ;;  %4736 = vpow2.f32 %v3769_v54  ;;  %v6308_v8 = vadd.f32 %v6054_v6, %v1573_v2  ;;  %v4173_v59 = vpop.f32.mrb[86].mxu1  ;;  %v2086_v13 = vpack.c.bf16 %v2041_v26, %v2040_v1 }
 0x264   : > { %v4721_v24 = vpop.eup %4720  ;;  %4738 = vrcp.f32 %v1858_v63  ;;  %v1859_v38 = vadd.f32 1.0, %v4719_v55  ;;  %v3774_v46 = vmul.f32 -1.442695, %v6305_v32  ;;  %v6312_v11 = vadd.f32 %v4173_v59, %v6054_v6  ;;  %v1576_v7 = vpop.f32.mrb[87].mxu1 }
 0x265   : > { %4740 = vrcp.f32 %v1856_v21  ;;  %v1857_v40 = vadd.f32 1.0, %v4721_v24  ;;  %v3772_v42 = vmul.f32 -1.442695, %v6308_v8  ;;  %v6316_v57 = vadd.f32 %v6054_v6, %v1576_v7  ;;  %4234 = vmatprep.mubr.bf16.mxu0 %v2086_v13 }
 0x266   : > { %v4723_v9 = vpop.eup %4722  ;;  %4742 = vrcp.f32 %v1859_v38  ;;  %v3775_v29 = vmul.f32 -1.442695, %v6312_v11 }
 0x267   : > { %v4725_v22 = vpop.eup %4724  ;;  %4744 = vrcp.f32 %v1857_v40  ;;  %v3773_v61 = vmul.f32 -1.442695, %v6316_v57  ;;  %v2046_v44 = vmul.f32 %v4723_v9, %v6245_v43 }
 0x268   : > { %v4727_v19 = vpop.eup %4726  ;;  %4746 = vpow2.f32 %v3774_v46  ;;  %v2044_v14 = vmul.f32 %v4725_v22, %v6248_v37 }
 0x269   : > { %v4729_v17 = vpop.eup %4728  ;;  %v2047_v58 = vmul.f32 %v4727_v19, %v6252_v16  ;;  %4748 = vpow2.f32 %v3772_v42  ;;  %v4176_v12 = vpop.f32.mrb[88].mxu1 }
 0x26a   : > { %v4731_v28 = vpop.eup %4730  ;;  %v2045_v27 = vmul.f32 %v4729_v17, %v6256_v31  ;;  %4750 = vpow2.f32 %v3775_v29  ;;  %4235 = vmatmul.mubr.bf16.gmra.mrb[68].mxu0 %v2087_v25  ;;  %v6325_v56 = vadd.f32 %v4176_v12, %v6054_v6  ;;  %v1589_v23 = vpop.f32.mrb[89].mxu1 }
 0x26b   : > { %v4733_v35 = vpop.eup %4732  ;;  %v1862_v4 = vadd.f32 1.0, %v4731_v28  ;;  %4752 = vpow2.f32 %v3773_v61  ;;  %v6328_v43 = vadd.f32 %v6054_v6, %v1589_v23  ;;  %v4177_v16 = vpop.f32.mrb[90].mxu1  ;;  %v2089_v53 = vpack.c.bf16 %v2047_v58, %v2046_v44 }
 0x26c   : > { %v4735_v3 = vpop.eup %4734  ;;  %v1860_v39 = vadd.f32 1.0, %v4733_v35  ;;  %v6331_v37 = vadd.f32 %v4177_v16, %v6054_v6  ;;  %v1592_v31 = vpop.f32.mrb[91].mxu1  ;;  %v2088_v5 = vpack.c.bf16 %v2045_v27, %v2044_v14  ;;  %v3778_v18 = vmul.f32 -1.442695, %v6325_v56 }
 0x26d   : > { %v4737_v50 = vpop.eup %4736  ;;  %4754 = vrcp.f32 %v1862_v4  ;;  %v1863_v20 = vadd.f32 1.0, %v4735_v3  ;;  %v6337_v41 = vadd.f32 %v5315_v47, %v1592_v31  ;;  %v3776_v10 = vmul.f32 -1.442695, %v6328_v43 }
 0x26e   : > { %v4739_v54 = vpop.eup %4738  ;;  %4756 = vrcp.f32 %v1860_v39  ;;  %v1861_v62 = vadd.f32 1.0, %v4737_v50  ;;  %4238 = vmatprep.mubr.bf16.mxu0 %v2088_v5  ;;  %v3779_v48 = vmul.f32 -1.442695, %v6331_v37 }
 0x26f   : > { %v4741_v6 = vpop.eup %4740  ;;  %4758 = vrcp.f32 %v1863_v20  ;;  %v3777_v1 = vmul.f32 -1.442695, %v6337_v41  ;;  %v2050_v45 = vmul.f32 %v4739_v54, %v6263_v30 }
 0x270   : > { %v4743_v49 = vpop.eup %4742  ;;  %4760 = vrcp.f32 %v1861_v62 }
 0x271   : > { %v4745_v26 = vpop.eup %4744  ;;  %v2051_v34 = vmul.f32 %v4743_v49, %v6271_v36  ;;  %4762 = vpow2.f32 %v3778_v18  ;;  %v4180_v63 = vpop.f32.mrb[92].mxu1  ;;  %v2048_v36 = vmul.f32 %v4741_v6, %v6267_v33 }
 0x272   : > { %v4747_v2 = vpop.eup %4746  ;;  %v2049_v25 = vmul.f32 %v4745_v26, %v6276_v15  ;;  %4764 = vpow2.f32 %v3776_v10  ;;  %4239 = vmatmul.mubr.bf16.gmra.mrb[72].mxu0 %v2089_v53  ;;  %v6345_v55 = vadd.f32 %v5315_v47, %v4180_v63  ;;  %v1605_v21 = vpop.f32.mrb[93].mxu1 }
 0x273   : > { %v4749_v59 = vpop.eup %4748  ;;  %v1866_v13 = vadd.f32 1.0, %v4747_v2  ;;  %4766 = vpow2.f32 %v3779_v48  ;;  %v6347_v24 = vadd.f32 %v5315_v47, %v1605_v21  ;;  %v4181_v38 = vpop.f32.mrb[94].mxu1  ;;  %v2091_v46 = vpack.c.bf16 %v2051_v34, %v2050_v45 }
 0x274   : > { %v4751_v30 = vpop.eup %4750  ;;  %v1864_v7 = vadd.f32 1.0, %v4749_v59  ;;  %4768 = vpow2.f32 %v3777_v1  ;;  %v6350_v40 = vadd.f32 %v5315_v47, %v4181_v38  ;;  %v1608_v15 = vpop.f32.mrb[95].mxu1  ;;  %v3782_v29 = vmul.f32 -1.442695, %v6345_v55 }
 0x275   : > { %v4753_v42 = vpop.eup %4752  ;;  %4770 = vrcp.f32 %v1866_v13  ;;  %v1867_v9 = vadd.f32 1.0, %v4751_v30  ;;  %v6353_v22 = vadd.f32 %v5315_v47, %v1608_v15  ;;  %v3780_v19 = vmul.f32 -1.442695, %v6347_v24 }
 0x276   : > { %4772 = vrcp.f32 %v1864_v7  ;;  %v1865_v61 = vadd.f32 1.0, %v4753_v42  ;;  %v2090_v17 = vpack.c.bf16 %v2049_v25, %v2048_v36  ;;  %v3783_v33 = vmul.f32 -1.442695, %v6350_v40 }
 0x277   : > { %v4755_v44 = vpop.eup %4754  ;;  %4774 = vrcp.f32 %v1867_v9  ;;  %v3781_v12 = vmul.f32 -1.442695, %v6353_v22 }
 0x278   : > { %v4757_v58 = vpop.eup %4756  ;;  %4776 = vrcp.f32 %v1865_v61  ;;  %4242 = vmatprep.mubr.bf16.mxu0 %v2090_v17  ;;  %v2054_v27 = vmul.f32 %v4755_v44, %v6285_v60 }
 0x279   : > { %v4759_v28 = vpop.eup %4758  ;;  %4778 = vpow2.f32 %v3782_v29  ;;  %v2052_v4 = vmul.f32 %v4757_v58, %v6288_v52 }
 0x27a   : > { %v4761_v14 = vpop.eup %4760  ;;  %v2055_v23 = vmul.f32 %v4759_v28, %v6292_v51  ;;  %4780 = vpow2.f32 %v3780_v19  ;;  %4243 = vmatmul.mubr.bf16.gmra.mrb[76].mxu0 %v2091_v46 }
 0x27b   : > { %v4763_v35 = vpop.eup %4762  ;;  %v2053_v16 = vmul.f32 %v4761_v14, %v6296_v0  ;;  %4782 = vpow2.f32 %v3783_v33 }
 0x27c   : > { %v4765_v53 = vpop.eup %4764  ;;  %v1870_v3 = vadd.f32 1.0, %v4763_v35  ;;  %4784 = vpow2.f32 %v3781_v12  ;;  %v2093_v39 = vpack.c.bf16 %v2055_v23, %v2054_v27 }
 0x27d   : > { %v4767_v31 = vpop.eup %4766  ;;  %v1868_v5 = vadd.f32 1.0, %v4765_v53  ;;  %v2092_v50 = vpack.c.bf16 %v2053_v16, %v2052_v4 }
 0x27e   : > { %v4769_v20 = vpop.eup %4768  ;;  %4786 = vrcp.f32 %v1870_v3  ;;  %v1871_v60 = vadd.f32 1.0, %v4767_v31 }
 0x27f   : > { %v4771_v18 = vpop.eup %4770  ;;  %4788 = vrcp.f32 %v1868_v5  ;;  %v1869_v51 = vadd.f32 1.0, %v4769_v20  ;;  %4246 = vmatprep.mubr.bf16.mxu0 %v2092_v50 }
 0x280   : > { %v4773_v47 = vpop.eup %4772  ;;  %4790 = vrcp.f32 %v1871_v60  ;;  %v2058_v54 = vmul.f32 %v4771_v18, %v6305_v32 }
 0x281   : > { %v4775_v52 = vpop.eup %4774  ;;  %4792 = vrcp.f32 %v1869_v51  ;;  %v2056_v6 = vmul.f32 %v4773_v47, %v6308_v8 }
 0x282   : > { %v4777_v0 = vpop.eup %4776  ;;  %v2059_v62 = vmul.f32 %v4775_v52, %v6312_v11  ;;  %4247 = vmatmul.mubr.bf16.gmra.mrb[80].mxu0 %v2093_v39 }
 0x283   : > { %v4779_v10 = vpop.eup %4778  ;;  %v2057_v48 = vmul.f32 %v4777_v0, %v6316_v57 }
 0x284   : > { %v4781_v49 = vpop.eup %4780  ;;  %v1874_v1 = vadd.f32 1.0, %v4779_v10  ;;  %v2095_v26 = vpack.c.bf16 %v2059_v62, %v2058_v54 }
 0x285   : > { %v4783_v45 = vpop.eup %4782  ;;  %v1872_v34 = vadd.f32 1.0, %v4781_v49  ;;  %v2094_v63 = vpack.c.bf16 %v2057_v48, %v2056_v6 }
 0x286   : > { %v4785_v2 = vpop.eup %4784  ;;  %4794 = vrcp.f32 %v1874_v1  ;;  %v1875_v25 = vadd.f32 1.0, %v4783_v45 }
 0x287   : > { %4796 = vrcp.f32 %v1872_v34  ;;  %v1873_v21 = vadd.f32 1.0, %v4785_v2  ;;  %4250 = vmatprep.mubr.bf16.mxu0 %v2094_v63 }
 0x288   : > { %v4787_v32 = vpop.eup %4786  ;;  %4798 = vrcp.f32 %v1875_v25 }
 0x289   : > { %v4789_v11 = vpop.eup %4788  ;;  %4800 = vrcp.f32 %v1873_v21  ;;  %v2062_v57 = vmul.f32 %v4787_v32, %v6325_v56 }
 0x28a   : > { %v4791_v59 = vpop.eup %4790  ;;  %4251 = vmatmul.mubr.bf16.gmra.mrb[84].mxu0 %v2095_v26  ;;  %v2060_v38 = vmul.f32 %v4789_v11, %v6328_v43 }
 0x28b   : > { %v4793_v8 = vpop.eup %4792  ;;  %v2063_v13 = vmul.f32 %v4791_v59, %v6331_v37 }
 0x28c   : > { %v2061_v46 = vmul.f32 %v4793_v8, %v6337_v41  ;;  %v6377_v41 = vld [vmem:[%s7297_s6] ss:$0 sm:$0xff] }
 0x28d   : > { %v2097_v30 = vpack.c.bf16 %v2063_v13, %v2062_v57 }
 0x28e   : > { %v2096_v36 = vpack.c.bf16 %v2061_v46, %v2060_v38 }
 0x290   : > { %v4795_v7 = vpop.eup %4794  ;;  %4254 = vmatprep.mubr.bf16.mxu0 %v2096_v36 }
 0x291   : > { %v4797_v15 = vpop.eup %4796  ;;  %v2066_v29 = vmul.f32 %v4795_v7, %v6345_v55 }
 0x292   : > { %v4799_v42 = vpop.eup %4798  ;;  %4255 = vmatmul.mubr.bf16.gmra.mrb[88].mxu0 %v2097_v30  ;;  %v2064_v56 = vmul.f32 %v4797_v15, %v6347_v24 }
 0x293   : > { %v4801_v9 = vpop.eup %4800  ;;  %v2067_v61 = vmul.f32 %v4799_v42, %v6350_v40 }
 0x294   : > { %v2065_v37 = vmul.f32 %v4801_v9, %v6353_v22 }
 0x295   : > { %v2099_v19 = vpack.c.bf16 %v2067_v61, %v2066_v29 }
 0x296   : > { %v2098_v43 = vpack.c.bf16 %v2065_v37, %v2064_v56 }
 0x298   : > { %4258 = vmatprep.mubr.bf16.mxu0 %v2098_v43 }
 0x29a   : > { %4259 = vmatmul.mubr.bf16.gmra.mrb[92].mxu0 %v2099_v19 }
 0x2da   : > { %v4200_v17 = vpop.f32.mrb[32].mxu0 }
 0x2db   : > { %v6380_v44 = vadd.f32 %v4200_v17, %v6377_v41  ;;  %v2205_v55 = vpop.f32.mrb[33].mxu0 }
 0x2dc   : > { %v6383_v40 = vadd.f32 %v6377_v41, %v2205_v55  ;;  %v4201_v24 = vpop.f32.mrb[34].mxu0 }
 0x2dd   : > { %2464 = vrot.lane.b32.xlu1 %v6380_v44, %s5325_s12  ;;  %v2208_v22 = vpop.f32.mrb[35].mxu0  ;;  %v6390_v33 = vadd.f32 %v4201_v24, %v6377_v41  ;;  %v3795_v18 = vmul.f32 -1.442695, %v6380_v44 }
 0x2de   : > { %2460 = vrot.lane.b32.xlu0 %v6383_v40, %s5325_s12  ;;  %v6393_v58 = vadd.f32 %v6377_v41, %v2208_v22  ;;  %v3793_v47 = vmul.f32 -1.442695, %v6383_v40 }
 0x2df   : > { %v3796_v54 = vmul.f32 -1.442695, %v6390_v33  ;;  %4802 = vpow2.f32 %v3795_v18 }
 0x2e0   : > { %v3794_v10 = vmul.f32 -1.442695, %v6393_v58  ;;  %4804 = vpow2.f32 %v3793_v47 }
 0x2e1   : > { %2466 = vrot.lane.b32.xlu1 %v6390_v33, %s5325_s12  ;;  %4806 = vpow2.f32 %v3796_v54 }
 0x2e2   : > { %v4204_v12 = vpop.f32.mrb[36].mxu0  ;;  %2462 = vrot.lane.b32.xlu0 %v6393_v58, %s5325_s12  ;;  %4808 = vpow2.f32 %v3794_v10 }
 0x2e3   : > { %v6400_v28 = vadd.f32 %v4204_v12, %v6377_v41  ;;  %v2221_v14 = vpop.f32.mrb[37].mxu0 }
 0x2e4   : > { %v4205_v27 = vpop.f32.mrb[38].mxu0  ;;  %v6410_v4 = vadd.f32 %v6377_v41, %v2221_v14 }
 0x2e5   : > { %v6403_v23 = vadd.f32 %v4205_v27, %v6377_v41  ;;  %v2224_v35 = vpop.f32.mrb[39].mxu0  ;;  %v3799_v26 = vmul.f32 -1.442695, %v6400_v28 }
 0x2e6   : > { %2472 = vrot.lane.b32.xlu0 %v6400_v28, %s5325_s12  ;;  %v6413_v16 = vadd.f32 %v6377_v41, %v2224_v35  ;;  %v3797_v45 = vmul.f32 -1.442695, %v6410_v4 }
 0x2e7   : > { %2474 = vrot.lane.b32.xlu1 %v6403_v23, %s5325_s12  ;;  %v3800_v63 = vmul.f32 -1.442695, %v6403_v23  ;;  %4810 = vpow2.f32 %v3799_v26 }
 0x2e8   : > { %v3798_v32 = vmul.f32 -1.442695, %v6413_v16  ;;  %4812 = vpow2.f32 %v3797_v45 }
 0x2e9   : > { %v4803_v8 = vpop.eup %4802  ;;  %4814 = vpow2.f32 %v3800_v63 }
 0x2ea   : > { %2468 = vrot.lane.b32.xlu0 %v6410_v4, %s5325_s12  ;;  %v4805_v13 = vpop.eup %4804  ;;  %v2782_v15 = vadd.f32 1.0, %v4803_v8  ;;  %4816 = vpow2.f32 %v3798_v32 }
 0x2eb   : > { %2470 = vrot.lane.b32.xlu1 %v6413_v16, %s5325_s12  ;;  %v4807_v30 = vpop.eup %4806  ;;  %v2780_v9 = vadd.f32 1.0, %v4805_v13 }
 0x2ec   : > { %v4809_v7 = vpop.eup %4808  ;;  %v2783_v29 = vadd.f32 1.0, %v4807_v30 }
 0x2ed   : > { %v2781_v61 = vadd.f32 1.0, %v4809_v7 }
 0x2f1   : > { %v4208_v53 = vpop.f32.mrb[40].mxu0  ;;  %v4811_v17 = vpop.eup %4810 }
 0x2f2   : > { %v6420_v3 = vadd.f32 %v4208_v53, %v6377_v41  ;;  %v2237_v39 = vpop.f32.mrb[41].mxu0  ;;  %v4813_v27 = vpop.eup %4812 }
 0x2f3   : > { %v4209_v31 = vpop.f32.mrb[42].mxu0  ;;  %v6428_v20 = vadd.f32 %v6377_v41, %v2237_v39  ;;  %v4815_v53 = vpop.eup %4814  ;;  %v2786_v39 = vadd.f32 1.0, %v4811_v17 }
 0x2f4   : > { %v6423_v5 = vadd.f32 %v4209_v31, %v6377_v41  ;;  %v2240_v50 = vpop.f32.mrb[43].mxu0  ;;  %2480 = vrot.lane.b32.xlu0 %v6420_v3, %s5325_s12  ;;  %v3803_v57 = vmul.f32 -1.442695, %v6420_v3  ;;  %v4817_v18 = vpop.eup %4816  ;;  %v2787_v54 = vadd.f32 1.0, %v4815_v53 }
 0x2f5   : > { %v6433_v60 = vadd.f32 %v6377_v41, %v2240_v50  ;;  %v3801_v38 = vmul.f32 -1.442695, %v6428_v20  ;;  %v2785_v26 = vadd.f32 1.0, %v4817_v18 }
 0x2f6   : > { %2482 = vrot.lane.b32.xlu1 %v6423_v5, %s5325_s12  ;;  %v3804_v36 = vmul.f32 -1.442695, %v6423_v5  ;;  %4818 = vpow2.f32 %v3803_v57 }
 0x2f7   : > { %4820 = vpow2.f32 %v3801_v38  ;;  %v3802_v37 = vmul.f32 -1.442695, %v6433_v60 }
 0x2f8   : > { %2476 = vrot.lane.b32.xlu0 %v6428_v20, %s5325_s12  ;;  %4822 = vpow2.f32 %v3804_v36 }
 0x2f9   : > { %v4212_v51 = vpop.f32.mrb[44].mxu0  ;;  %4824 = vrcp.f32 %v2782_v15 }
 0x2fa   : > { %v6440_v52 = vadd.f32 %v4212_v51, %v6377_v41  ;;  %v2253_v0 = vpop.f32.mrb[45].mxu0  ;;  %2478 = vrot.lane.b32.xlu1 %v6433_v60, %s5325_s12  ;;  %4826 = vrcp.f32 %v2780_v9  ;;  %v2784_v51 = vadd.f32 1.0, %v4813_v27 }
 0x2fb   : > { %v4213_v62 = vpop.f32.mrb[46].mxu0  ;;  %v6452_v49 = vadd.f32 %v6377_v41, %v2253_v0  ;;  %4828 = vrcp.f32 %v2783_v29 }
 0x2fc   : > { %v6447_v6 = vadd.f32 %v4213_v62, %v6377_v41  ;;  %v2256_v48 = vpop.f32.mrb[47].mxu0  ;;  %2488 = vrot.lane.b32.xlu0 %v6440_v52, %s5325_s12  ;;  %v3807_v55 = vmul.f32 -1.442695, %v6440_v52  ;;  %4830 = vrcp.f32 %v2781_v61 }
 0x2fd   : > { %v6457_v1 = vadd.f32 %v6377_v41, %v2256_v48  ;;  %v3805_v22 = vmul.f32 -1.442695, %v6452_v49  ;;  %4832 = vpow2.f32 %v3802_v37 }
 0x2fe   : > { %2490 = vrot.lane.b32.xlu1 %v6447_v6, %s5325_s12  ;;  %v3808_v35 = vmul.f32 -1.442695, %v6447_v6  ;;  %4834 = vpow2.f32 %v3807_v55 }
 0x2ff   : > { %v3806_v50 = vmul.f32 -1.442695, %v6457_v1  ;;  %4836 = vpow2.f32 %v3805_v22 }
 0x300   : > { %2484 = vrot.lane.b32.xlu0 %v6452_v49, %s5325_s12  ;;  %v4819_v0 = vpop.eup %4818  ;;  %4838 = vpow2.f32 %v3808_v35 }
 0x301   : > { %v4821_v62 = vpop.eup %4820  ;;  %4840 = vrcp.f32 %v2786_v39 }
 0x302   : > { %2486 = vrot.lane.b32.xlu1 %v6457_v1, %s5325_s12  ;;  %v4823_v48 = vpop.eup %4822  ;;  %4842 = vpow2.f32 %v3806_v50 }
 0x303   : > { %v4216_v34 = vpop.f32.mrb[48].mxu0  ;;  %v6516_v45 = vpop.eup %4824  ;;  %4844 = vrcp.f32 %v2784_v51  ;;  %v2791_v32 = vadd.f32 1.0, %v4823_v48 }
 0x304   : > { %v6467_v2 = vadd.f32 %v4216_v34, %v6377_v41  ;;  %v2269_v25 = vpop.f32.mrb[49].mxu0  ;;  %v2790_v34 = vadd.f32 1.0, %v4819_v0  ;;  %v6518_v63 = vpop.eup %4826  ;;  %4846 = vrcp.f32 %v2787_v54 }
 0x305   : > { %v4217_v21 = vpop.f32.mrb[50].mxu0  ;;  %v6478_v46 = vadd.f32 %v6377_v41, %v2269_v25  ;;  %v2788_v25 = vadd.f32 1.0, %v4821_v62 }
 0x306   : > { %7353 = vst [vmem:[#allocation2_spill] sm:$0xff] %v6467_v2  ;;  %v6471_v11 = vadd.f32 %v4217_v21, %v6377_v41  ;;  %v2272_v59 = vpop.f32.mrb[51].mxu0  ;;  %2496 = vrot.lane.b32.xlu0 %v6467_v2, %s5325_s12  ;;  %v3811_v10 = vmul.f32 -1.442695, %v6467_v2  ;;  %v6520_v21 = vpop.eup %4828 }
 0x307   : > { %7355 = vst [vmem:[#allocation4_spill] sm:$0xff] %v6478_v46  ;;  %v6484_v42 = vadd.f32 %v6377_v41, %v2272_v59  ;;  %v6522_v59 = vpop.eup %4830  ;;  %v3809_v8 = vmul.f32 -1.442695, %v6478_v46 }
 0x308   : > { %7354 = vst [vmem:[#allocation3_spill] sm:$0xff] %v6471_v11  ;;  %2498 = vrot.lane.b32.xlu1 %v6471_v11, %s5325_s12  ;;  %4848 = vpow2.f32 %v3811_v10  ;;  %v4833_v57 = vpop.eup %4832  ;;  %v3812_v13 = vmul.f32 -1.442695, %v6471_v11 }
 0x309   : > { %7356 = vst [vmem:[#allocation5_spill] sm:$0xff] %v6484_v42  ;;  %4850 = vrcp.f32 %v2785_v26  ;;  %v4835_v38 = vpop.eup %4834  ;;  %v3810_v30 = vmul.f32 -1.442695, %v6484_v42  ;;  %v2789_v29 = vadd.f32 1.0, %v4833_v57 }
 0x30a   : > { %2492 = vrot.lane.b32.xlu0 %v6478_v46, %s5325_s12  ;;  %4852 = vrcp.f32 %v2790_v34  ;;  %v4837_v36 = vpop.eup %4836 }
 0x30b   : > { %4854 = vrcp.f32 %v2788_v25  ;;  %v4839_v9 = vpop.eup %4838 }
 0x30c   : > { %2494 = vrot.lane.b32.xlu1 %v6484_v42, %s5325_s12  ;;  %4856 = vrcp.f32 %v2791_v32  ;;  %v6531_v37 = vpop.eup %4840  ;;  %v2795_v35 = vadd.f32 1.0, %v4839_v9 }
 0x30d   : > { %v4220_v56 = vpop.f32.mrb[52].mxu0  ;;  %4858 = vpow2.f32 %v3809_v8  ;;  %v4843_v55 = vpop.eup %4842 }
 0x30e   : > { %v6492_v19 = vadd.f32 %v4220_v56, %v6377_v41  ;;  %v2285_v43 = vpop.f32.mrb[53].mxu0  ;;  %4860 = vpow2.f32 %v3812_v13  ;;  %v6538_v27 = vpop.eup %4844  ;;  %v2793_v51 = vadd.f32 1.0, %v4843_v55 }
 0x30f   : > { %v4221_v24 = vpop.f32.mrb[54].mxu0  ;;  %v6503_v31 = vadd.f32 %v6377_v41, %v2285_v43  ;;  %v2794_v43 = vadd.f32 1.0, %v4835_v38  ;;  %4862 = vpow2.f32 %v3810_v30  ;;  %v6540_v53 = vpop.eup %4846 }
 0x310   : > { %7357 = vst [vmem:[#allocation6_spill] sm:$0xff] %v6492_v19  ;;  %v6497_v12 = vadd.f32 %v4221_v24, %v6377_v41  ;;  %v2288_v14 = vpop.f32.mrb[55].mxu0  ;;  %2504 = vrot.lane.b32.xlu0 %v6492_v19, %s5325_s12  ;;  %v3815_v7 = vmul.f32 -1.442695, %v6492_v19  ;;  %v2792_v24 = vadd.f32 1.0, %v4837_v36 }
 0x311   : > { %7359 = vst [vmem:[#allocation8_spill] sm:$0xff] %v6503_v31  ;;  %v6509_v47 = vadd.f32 %v6377_v41, %v2288_v14  ;;  %v3813_v39 = vmul.f32 -1.442695, %v6503_v31 }
 0x312   : > { %7358 = vst [vmem:[#allocation7_spill] sm:$0xff] %v6497_v12  ;;  %2506 = vrot.lane.b32.xlu1 %v6497_v12, %s5325_s12  ;;  %4864 = vpow2.f32 %v3815_v7  ;;  %v4849_v18 = vpop.eup %4848  ;;  %v3816_v54 = vmul.f32 -1.442695, %v6497_v12 }
 0x313   : > { %7360 = vst [vmem:[#allocation9_spill] sm:$0xff] %v6509_v47  ;;  %4866 = vrcp.f32 %v2789_v29  ;;  %v6548_v0 = vpop.eup %4850  ;;  %v3814_v48 = vmul.f32 -1.442695, %v6509_v47  ;;  %v2798_v34 = vadd.f32 1.0, %v4849_v18 }
 0x314   : > { %2500 = vrot.lane.b32.xlu0 %v6503_v31, %s5325_s12  ;;  %4868 = vrcp.f32 %v2794_v43  ;;  %v6556_v10 = vpop.eup %4852 }
 0x315   : > { %4870 = vrcp.f32 %v2792_v24  ;;  %v6559_v26 = vpop.eup %4854 }
 0x316   : > { %2502 = vrot.lane.b32.xlu1 %v6509_v47, %s5325_s12  ;;  %4872 = vrcp.f32 %v2795_v35  ;;  %v6563_v25 = vpop.eup %4856 }
 0x317   : > { %4874 = vpow2.f32 %v3813_v39  ;;  %v4859_v8 = vpop.eup %4858 }
 0x318   : > { %4876 = vrcp.f32 %v2793_v51  ;;  %v4861_v13 = vpop.eup %4860 }
 0x319   : > { %4878 = vpow2.f32 %v3816_v54  ;;  %v4863_v30 = vpop.eup %4862 }
 0x31a   : > { %4880 = vpow2.f32 %v3814_v48  ;;  %v2797_v24 = vadd.f32 1.0, %v4863_v30 }
 0x31b   : > { %4882 = vrcp.f32 %v2798_v34 }
 0x31c   : > { %v4865_v7 = vpop.eup %4864 }
 0x31d   : > { %v6569_v29 = vpop.eup %4866  ;;  %v2802_v18 = vadd.f32 1.0, %v4865_v7 }
 0x31e   : > { %v6574_v55 = vpop.eup %4868 }
 0x31f   : > { %v4224_v15 = vpop.f32.mrb[56].mxu0  ;;  %v6579_v39 = vpop.eup %4870 }
 0x320   : > { %v6529_v61 = vadd.f32 %v4224_v15, %v6377_v41  ;;  %v2301_v56 = vpop.f32.mrb[57].mxu0  ;;  %v2796_v15 = vadd.f32 1.0, %v4859_v8  ;;  %v6586_v48 = vpop.eup %4872 }
 0x321   : > { %v4225_v17 = vpop.f32.mrb[58].mxu0  ;;  %v6544_v50 = vadd.f32 %v6377_v41, %v2301_v56  ;;  %v2799_v56 = vadd.f32 1.0, %v4861_v13  ;;  %v4875_v8 = vpop.eup %4874 }
 0x322   : > { %7361 = vst [vmem:[#allocation10_spill] sm:$0xff] %v6529_v61  ;;  %v6534_v22 = vadd.f32 %v4225_v17, %v6377_v41  ;;  %v2304_v14 = vpop.f32.mrb[59].mxu0  ;;  %2512 = vrot.lane.b32.xlu0 %v6529_v61, %s5325_s12  ;;  %v3819_v32 = vmul.f32 -1.442695, %v6529_v61  ;;  %v6595_v13 = vpop.eup %4876 }
 0x323   : > { %7363 = vst [vmem:[#allocation12_spill] sm:$0xff] %v6544_v50  ;;  %v6552_v62 = vadd.f32 %v6377_v41, %v2304_v14  ;;  %v3817_v57 = vmul.f32 -1.442695, %v6544_v50  ;;  %v4879_v30 = vpop.eup %4878 }
 0x324   : > { %7362 = vst [vmem:[#allocation11_spill] sm:$0xff] %v6534_v22  ;;  %2514 = vrot.lane.b32.xlu1 %v6534_v22, %s5325_s12  ;;  %v3820_v38 = vmul.f32 -1.442695, %v6534_v22  ;;  %4884 = vpow2.f32 %v3819_v32  ;;  %v4881_v7 = vpop.eup %4880 }
 0x325   : > { %7364 = vst [vmem:[#allocation13_spill] sm:$0xff] %v6552_v62  ;;  %v3818_v36 = vmul.f32 -1.442695, %v6552_v62  ;;  %4886 = vpow2.f32 %v3817_v57 }
 0x326   : > { %2508 = vrot.lane.b32.xlu0 %v6544_v50, %s5325_s12  ;;  %4888 = vpow2.f32 %v3820_v38 }
 0x327   : > { %4890 = vpow2.f32 %v3818_v36 }
 0x328   : > { %2510 = vrot.lane.b32.xlu1 %v6552_v62, %s5325_s12  ;;  %4892 = vrcp.f32 %v2796_v15  ;;  %v2800_v15 = vadd.f32 1.0, %v4875_v8  ;;  %v2803_v8 = vadd.f32 1.0, %v4879_v30 }
 0x329   : > { %4894 = vrcp.f32 %v2799_v56  ;;  %v6601_v56 = vpop.eup %4882 }
 0x32a   : > { %4896 = vrcp.f32 %v2797_v24  ;;  %7369 = vst [vmem:[#allocation18_spill] sm:$0xff] %v6601_v56 }
 0x32b   : > { %4898 = vrcp.f32 %v2802_v18 }
 0x32d   : > { %v4228_v9 = vpop.f32.mrb[60].mxu0 }
 0x32e   : > { %v6572_v43 = vadd.f32 %v4228_v9, %v6377_v41  ;;  %v2317_v17 = vpop.f32.mrb[61].mxu0 }
 0x32f   : > { %v6577_v14 = vadd.f32 %v6377_v41, %v2317_v17  ;;  %v4229_v35 = vpop.f32.mrb[62].mxu0 }
 0x330   : > { %7365 = vst [vmem:[#allocation14_spill] sm:$0xff] %v6572_v43  ;;  %v6582_v51 = vadd.f32 %v4229_v35, %v6377_v41  ;;  %v2320_v54 = vpop.f32.mrb[63].mxu0  ;;  %2520 = vrot.lane.b32.xlu0 %v6572_v43, %s5325_s12  ;;  %v3823_v34 = vmul.f32 -1.442695, %v6572_v43  ;;  %v4885_v35 = vpop.eup %4884 }
 0x331   : > { %7366 = vst [vmem:[#allocation15_spill] sm:$0xff] %v6577_v14  ;;  %v6590_v32 = vadd.f32 %v6377_v41, %v2320_v54  ;;  %v3821_v57 = vmul.f32 -1.442695, %v6577_v14  ;;  %v2806_v43 = vadd.f32 1.0, %v4885_v35 }
 0x332   : > { %7367 = vst [vmem:[#allocation16_spill] sm:$0xff] %v6582_v51  ;;  %2522 = vrot.lane.b32.xlu1 %v6582_v51, %s5325_s12  ;;  %v3824_v38 = vmul.f32 -1.442695, %v6582_v51  ;;  %4900 = vpow2.f32 %v3823_v34 }
 0x333   : > { %7368 = vst [vmem:[#allocation17_spill] sm:$0xff] %v6590_v32  ;;  %v3822_v36 = vmul.f32 -1.442695, %v6590_v32  ;;  %4902 = vpow2.f32 %v3821_v57 }
 0x334   : > { %2516 = vrot.lane.b32.xlu0 %v6577_v14, %s5325_s12  ;;  %4904 = vpow2.f32 %v3824_v38  ;;  %v4887_v14 = vpop.eup %4886 }
 0x335   : > { %v4232_v9 = vpop.f32.mrb[64].mxu0  ;;  %4906 = vpow2.f32 %v3822_v36  ;;  %v4889_v51 = vpop.eup %4888  ;;  %v2804_v36 = vadd.f32 1.0, %v4887_v14 }
 0x336   : > { %v6604_v17 = vadd.f32 %v4232_v9, %v6377_v41  ;;  %v2333_v24 = vpop.f32.mrb[65].mxu0  ;;  %2518 = vrot.lane.b32.xlu1 %v6590_v32, %s5325_s12  ;;  %4908 = vrcp.f32 %v2800_v15  ;;  %v2801_v32 = vadd.f32 1.0, %v4881_v7  ;;  %v2807_v15 = vadd.f32 1.0, %v4889_v51 }
 0x337   : > { %v6609_v18 = vadd.f32 %v6377_v41, %v2333_v24  ;;  %v4233_v54 = vpop.f32.mrb[66].mxu0  ;;  %v4891_v24 = vpop.eup %4890 }
 0x338   : > { %7370 = vst [vmem:[#allocation19_spill] sm:$0xff] %v6604_v17  ;;  %v3827_v34 = vmul.f32 -1.442695, %v6604_v17  ;;  %v6613_v57 = vadd.f32 %v4233_v54, %v6377_v41  ;;  %v2336_v9 = vpop.f32.mrb[67].mxu0  ;;  %2528 = vrot.lane.b32.xlu0 %v6604_v17, %s5325_s12  ;;  %v6620_v30 = vpop.eup %4892  ;;  %v2805_v35 = vadd.f32 1.0, %v4891_v24 }
 0x339   : > { %7371 = vst [vmem:[#allocation20_spill] sm:$0xff] %v6609_v18  ;;  %v3825_v38 = vmul.f32 -1.442695, %v6609_v18  ;;  %7373 = vst [vmem:[#allocation22_spill] sm:$0xff] %v6620_v30  ;;  %v6623_v54 = vadd.f32 %v6377_v41, %v2336_v9  ;;  %v6625_v62 = vpop.eup %4894 }
 0x33a   : > { %7372 = vst [vmem:[#allocation21_spill] sm:$0xff] %v6613_v57  ;;  %4910 = vpow2.f32 %v3827_v34  ;;  %2530 = vrot.lane.b32.xlu1 %v6613_v57, %s5325_s12  ;;  %7375 = vst [vmem:[#allocation24_spill] sm:$0xff] %v6625_v62  ;;  %v6629_v7 = vpop.eup %4896  ;;  %v3828_v14 = vmul.f32 -1.442695, %v6613_v57 }
 0x33b   : > { %4912 = vpow2.f32 %v3825_v38  ;;  %7374 = vst [vmem:[#allocation23_spill] sm:$0xff] %v6623_v54  ;;  %7376 = vst [vmem:[#allocation25_spill] sm:$0xff] %v6629_v7  ;;  %v6631_v17 = vpop.eup %4898 }
 0x33c   : > { %4914 = vrcp.f32 %v2803_v8  ;;  %2524 = vrot.lane.b32.xlu0 %v6609_v18, %s5325_s12  ;;  %7377 = vst [vmem:[#allocation26_spill] sm:$0xff] %v6631_v17  ;;  %v4901_v51 = vpop.eup %4900  ;;  %v3826_v8 = vmul.f32 -1.442695, %v6623_v54 }
 0x33d   : > { %4916 = vrcp.f32 %v2801_v32  ;;  %v4236_v34 = vpop.f32.mrb[68].mxu0  ;;  %v4903_v32 = vpop.eup %4902  ;;  %v2810_v24 = vadd.f32 1.0, %v4901_v51 }
 0x33e   : > { %4918 = vrcp.f32 %v2806_v43  ;;  %v6635_v9 = vadd.f32 %v4236_v34, %v6377_v41  ;;  %v2349_v38 = vpop.f32.mrb[69].mxu0  ;;  %2526 = vrot.lane.b32.xlu1 %v6623_v54, %s5325_s12  ;;  %v4905_v34 = vpop.eup %4904  ;;  %v2808_v57 = vadd.f32 1.0, %v4903_v32 }
 0x33f   : > { %4920 = vrcp.f32 %v2804_v36  ;;  %v4237_v18 = vpop.f32.mrb[70].mxu0  ;;  %v4907_v22 = vpop.eup %4906  ;;  %v6647_v54 = vadd.f32 %v6377_v41, %v2349_v38 }
 0x340   : > { %7378 = vst [vmem:[#allocation27_spill] sm:$0xff] %v6635_v9  ;;  %4922 = vrcp.f32 %v2807_v15  ;;  %v6641_v50 = vadd.f32 %v4237_v18, %v6377_v41  ;;  %v2352_v43 = vpop.f32.mrb[71].mxu0  ;;  %2536 = vrot.lane.b32.xlu0 %v6635_v9, %s5325_s12  ;;  %v3831_v36 = vmul.f32 -1.442695, %v6635_v9  ;;  %v6651_v15 = vpop.eup %4908  ;;  %v2811_v18 = vadd.f32 1.0, %v4905_v34 }
 0x341   : > { %4924 = vrcp.f32 %v2805_v35  ;;  %7380 = vst [vmem:[#allocation29_spill] sm:$0xff] %v6647_v54  ;;  %7381 = vst [vmem:[#allocation30_spill] sm:$0xff] %v6651_v15  ;;  %v2809_v61 = vadd.f32 1.0, %v4907_v22  ;;  %v6654_v35 = vadd.f32 %v6377_v41, %v2352_v43 }
 0x342   : > { %7379 = vst [vmem:[#allocation28_spill] sm:$0xff] %v6641_v50  ;;  %4926 = vpow2.f32 %v3828_v14  ;;  %2538 = vrot.lane.b32.xlu1 %v6641_v50, %s5325_s12 }
 0x343   : > { %4928 = vpow2.f32 %v3826_v8  ;;  %7382 = vst [vmem:[#allocation31_spill] sm:$0xff] %v6654_v35 }
 0x344   : > { %v4911_v51 = vpop.eup %4910  ;;  %4930 = vrcp.f32 %v2810_v24  ;;  %2532 = vrot.lane.b32.xlu0 %v6647_v54, %s5325_s12  ;;  %v3829_v24 = vmul.f32 -1.442695, %v6647_v54 }
 0x345   : > { %v4913_v14 = vpop.eup %4912  ;;  %4932 = vrcp.f32 %v2808_v57  ;;  %v2814_v38 = vadd.f32 1.0, %v4911_v51  ;;  %v4240_v32 = vpop.f32.mrb[72].mxu0 }
 0x346   : > { %v6658_v9 = vpop.eup %4914  ;;  %v2812_v47 = vadd.f32 1.0, %v4913_v14  ;;  %4934 = vpow2.f32 %v3831_v36  ;;  %v6661_v34 = vadd.f32 %v4240_v32, %v6377_v41  ;;  %v2365_v8 = vpop.f32.mrb[73].mxu0  ;;  %2534 = vrot.lane.b32.xlu1 %v6654_v35, %s5325_s12  ;;  %v3832_v36 = vmul.f32 -1.442695, %v6641_v50 }
 0x347   : > { %7383 = vst [vmem:[#allocation32_spill] sm:$0xff] %v6658_v9  ;;  %v6665_v22 = vpop.eup %4916  ;;  %4936 = vrcp.f32 %v2811_v18  ;;  %v6669_v57 = vadd.f32 %v6377_v41, %v2365_v8  ;;  %v4241_v43 = vpop.f32.mrb[74].mxu0  ;;  %v3830_v18 = vmul.f32 -1.442695, %v6654_v35 }
 0x348   : > { %7384 = vst [vmem:[#allocation33_spill] sm:$0xff] %v6661_v34  ;;  %7385 = vst [vmem:[#allocation34_spill] sm:$0xff] %v6665_v22  ;;  %v6671_v51 = vpop.eup %4918  ;;  %4938 = vrcp.f32 %v2809_v61  ;;  %v6675_v14 = vadd.f32 %v4241_v43, %v6377_v41  ;;  %v2368_v32 = vpop.f32.mrb[75].mxu0  ;;  %2544 = vrot.lane.b32.xlu0 %v6661_v34, %s5325_s12  ;;  %v3835_v61 = vmul.f32 -1.442695, %v6661_v34 }
 0x349   : > { %7386 = vst [vmem:[#allocation35_spill] sm:$0xff] %v6669_v57  ;;  %7387 = vst [vmem:[#allocation36_spill] sm:$0xff] %v6671_v51  ;;  %v6679_v22 = vpop.eup %4920  ;;  %4940 = vrcp.f32 %v2814_v38  ;;  %v6683_v8 = vadd.f32 %v6377_v41, %v2368_v32  ;;  %v3833_v50 = vmul.f32 -1.442695, %v6669_v57 }
 0x34a   : > { %7388 = vst [vmem:[#allocation37_spill] sm:$0xff] %v6675_v14  ;;  %7389 = vst [vmem:[#allocation38_spill] sm:$0xff] %v6679_v22  ;;  %v6685_v54 = vpop.eup %4922  ;;  %4942 = vrcp.f32 %v2812_v47  ;;  %2546 = vrot.lane.b32.xlu1 %v6675_v14, %s5325_s12  ;;  %v3836_v38 = vmul.f32 -1.442695, %v6675_v14 }
 0x34b   : > { %7390 = vst [vmem:[#allocation39_spill] sm:$0xff] %v6683_v8  ;;  %7391 = vst [vmem:[#allocation40_spill] sm:$0xff] %v6685_v54  ;;  %v6690_v43 = vpop.eup %4924  ;;  %4944 = vpow2.f32 %v3829_v24  ;;  %v3834_v47 = vmul.f32 -1.442695, %v6683_v8 }
 0x34c   : > { %7392 = vst [vmem:[#allocation41_spill] sm:$0xff] %v6690_v43  ;;  %v4927_v22 = vpop.eup %4926  ;;  %4946 = vpow2.f32 %v3832_v36  ;;  %2540 = vrot.lane.b32.xlu0 %v6669_v57, %s5325_s12 }
 0x34d   : > { %v4929_v32 = vpop.eup %4928  ;;  %4948 = vpow2.f32 %v3830_v18  ;;  %v4244_v34 = vpop.f32.mrb[76].mxu0  ;;  %v2815_v14 = vadd.f32 1.0, %v4927_v22 }
 0x34e   : > { %v6697_v35 = vpop.eup %4930  ;;  %4950 = vpow2.f32 %v3835_v61  ;;  %v6700_v43 = vadd.f32 %v4244_v34, %v6377_v41  ;;  %v2381_v24 = vpop.f32.mrb[77].mxu0  ;;  %2542 = vrot.lane.b32.xlu1 %v6683_v8, %s5325_s12 }
 0x34f   : > { %7393 = vst [vmem:[#allocation42_spill] sm:$0xff] %v6697_v35  ;;  %v6704_v36 = vpop.eup %4932  ;;  %4952 = vpow2.f32 %v3833_v50  ;;  %v6707_v57 = vadd.f32 %v6377_v41, %v2381_v24  ;;  %v4245_v18 = vpop.f32.mrb[78].mxu0 }
 0x350   : > { %7394 = vst [vmem:[#allocation43_spill] sm:$0xff] %v6700_v43  ;;  %7395 = vst [vmem:[#allocation44_spill] sm:$0xff] %v6704_v36  ;;  %v4935_v54 = vpop.eup %4934  ;;  %4954 = vpow2.f32 %v3836_v38  ;;  %v3839_v35 = vmul.f32 -1.442695, %v6700_v43  ;;  %v6711_v61 = vadd.f32 %v4245_v18, %v6377_v41  ;;  %v2384_v34 = vpop.f32.mrb[79].mxu0  ;;  %2552 = vrot.lane.b32.xlu0 %v6700_v43, %s5325_s12  ;;  %v2813_v36 = vadd.f32 1.0, %v4929_v32 }
 0x351   : > { %7396 = vst [vmem:[#allocation45_spill] sm:$0xff] %v6707_v57  ;;  %v6715_v8 = vpop.eup %4936  ;;  %4956 = vpow2.f32 %v3834_v47  ;;  %v3837_v50 = vmul.f32 -1.442695, %v6707_v57  ;;  %v6719_v22 = vadd.f32 %v6377_v41, %v2384_v34  ;;  %v6721_v24 = vpop.permute.xlu0 %2460  ;;  %v2818_v51 = vadd.f32 1.0, %v4935_v54 }
 0x352   : > { %7397 = vst [vmem:[#allocation46_spill] sm:$0xff] %v6711_v61  ;;  %7398 = vst [vmem:[#allocation47_spill] sm:$0xff] %v6715_v8  ;;  %v6723_v38 = vpop.eup %4938  ;;  %4958 = vpow2.f32 %v3839_v35  ;;  %2554 = vrot.lane.b32.xlu1 %v6711_v61, %s5325_s12  ;;  %v2465_v18 = vpop.permute.xlu1 %2464  ;;  %v3840_v32 = vmul.f32 -1.442695, %v6711_v61 }
 0x353   : > { %7399 = vst [vmem:[#allocation48_spill] sm:$0xff] %v6719_v22  ;;  %7400 = vst [vmem:[#allocation49_spill] sm:$0xff] %v6723_v38  ;;  %v6727_v43 = vpop.eup %4940  ;;  %4960 = vrcp.f32 %v2815_v14  ;;  %v3838_v34 = vmul.f32 -1.442695, %v6719_v22  ;;  %v3859_v35 = vmul.f32 -1.442695, %v2465_v18 }
 0x354   : > { %7401 = vst [vmem:[#allocation50_spill] sm:$0xff] %v6727_v43  ;;  %v6730_v47 = vpop.eup %4942  ;;  %4962 = vpow2.f32 %v3837_v50  ;;  %2548 = vrot.lane.b32.xlu0 %v6707_v57, %s5325_s12 }
 0x355   : > { %7402 = vst [vmem:[#allocation51_spill] sm:$0xff] %v6730_v47  ;;  %v4945_v38 = vpop.eup %4944  ;;  %4964 = vrcp.f32 %v2813_v36  ;;  %v4248_v54 = vpop.f32.mrb[80].mxu0 }
 0x356   : > { %v6735_v8 = vpop.permute.xlu0 %2462  ;;  %v4947_v15 = vpop.eup %4946  ;;  %4966 = vrcp.f32 %v2818_v51  ;;  %v2816_v43 = vadd.f32 1.0, %v4945_v38  ;;  %v6738_v14 = vadd.f32 %v4248_v54, %v6377_v41  ;;  %2550 = vrot.lane.b32.xlu1 %v6719_v22, %s5325_s12 }
 0x357   : > { %v2397_v61 = vpop.f32.mrb[81].mxu0  ;;  %v4949_v50 = vpop.eup %4948  ;;  %v2819_v47 = vadd.f32 1.0, %v4947_v15  ;;  %4968 = vpow2.f32 %v3840_v32 }
 0x358   : > { %7403 = vst [vmem:[#allocation52_spill] sm:$0xff] %v6738_v14  ;;  %v4249_v57 = vpop.f32.mrb[82].mxu0  ;;  %v4951_v31 = vpop.eup %4950  ;;  %v2817_v36 = vadd.f32 1.0, %v4949_v50  ;;  %4970 = vpow2.f32 %v3838_v34  ;;  %2560 = vrot.lane.b32.xlu0 %v6738_v14, %s5325_s12  ;;  %v6750_v32 = vadd.f32 %v6377_v41, %v2397_v61  ;;  %v3843_v61 = vmul.f32 -1.442695, %v6738_v14 }
 0x359   : > { %v6743_v18 = vadd.f32 %v4249_v57, %v6377_v41  ;;  %v2400_v9 = vpop.f32.mrb[83].mxu0  ;;  %v4953_v51 = vpop.eup %4952  ;;  %v2822_v38 = vadd.f32 1.0, %v4951_v31  ;;  %4972 = vpow2.f32 %v3859_v35 }
 0x35a   : > { %v6747_v54 = vpop.permute.xlu1 %2466  ;;  %v4955_v22 = vpop.eup %4954  ;;  %4974 = vrcp.f32 %v2816_v43  ;;  %v2820_v15 = vadd.f32 1.0, %v4953_v51  ;;  %7405 = vst [vmem:[#allocation54_spill] sm:$0xff] %v6750_v32  ;;  %v6757_v35 = vadd.f32 %v6377_v41, %v2400_v9  ;;  %v3841_v14 = vmul.f32 -1.442695, %v6750_v32 }
 0x35b   : > { %7404 = vst [vmem:[#allocation53_spill] sm:$0xff] %v6743_v18  ;;  %2562 = vrot.lane.b32.xlu1 %v6743_v18, %s5325_s12  ;;  %v4957_v57 = vpop.eup %4956  ;;  %4976 = vrcp.f32 %v2819_v47  ;;  %v2823_v34 = vadd.f32 1.0, %v4955_v22  ;;  %v6754_v50 = vpop.permute.xlu0 %2472 }
 0x35c   : > { %v4959_v12 = vpop.eup %4958  ;;  %4978 = vrcp.f32 %v2817_v36  ;;  %v2821_v31 = vadd.f32 1.0, %v4957_v57  ;;  %7406 = vst [vmem:[#allocation55_spill] sm:$0xff] %v6757_v35  ;;  %2556 = vrot.lane.b32.xlu0 %v6750_v32, %s5325_s12 }
 0x35d   : > { %v6761_v43 = vpop.eup %4960  ;;  %4980 = vrcp.f32 %v2822_v38  ;;  %v4252_v51 = vpop.f32.mrb[84].mxu0  ;;  %v2826_v47 = vadd.f32 1.0, %v4959_v12 }
 0x35e   : > { %7407 = vst [vmem:[#allocation56_spill] sm:$0xff] %v6761_v43  ;;  %v6764_v17 = vpop.permute.xlu1 %2474  ;;  %v4963_v22 = vpop.eup %4962  ;;  %4982 = vrcp.f32 %v2820_v15  ;;  %v6767_v36 = vadd.f32 %v4252_v51, %v6377_v41 }
 0x35f   : > { %v2413_v57 = vpop.f32.mrb[85].mxu0  ;;  %2558 = vrot.lane.b32.xlu1 %v6757_v35, %s5325_s12  ;;  %v6771_v9 = vpop.eup %4964  ;;  %4984 = vrcp.f32 %v2823_v34  ;;  %v2824_v43 = vadd.f32 1.0, %v4963_v22  ;;  %v3844_v34 = vmul.f32 -1.442695, %v6743_v18 }
 0x360   : > { %7408 = vst [vmem:[#allocation57_spill] sm:$0xff] %v6767_v36  ;;  %7409 = vst [vmem:[#allocation58_spill] sm:$0xff] %v6771_v9  ;;  %v4253_v38 = vpop.f32.mrb[86].mxu0  ;;  %v6773_v19 = vpop.eup %4966  ;;  %4986 = vrcp.f32 %v2821_v31  ;;  %v6777_v15 = vadd.f32 %v6377_v41, %v2413_v57  ;;  %2568 = vrot.lane.b32.xlu0 %v6767_v36, %s5325_s12  ;;  %v3842_v31 = vmul.f32 -1.442695, %v6757_v35 }
 0x361   : > { %7410 = vst [vmem:[#allocation59_spill] sm:$0xff] %v6773_v19  ;;  %v6780_v12 = vadd.f32 %v4253_v38, %v6377_v41  ;;  %v2416_v51 = vpop.f32.mrb[87].mxu0  ;;  %v4969_v7 = vpop.eup %4968  ;;  %4988 = vpow2.f32 %v3843_v61  ;;  %v3847_v32 = vmul.f32 -1.442695, %v6767_v36 }
 0x362   : > { %7411 = vst [vmem:[#allocation60_spill] sm:$0xff] %v6777_v15  ;;  %v6785_v22 = vpop.permute.xlu0 %2468  ;;  %v4971_v19 = vpop.eup %4970  ;;  %4990 = vrcp.f32 %v2826_v47  ;;  %v6789_v57 = vadd.f32 %v6377_v41, %v2416_v51  ;;  %v3845_v18 = vmul.f32 -1.442695, %v6777_v15 }
 0x363   : > { %7412 = vst [vmem:[#allocation61_spill] sm:$0xff] %v6780_v12  ;;  %2570 = vrot.lane.b32.xlu1 %v6780_v12, %s5325_s12  ;;  %v4973_v38 = vpop.eup %4972  ;;  %4992 = vrcp.f32 %v2824_v43  ;;  %v6794_v9 = vpop.permute.xlu1 %2470  ;;  %v3848_v51 = vmul.f32 -1.442695, %v6780_v12 }
 0x364   : > { %7413 = vst [vmem:[#allocation62_spill] sm:$0xff] %v6789_v57  ;;  %v6796_v61 = vpop.eup %4974  ;;  %4994 = vpow2.f32 %v3841_v14  ;;  %2564 = vrot.lane.b32.xlu0 %v6777_v15, %s5325_s12  ;;  %v3846_v43 = vmul.f32 -1.442695, %v6789_v57 }
 0x365   : > { %7414 = vst [vmem:[#allocation63_spill] sm:$0xff] %v6796_v61  ;;  %v6801_v47 = vpop.eup %4976  ;;  %4996 = vpow2.f32 %v3844_v34  ;;  %v4256_v35 = vpop.f32.mrb[88].mxu0 }
 0x366   : > { %7415 = vst [vmem:[#allocation64_spill] sm:$0xff] %v6801_v47  ;;  %v6804_v42 = vpop.eup %4978  ;;  %4998 = vpow2.f32 %v3842_v31  ;;  %v6808_v36 = vadd.f32 %v4256_v35, %v6377_v41  ;;  %v2429_v14 = vpop.f32.mrb[89].mxu0 }
 0x367   : > { %7416 = vst [vmem:[#allocation65_spill] sm:$0xff] %v6804_v42  ;;  %2566 = vrot.lane.b32.xlu1 %v6789_v57, %s5325_s12  ;;  %v6812_v61 = vpop.eup %4980  ;;  %5000 = vpow2.f32 %v3847_v32  ;;  %v6815_v34 = vadd.f32 %v6377_v41, %v2429_v14  ;;  %v4257_v15 = vpop.f32.mrb[90].mxu0  ;;  %v2827_v32 = vadd.f32 1.0, %v4969_v7 }
 0x368   : > { %7417 = vst [vmem:[#allocation66_spill] sm:$0xff] %v6808_v36  ;;  %7418 = vst [vmem:[#allocation67_spill] sm:$0xff] %v6812_v61  ;;  %v6817_v12 = vpop.permute.xlu0 %2480  ;;  %v6819_v42 = vpop.eup %4982  ;;  %5002 = vpow2.f32 %v3845_v18  ;;  %v3851_v31 = vmul.f32 -1.442695, %v6808_v36  ;;  %v6823_v35 = vadd.f32 %v4257_v15, %v6377_v41  ;;  %2576 = vrot.lane.b32.xlu0 %v6808_v36, %s5325_s12 }
 0x369   : > { %7419 = vst [vmem:[#allocation68_spill] sm:$0xff] %v6815_v34  ;;  %7420 = vst [vmem:[#allocation69_spill] sm:$0xff] %v6819_v42  ;;  %v2432_v47 = vpop.f32.mrb[91].mxu0  ;;  %v6827_v57 = vpop.eup %4984  ;;  %5004 = vpow2.f32 %v3848_v51  ;;  %v3849_v14 = vmul.f32 -1.442695, %v6815_v34 }
 0x36a   : > { %7421 = vst [vmem:[#allocation70_spill] sm:$0xff] %v6823_v35  ;;  %7422 = vst [vmem:[#allocation71_spill] sm:$0xff] %v6827_v57  ;;  %v6831_v61 = vadd.f32 %v6377_v41, %v2432_v47  ;;  %v6833_v42 = vpop.permute.xlu1 %2482  ;;  %v6835_v18 = vpop.eup %4986  ;;  %5006 = vpow2.f32 %v3846_v43  ;;  %v3852_v15 = vmul.f32 -1.442695, %v6823_v35  ;;  %v3230_v57 = vadd.f32 1.0, %v4973_v38 }
 0x36b   : > { %7424 = vst [vmem:[#allocation73_spill] sm:$0xff] %v6835_v18  ;;  %2578 = vrot.lane.b32.xlu1 %v6823_v35, %s5325_s12  ;;  %v4989_v36 = vpop.eup %4988  ;;  %5008 = vpow2.f32 %v3851_v31  ;;  %v2825_v43 = vadd.f32 1.0, %v4971_v19 }
 0x36c   : > { %7423 = vst [vmem:[#allocation72_spill] sm:$0xff] %v6831_v61  ;;  %v3850_v7 = vmul.f32 -1.442695, %v6831_v61  ;;  %v6841_v51 = vpop.eup %4990  ;;  %5010 = vpow2.f32 %v3849_v14  ;;  %2572 = vrot.lane.b32.xlu0 %v6815_v34, %s5325_s12  ;;  %v6845_v41 = vpop.permute.xlu0 %2476  ;;  %v2830_v35 = vadd.f32 1.0, %v4989_v36  ;;  %v5316_v34 = vld [vmem:[%s7297_s6] ss:$0 sm:$0xff] }
 0x36d   : > { %7425 = vst [vmem:[#allocation74_spill] sm:$0xff] %v6841_v51  ;;  %v6847_v47 = vpop.eup %4992  ;;  %5012 = vrcp.f32 %v2827_v32  ;;  %v4260_v18 = vpop.f32.mrb[92].mxu0 }
 0x36e   : > { %7426 = vst [vmem:[#allocation75_spill] sm:$0xff] %v6847_v47  ;;  %v4995_v30 = vpop.eup %4994  ;;  %5014 = vpow2.f32 %v3852_v15  ;;  %v2445_v31 = vpop.f32.mrb[93].mxu0  ;;  %v6864_v2 = vadd.f32 %v5316_v34, %v4260_v18  ;;  %v3857_v18 = vmul.f32 -1.442695, %v6721_v24 }
 0x36f   : > { %2574 = vrot.lane.b32.xlu1 %v6831_v61, %s5325_s12  ;;  %v6851_v51 = vpop.permute.xlu1 %2478  ;;  %v4997_v38 = vpop.eup %4996  ;;  %v2828_v14 = vadd.f32 1.0, %v4995_v30  ;;  %5016 = vpow2.f32 %v3850_v7  ;;  %v6856_v47 = vadd.f32 %v5316_v34, %v2445_v31 }
 0x370   : > { %v4261_v19 = vpop.f32.mrb[94].mxu0  ;;  %v4999_v32 = vpop.eup %4998  ;;  %v2831_v46 = vadd.f32 1.0, %v4997_v38  ;;  %5018 = vrcp.f32 %v3230_v57  ;;  %7429 = vst [vmem:[#allocation78_spill] sm:$0xff] %v6864_v2 }
 0x371   : > { %7427 = vst [vmem:[#allocation76_spill] sm:$0xff] %v6856_v47  ;;  %v2448_v36 = vpop.f32.mrb[95].mxu0  ;;  %v5001_v15 = vpop.eup %5000  ;;  %5020 = vrcp.f32 %v2825_v43  ;;  %v2829_v62 = vadd.f32 1.0, %v4999_v32  ;;  %2580 = vrot.lane.b32.xlu0 %v6856_v47, %s5325_s12 }
 0x372   : > { %v6858_v61 = vadd.f32 %v5316_v34, %v2448_v36  ;;  %v5003_v30 = vpop.eup %5002  ;;  %5022 = vrcp.f32 %v2830_v35  ;;  %v2834_v7 = vadd.f32 1.0, %v5001_v15  ;;  %v6862_v11 = vpop.permute.xlu0 %2488  ;;  %v6870_v35 = vadd.f32 %v5316_v34, %v4261_v19 }
 0x373   : > { %v5005_v31 = vpop.eup %5004  ;;  %5024 = vrcp.f32 %v2828_v14  ;;  %v2832_v56 = vadd.f32 1.0, %v5003_v30  ;;  %v6868_v38 = vpop.permute.xlu1 %2490 }
 0x374   : > { %7428 = vst [vmem:[#allocation77_spill] sm:$0xff] %v6858_v61  ;;  %2582 = vrot.lane.b32.xlu1 %v6858_v61, %s5325_s12  ;;  %v5007_v57 = vpop.eup %5006  ;;  %5026 = vrcp.f32 %v2831_v46  ;;  %v2835_v43 = vadd.f32 1.0, %v5005_v31  ;;  %7430 = vst [vmem:[#allocation79_spill] sm:$0xff] %v6870_v35  ;;  %v2974_v31 = vmul.f32 %v6516_v45, %v6380_v44  ;;  %v3853_v44 = vmul.f32 -1.442695, %v6856_v47 }
 0x375   : > { %v5009_v32 = vpop.eup %5008  ;;  %5028 = vrcp.f32 %v2829_v62  ;;  %v2833_v36 = vadd.f32 1.0, %v5007_v57  ;;  %2584 = vrot.lane.b32.xlu0 %v6864_v2, %s5325_s12 }
 0x376   : > { %v5011_v14 = vpop.eup %5010  ;;  %5030 = vrcp.f32 %v2834_v7  ;;  %v2838_v46 = vadd.f32 1.0, %v5009_v32  ;;  %v6879_v34 = vpop.permute.xlu0 %2484 }
 0x377   : > { %v6875_v15 = vpop.eup %5012  ;;  %5032 = vrcp.f32 %v2832_v56  ;;  %v2836_v62 = vadd.f32 1.0, %v5011_v14  ;;  %v3860_v56 = vmul.f32 -1.442695, %v6747_v54  ;;  %v6891_v24 = vpop.permute.xlu1 %2486 }
 0x378   : > { %2586 = vrot.lane.b32.xlu1 %v6870_v35, %s5325_s12  ;;  %v5015_v30 = vpop.eup %5014  ;;  %5034 = vrcp.f32 %v2835_v43 }
 0x379   : > { %v5017_v19 = vpop.eup %5016  ;;  %5036 = vrcp.f32 %v2833_v36  ;;  %v2839_v7 = vadd.f32 1.0, %v5015_v30  ;;  %v3854_v30 = vmul.f32 -1.442695, %v6858_v61  ;;  %v3862_v61 = vmul.f32 -1.442695, %v6794_v9 }
 0x37a   : > { %v5019_v57 = vpop.eup %5018  ;;  %5038 = vpow2.f32 %v3857_v18  ;;  %v2837_v36 = vadd.f32 1.0, %v5017_v19  ;;  %v3858_v18 = vmul.f32 -1.442695, %v6735_v8 }
 0x37b   : > { %v6893_v43 = vpop.eup %5020  ;;  %5040 = vrcp.f32 %v2838_v46  ;;  %v3422_v32 = vmul.f32 %v5019_v57, %v2974_v31  ;;  %v6906_v46 = vpop.permute.xlu0 %2496 }
 0x37c   : > { %v6896_v45 = vpop.eup %5022  ;;  %5042 = vrcp.f32 %v2836_v62  ;;  %v3863_v62 = vmul.f32 -1.442695, %v6754_v50  ;;  %v6914_v57 = vpop.permute.xlu1 %2498 }
 0x37d   : > { %v6898_v14 = vpop.eup %5024  ;;  %5044 = vrcp.f32 %v2839_v7  ;;  %3486 = vst.msk [vmem:[%s6888_s17 + $0x10] sm:$0xff] %vm394_vm0, %v3422_v32  ;;  %v3864_v7 = vmul.f32 -1.442695, %v6764_v17 }
 0x37e   : > { %v6903_v54 = vpop.eup %5026  ;;  %5046 = vpow2.f32 %v3860_v56  ;;  %v3861_v56 = vmul.f32 -1.442695, %v6785_v22  ;;  %v3868_v22 = vmul.f32 -1.442695, %v6833_v42 }
 0x37f   : > { %v6908_v31 = vpop.eup %5028  ;;  %5048 = vpow2.f32 %v3853_v44  ;;  %v6925_v17 = vpop.permute.xlu0 %2492 }
 0x380   : > { %v6911_v19 = vpop.eup %5030  ;;  %5050 = vrcp.f32 %v2837_v36  ;;  %v3867_v36 = vmul.f32 -1.442695, %v6817_v12  ;;  %v6933_v9 = vpop.permute.xlu1 %2494  ;;  %v3856_v12 = vmul.f32 -1.442695, %v6870_v35 }
 0x381   : > { %v6916_v8 = vpop.eup %5032  ;;  %5052 = vpow2.f32 %v3858_v18 }
 0x382   : > { %7431 = vst [vmem:[#allocation80_spill] sm:$0xff] %v6916_v8  ;;  %v6919_v32 = vpop.eup %5034  ;;  %5054 = vpow2.f32 %v3854_v30  ;;  %v3855_v30 = vmul.f32 -1.442695, %v6864_v2 }
 0x383   : > { %7432 = vst [vmem:[#allocation81_spill] sm:$0xff] %v6919_v32  ;;  %v6922_v44 = vpop.eup %5036  ;;  %5056 = vpow2.f32 %v3863_v62 }
 0x384   : > { %7433 = vst [vmem:[#allocation82_spill] sm:$0xff] %v6922_v44  ;;  %v5039_v50 = vpop.eup %5038  ;;  %5058 = vpow2.f32 %v3864_v7 }
 0x385   : > { %v6927_v47 = vpop.eup %5040  ;;  %v3228_v8 = vadd.f32 1.0, %v5039_v50  ;;  %5060 = vpow2.f32 %v3861_v56  ;;  %v6940_v50 = vpop.permute.xlu0 %2504 }
 0x386   : > { %7434 = vst [vmem:[#allocation83_spill] sm:$0xff] %v6927_v47  ;;  %v6930_v18 = vpop.eup %5042  ;;  %5062 = vpow2.f32 %v3862_v61 }
 0x387   : > { %7435 = vst [vmem:[#allocation84_spill] sm:$0xff] %v6930_v18  ;;  %v6935_v62 = vpop.eup %5044  ;;  %5064 = vrcp.f32 %v3228_v8 }
 0x388   : > { %7436 = vst [vmem:[#allocation85_spill] sm:$0xff] %v6935_v62  ;;  %v5047_v7 = vpop.eup %5046  ;;  %5066 = vpow2.f32 %v3867_v36  ;;  %v6942_v62 = vpop.permute.xlu1 %2506 }
 0x389   : > { %v5049_v44 = vpop.eup %5048  ;;  %v3231_v47 = vadd.f32 1.0, %v5047_v7  ;;  %5068 = vpow2.f32 %v3868_v22 }
 0x38a   : > { %v6938_v56 = vpop.eup %5050  ;;  %5070 = vpow2.f32 %v3855_v30  ;;  %v2840_v42 = vadd.f32 1.0, %v5049_v44  ;;  %v2972_v44 = vmul.f32 %v6518_v63, %v6383_v40  ;;  %v3866_v40 = vmul.f32 -1.442695, %v6851_v51 }
 0x38b   : > { %7437 = vst [vmem:[#allocation86_spill] sm:$0xff] %v6938_v56  ;;  %v5053_v2 = vpop.eup %5052  ;;  %5072 = vrcp.f32 %v3231_v47  ;;  %v3869_v51 = vmul.f32 -1.442695, %v6879_v34 }
 0x38c   : > { %v5055_v61 = vpop.eup %5054  ;;  %5074 = vpow2.f32 %v3856_v12  ;;  %v3229_v18 = vadd.f32 1.0, %v5053_v2  ;;  %v3865_v2 = vmul.f32 -1.442695, %v6845_v41  ;;  %v6947_v12 = vpop.permute.xlu0 %2500  ;;  %v2975_v41 = vmul.f32 %v6520_v21, %v6390_v33 }
 0x38d   : > { %v5057_v8 = vpop.eup %5056  ;;  %5076 = vrcp.f32 %v2840_v42  ;;  %v2841_v35 = vadd.f32 1.0, %v5055_v61  ;;  %v2973_v21 = vmul.f32 %v6522_v59, %v6393_v58  ;;  %v3876_v58 = vmul.f32 -1.442695, %v6914_v57 }
 0x38e   : > { %v5059_v36 = vpop.eup %5058  ;;  %5078 = vrcp.f32 %v3229_v18  ;;  %v3234_v7 = vadd.f32 1.0, %v5057_v8  ;;  %v6949_v8 = vpop.permute.xlu1 %2502 }
 0x38f   : > { %v5061_v22 = vpop.eup %5060  ;;  %5080 = vrcp.f32 %v2841_v35  ;;  %v3235_v56 = vadd.f32 1.0, %v5059_v36 }
 0x390   : > { %v5063_v30 = vpop.eup %5062  ;;  %5082 = vrcp.f32 %v3234_v7  ;;  %v3232_v47 = vadd.f32 1.0, %v5061_v22  ;;  %v3872_v22 = vmul.f32 -1.442695, %v6868_v38  ;;  %v3875_v38 = vmul.f32 -1.442695, %v6906_v46 }
 0x391   : > { %v5065_v32 = vpop.eup %5064  ;;  %5084 = vrcp.f32 %v3235_v56  ;;  %v3233_v42 = vadd.f32 1.0, %v5063_v30 }
 0x392   : > { %v5067_v61 = vpop.eup %5066  ;;  %v3420_v18 = vmul.f32 %v5065_v32, %v2972_v44  ;;  %5086 = vrcp.f32 %v3232_v47  ;;  %v3871_v32 = vmul.f32 -1.442695, %v6862_v11  ;;  %v3870_v11 = vmul.f32 -1.442695, %v6891_v24 }
 0x393   : > { %v5069_v35 = vpop.eup %5068  ;;  %5088 = vrcp.f32 %v3233_v42  ;;  %v3238_v36 = vadd.f32 1.0, %v5067_v61  ;;  %v2978_v61 = vmul.f32 %v6531_v37, %v6400_v28  ;;  %v2979_v24 = vmul.f32 %v6540_v53, %v6403_v23 }
 0x394   : > { %v6952_v63 = vpop.eup %5070  ;;  %3484 = vst.msk [vmem:[%s6888_s17] sm:$0xff] %vm394_vm0, %v3420_v18  ;;  %v3239_v7 = vadd.f32 1.0, %v5069_v35  ;;  %5090 = vpow2.f32 %v3865_v2  ;;  %v6963_v47 = vpop.permute.xlu0 %2512  ;;  %v3873_v35 = vmul.f32 -1.442695, %v6925_v17  ;;  %v3874_v37 = vmul.f32 -1.442695, %v6933_v9 }
 0x395   : > { %v5073_v56 = vpop.eup %5072  ;;  %5092 = vrcp.f32 %v3238_v36  ;;  %v2976_v36 = vmul.f32 %v6538_v27, %v6410_v4  ;;  %v3879_v53 = vmul.f32 -1.442695, %v6940_v50  ;;  %v2982_v9 = vmul.f32 %v6556_v10, %v6420_v3 }
 0x396   : > { %v6960_v30 = vpop.eup %5074  ;;  %v3423_v44 = vmul.f32 %v5073_v56, %v2975_v41  ;;  %5094 = vrcp.f32 %v3239_v7  ;;  %v6973_v42 = vpop.permute.xlu1 %2514  ;;  %v3877_v3 = vmul.f32 -1.442695, %v6947_v12 }
 0x397   : > { %v6965_v33 = vpop.eup %5076  ;;  %5096 = vpow2.f32 %v3866_v40  ;;  %v2977_v40 = vmul.f32 %v6548_v0, %v6413_v16  ;;  %v3880_v0 = vmul.f32 -1.442695, %v6942_v62 }
 0x398   : > { %v5079_v2 = vpop.eup %5078  ;;  %3487 = vst.msk [vmem:[%s6888_s17 + $0x18] sm:$0xff] %vm394_vm0, %v3423_v44  ;;  %5098 = vpow2.f32 %v3871_v32  ;;  %v6991_v17 = vpop.permute.xlu0 %2508  ;;  %v2983_v32 = vmul.f32 %v6563_v25, %v6423_v5 }
 0x399   : > { %v6975_v34 = vpop.eup %5080  ;;  %v3421_v18 = vmul.f32 %v5079_v2, %v2973_v21  ;;  %5100 = vpow2.f32 %v3872_v22 }
 0x39a   : > { %v5083_v59 = vpop.eup %5082  ;;  %5102 = vpow2.f32 %v3869_v51  ;;  %v7000_v50 = vpop.permute.xlu1 %2510 }
 0x39b   : > { %v5085_v46 = vpop.eup %5084  ;;  %3485 = vst.msk [vmem:[%s6888_s17 + $0x8] sm:$0xff] %vm394_vm0, %v3421_v18  ;;  %v3426_v28 = vmul.f32 %v5083_v59, %v2978_v61  ;;  %5104 = vpow2.f32 %v3870_v11 }
 0x39c   : > { %v5087_v57 = vpop.eup %5086  ;;  %v3427_v23 = vmul.f32 %v5085_v46, %v2979_v24  ;;  %5106 = vpow2.f32 %v3875_v38 }
 0x39d   : > { %v5089_v41 = vpop.eup %5088  ;;  %3490 = vst.msk [vmem:[%s6888_s17 + $0x30] sm:$0xff] %vm394_vm0, %v3426_v28  ;;  %v3424_v4 = vmul.f32 %v5087_v57, %v2976_v36  ;;  %5108 = vpow2.f32 %v3876_v58 }
 0x39e   : > { %v5091_v27 = vpop.eup %5090  ;;  %3491 = vst.msk [vmem:[%s6888_s17 + $0x38] sm:$0xff] %vm394_vm0, %v3427_v23  ;;  %v3425_v16 = vmul.f32 %v5089_v41, %v2977_v40  ;;  %5110 = vpow2.f32 %v3873_v35 }
 0x39f   : > { %v5093_v7 = vpop.eup %5092  ;;  %3488 = vst.msk [vmem:[%s6888_s17 + $0x20] sm:$0xff] %vm394_vm0, %v3424_v4  ;;  %v3236_v56 = vadd.f32 1.0, %v5091_v27  ;;  %5112 = vpow2.f32 %v3874_v37  ;;  %v3878_v4 = vmul.f32 -1.442695, %v6949_v8  ;;  %v2986_v8 = vmul.f32 %v6574_v55, %v6440_v52 }
 0x3a0   : > { %v5095_v10 = vpop.eup %5094  ;;  %3489 = vst.msk [vmem:[%s6888_s17 + $0x28] sm:$0xff] %vm394_vm0, %v3425_v16  ;;  %v3430_v22 = vmul.f32 %v5093_v7, %v2982_v9  ;;  %5114 = vpow2.f32 %v3879_v53  ;;  %v2980_v53 = vmul.f32 %v6559_v26, %v6428_v20  ;;  %v3883_v20 = vmul.f32 -1.442695, %v6963_v47 }
 0x3a1   : > { %v5097_v62 = vpop.eup %5096  ;;  %v3431_v44 = vmul.f32 %v5095_v10, %v2983_v32  ;;  %5116 = vrcp.f32 %v3236_v56  ;;  %v3881_v47 = vmul.f32 -1.442695, %v6991_v17  ;;  %v2984_v52 = vmul.f32 %v6579_v39, %v6452_v49  ;;  %v7439_v49 = vld [vmem:[#allocation18_spill] sm:$0xff] }
 0x3a2   : > { %v5099_v51 = vpop.eup %5098  ;;  %3494 = vst.msk [vmem:[%s6888_s17 + $0x50] sm:$0xff] %vm394_vm0, %v3430_v22  ;;  %v3237_v21 = vadd.f32 1.0, %v5097_v62  ;;  %5118 = vpow2.f32 %v3880_v0  ;;  %v7011_v5 = vpop.permute.xlu0 %2520  ;;  %v3884_v62 = vmul.f32 -1.442695, %v6973_v42 }
 0x3a3   : > { %v5101_v25 = vpop.eup %5100  ;;  %3495 = vst.msk [vmem:[%s6888_s17 + $0x58] sm:$0xff] %vm394_vm0, %v3431_v44  ;;  %v3242_v11 = vadd.f32 1.0, %v5099_v51  ;;  %5120 = vpow2.f32 %v3877_v3  ;;  %v2981_v3 = vmul.f32 %v6569_v29, %v6433_v60  ;;  %v2987_v60 = vmul.f32 %v6586_v48, %v6447_v6 }
 0x3a4   : > { %v5103_v12 = vpop.eup %5102  ;;  %5122 = vrcp.f32 %v3237_v21  ;;  %v3243_v2 = vadd.f32 1.0, %v5101_v25  ;;  %v7015_v38 = vpop.permute.xlu1 %2522  ;;  %v3882_v25 = vmul.f32 -1.442695, %v7000_v50  ;;  %v3887_v48 = vmul.f32 -1.442695, %v7011_v5 }
 0x3a5   : > { %v5105_v61 = vpop.eup %5104  ;;  %5124 = vrcp.f32 %v3242_v11  ;;  %v3240_v18 = vadd.f32 1.0, %v5103_v12  ;;  %v2985_v12 = vmul.f32 %v6595_v13, %v6457_v1  ;;  %v7440_v13 = vld [vmem:[#allocation3_spill] sm:$0xff] }
 0x3a6   : > { %v5107_v58 = vpop.eup %5106  ;;  %5126 = vrcp.f32 %v3243_v2  ;;  %v3241_v59 = vadd.f32 1.0, %v5105_v61  ;;  %v7017_v24 = vpop.permute.xlu0 %2516  ;;  %v7438_v2 = vld [vmem:[#allocation2_spill] sm:$0xff]  ;;  %v3888_v61 = vmul.f32 -1.442695, %v7015_v38 }
 0x3a7   : > { %v5109_v35 = vpop.eup %5108  ;;  %5128 = vrcp.f32 %v3240_v18  ;;  %v3246_v46 = vadd.f32 1.0, %v5107_v58  ;;  %v2990_v39 = vmul.f32 %v7439_v49, %v7438_v2  ;;  %v7441_v58 = vld [vmem:[#allocation24_spill] sm:$0xff] }
 0x3a8   : > { %v5111_v36 = vpop.eup %5110  ;;  %5130 = vrcp.f32 %v3241_v59  ;;  %v3247_v28 = vadd.f32 1.0, %v5109_v35  ;;  %v7019_v37 = vpop.permute.xlu1 %2518  ;;  %v2991_v59 = vmul.f32 %v7441_v58, %v7440_v13  ;;  %v3885_v35 = vmul.f32 -1.442695, %v7017_v24 }
 0x3a9   : > { %v5113_v57 = vpop.eup %5112  ;;  %5132 = vrcp.f32 %v3246_v46  ;;  %v3244_v40 = vadd.f32 1.0, %v5111_v36  ;;  %v7442_v36 = vld [vmem:[#allocation4_spill] sm:$0xff] }
 0x3aa   : > { %v5115_v23 = vpop.eup %5114  ;;  %5134 = vrcp.f32 %v3247_v28  ;;  %v3245_v41 = vadd.f32 1.0, %v5113_v57  ;;  %v2529_v27 = vpop.permute.xlu0 %2528  ;;  %v7443_v28 = vld [vmem:[#allocation22_spill] sm:$0xff] }
 0x3ab   : > { %v5117_v9 = vpop.eup %5116  ;;  %5136 = vrcp.f32 %v3244_v40  ;;  %v3250_v16 = vadd.f32 1.0, %v5115_v23  ;;  %v2988_v57 = vmul.f32 %v7443_v28, %v7442_v36  ;;  %v3886_v40 = vmul.f32 -1.442695, %v7019_v37 }
 0x3ac   : > { %v5119_v0 = vpop.eup %5118  ;;  %v3428_v7 = vmul.f32 %v5117_v9, %v2980_v53  ;;  %5138 = vrcp.f32 %v3245_v41  ;;  %v2531_v32 = vpop.permute.xlu1 %2530  ;;  %v7444_v41 = vld [vmem:[#allocation5_spill] sm:$0xff] }
 0x3ad   : > { %v5121_v56 = vpop.eup %5120  ;;  %5140 = vrcp.f32 %v3250_v16  ;;  %v3251_v10 = vadd.f32 1.0, %v5119_v0  ;;  %v3891_v16 = vmul.f32 -1.442695, %v2529_v27  ;;  %v7448_v27 = vld [vmem:[#allocation7_spill] sm:$0xff] }
 0x3ae   : > { %v5123_v26 = vpop.eup %5122  ;;  %3492 = vst.msk [vmem:[%s6888_s17 + $0x40] sm:$0xff] %vm394_vm0, %v3428_v7  ;;  %v3248_v22 = vadd.f32 1.0, %v5121_v56  ;;  %5142 = vpow2.f32 %v3878_v4  ;;  %v2525_v44 = vpop.permute.xlu0 %2524  ;;  %v7445_v4 = vld [vmem:[#allocation25_spill] sm:$0xff]  ;;  %v7446_v7 = vld [vmem:[#allocation6_spill] sm:$0xff] }
 0x3af   : > { %v5125_v51 = vpop.eup %5124  ;;  %v3429_v29 = vmul.f32 %v5123_v26, %v2981_v3  ;;  %5144 = vrcp.f32 %v3251_v10  ;;  %v2989_v9 = vmul.f32 %v7445_v4, %v7444_v41  ;;  %v7447_v56 = vld [vmem:[#allocation26_spill] sm:$0xff]  ;;  %v3892_v10 = vmul.f32 -1.442695, %v2531_v32 }
 0x3b0   : > { %v5127_v21 = vpop.eup %5126  ;;  %v3434_v55 = vmul.f32 %v5125_v51, %v2986_v8  ;;  %5146 = vrcp.f32 %v3248_v22  ;;  %v2527_v11 = vpop.permute.xlu1 %2526  ;;  %v2994_v3 = vmul.f32 %v7447_v56, %v7446_v7 }
 0x3b1   : > { %v5129_v42 = vpop.eup %5128  ;;  %3493 = vst.msk [vmem:[%s6888_s17 + $0x48] sm:$0xff] %vm394_vm0, %v3429_v29  ;;  %v3435_v6 = vmul.f32 %v5127_v21, %v2987_v60  ;;  %5148 = vpow2.f32 %v3883_v20  ;;  %v3889_v29 = vmul.f32 -1.442695, %v2525_v44  ;;  %v7450_v21 = vld [vmem:[#allocation8_spill] sm:$0xff] }
 0x3b2   : > { %v5131_v17 = vpop.eup %5130  ;;  %3498 = vst.msk [vmem:[%s6888_s17 + $0x70] sm:$0xff] %vm394_vm0, %v3434_v55  ;;  %v3432_v50 = vmul.f32 %v5129_v42, %v2984_v52  ;;  %5150 = vpow2.f32 %v3884_v62  ;;  %v7048_v18 = vpop.permute.xlu0 %2536  ;;  %v7449_v62 = vld [vmem:[#allocation32_spill] sm:$0xff]  ;;  %v7451_v52 = vld [vmem:[#allocation30_spill] sm:$0xff]  ;;  %v3890_v42 = vmul.f32 -1.442695, %v2527_v11 }
 0x3b3   : > { %v5133_v1 = vpop.eup %5132  ;;  %3499 = vst.msk [vmem:[%s6888_s17 + $0x78] sm:$0xff] %vm394_vm0, %v3435_v6  ;;  %v3433_v5 = vmul.f32 %v5131_v17, %v2985_v12  ;;  %5152 = vpow2.f32 %v3881_v47  ;;  %v2995_v51 = vmul.f32 %v7449_v62, %v7448_v27  ;;  %v2992_v55 = vmul.f32 %v7451_v52, %v7450_v21  ;;  %v7454_v27 = vld [vmem:[#allocation10_spill] sm:$0xff]  ;;  %v7455_v62 = vld [vmem:[#allocation36_spill] sm:$0xff]  ;;  %v7456_v21 = vld [vmem:[#allocation11_spill] sm:$0xff] }
 0x3b4   : > { %v5135_v46 = vpop.eup %5134  ;;  %3496 = vst.msk [vmem:[%s6888_s17 + $0x60] sm:$0xff] %vm394_vm0, %v3432_v50  ;;  %v3438_v38 = vmul.f32 %v5133_v1, %v2990_v39  ;;  %5154 = vpow2.f32 %v3882_v25  ;;  %v7060_v23 = vpop.permute.xlu1 %2538  ;;  %v3895_v7 = vmul.f32 -1.442695, %v7048_v18  ;;  %v7457_v18 = vld [vmem:[#allocation40_spill] sm:$0xff] }
 0x3b5   : > { %v5137_v53 = vpop.eup %5136  ;;  %3497 = vst.msk [vmem:[%s6888_s17 + $0x68] sm:$0xff] %vm394_vm0, %v3433_v5  ;;  %v3439_v24 = vmul.f32 %v5135_v46, %v2991_v59  ;;  %5156 = vpow2.f32 %v3887_v48  ;;  %v2999_v52 = vmul.f32 %v7457_v18, %v7456_v21 }
 0x3b6   : > { %v5139_v0 = vpop.eup %5138  ;;  %3502 = vst.msk [vmem:[%s6888_s17 + $0x90] sm:$0xff] %vm394_vm0, %v3438_v38  ;;  %v3436_v37 = vmul.f32 %v5137_v53, %v2988_v57  ;;  %5158 = vpow2.f32 %v3888_v61  ;;  %v7070_v20 = vpop.permute.xlu0 %2532 }
 0x3b7   : > { %v5141_v26 = vpop.eup %5140  ;;  %3503 = vst.msk [vmem:[%s6888_s17 + $0x98] sm:$0xff] %vm394_vm0, %v3439_v24  ;;  %v3437_v8 = vmul.f32 %v5139_v0, %v2989_v9  ;;  %5160 = vpow2.f32 %v3885_v35  ;;  %v7452_v9 = vld [vmem:[#allocation9_spill] sm:$0xff]  ;;  %v7453_v24 = vld [vmem:[#allocation34_spill] sm:$0xff] }
 0x3b8   : > { %v5143_v22 = vpop.eup %5142  ;;  %3500 = vst.msk [vmem:[%s6888_s17 + $0x80] sm:$0xff] %vm394_vm0, %v3436_v37  ;;  %v3442_v60 = vmul.f32 %v5141_v26, %v2994_v3  ;;  %5162 = vpow2.f32 %v3886_v40  ;;  %v7078_v47 = vpop.permute.xlu1 %2534 }
 0x3b9   : > { %v5145_v32 = vpop.eup %5144  ;;  %3501 = vst.msk [vmem:[%s6888_s17 + $0x88] sm:$0xff] %vm394_vm0, %v3437_v8  ;;  %v3249_v25 = vadd.f32 1.0, %v5143_v22  ;;  %5164 = vpow2.f32 %v3891_v16  ;;  %v2993_v16 = vmul.f32 %v7453_v24, %v7452_v9 }
 0x3ba   : > { %v5147_v12 = vpop.eup %5146  ;;  %3506 = vst.msk [vmem:[%s6888_s17 + $0xb0] sm:$0xff] %vm394_vm0, %v3442_v60  ;;  %v3443_v6 = vmul.f32 %v5145_v32, %v2995_v51  ;;  %5166 = vpow2.f32 %v3892_v10  ;;  %v7086_v48 = vpop.permute.xlu0 %2544  ;;  %v2998_v51 = vmul.f32 %v7455_v62, %v7454_v27 }
 0x3bb   : > { %v5149_v44 = vpop.eup %5148  ;;  %v3440_v17 = vmul.f32 %v5147_v12, %v2992_v55  ;;  %5168 = vrcp.f32 %v3249_v25  ;;  %v3893_v25 = vmul.f32 -1.442695, %v7070_v20 }
 0x3bc   : > { %v5151_v2 = vpop.eup %5150  ;;  %3507 = vst.msk [vmem:[%s6888_s17 + $0xb8] sm:$0xff] %vm394_vm0, %v3443_v6  ;;  %v3254_v49 = vadd.f32 1.0, %v5149_v44  ;;  %5170 = vpow2.f32 %v3889_v29  ;;  %v7090_v39 = vpop.permute.xlu1 %2546  ;;  %v3896_v29 = vmul.f32 -1.442695, %v7060_v23  ;;  %v7458_v6 = vld [vmem:[#allocation12_spill] sm:$0xff]  ;;  %v7459_v44 = vld [vmem:[#allocation38_spill] sm:$0xff] }
 0x3bd   : > { %v5153_v50 = vpop.eup %5152  ;;  %3504 = vst.msk [vmem:[%s6888_s17 + $0xa0] sm:$0xff] %vm394_vm0, %v3440_v17  ;;  %v3255_v11 = vadd.f32 1.0, %v5151_v2  ;;  %5172 = vpow2.f32 %v3890_v42  ;;  %v2996_v17 = vmul.f32 %v7459_v44, %v7458_v6  ;;  %v3894_v23 = vmul.f32 -1.442695, %v7078_v47 }
 0x3be   : > { %v5155_v61 = vpop.eup %5154  ;;  %5174 = vrcp.f32 %v3254_v49  ;;  %v3252_v1 = vadd.f32 1.0, %v5153_v50  ;;  %v7094_v13 = vpop.permute.xlu0 %2540  ;;  %v7460_v50 = vld [vmem:[#allocation13_spill] sm:$0xff]  ;;  %v3900_v47 = vmul.f32 -1.442695, %v7090_v39 }
 0x3bf   : > { %v5157_v58 = vpop.eup %5156  ;;  %5176 = vrcp.f32 %v3255_v11  ;;  %v3253_v59 = vadd.f32 1.0, %v5155_v61  ;;  %v7461_v11 = vld [vmem:[#allocation41_spill] sm:$0xff] }
 0x3c0   : > { %v5159_v5 = vpop.eup %5158  ;;  %5178 = vrcp.f32 %v3252_v1  ;;  %v3258_v35 = vadd.f32 1.0, %v5157_v58  ;;  %v7096_v46 = vpop.permute.xlu1 %2542  ;;  %v2997_v61 = vmul.f32 %v7461_v11, %v7460_v50  ;;  %v3899_v58 = vmul.f32 -1.442695, %v7086_v48 }
 0x3c1   : > { %v5161_v36 = vpop.eup %5160  ;;  %5180 = vrcp.f32 %v3253_v59  ;;  %v3259_v28 = vadd.f32 1.0, %v5159_v5  ;;  %v7462_v5 = vld [vmem:[#allocation14_spill] sm:$0xff] }
 0x3c2   : > { %v5163_v57 = vpop.eup %5162  ;;  %5182 = vrcp.f32 %v3258_v35  ;;  %v3256_v38 = vadd.f32 1.0, %v5161_v36  ;;  %v7098_v40 = vpop.permute.xlu0 %2552  ;;  %v7463_v35 = vld [vmem:[#allocation42_spill] sm:$0xff] }
 0x3c3   : > { %v5165_v53 = vpop.eup %5164  ;;  %5184 = vrcp.f32 %v3259_v28  ;;  %v3257_v41 = vadd.f32 1.0, %v5163_v57  ;;  %v3002_v36 = vmul.f32 %v7463_v35, %v7462_v5  ;;  %v3903_v27 = vmul.f32 -1.442695, %v7098_v40 }
 0x3c4   : > { %v5167_v4 = vpop.eup %5166  ;;  %5186 = vrcp.f32 %v3256_v38  ;;  %v3262_v0 = vadd.f32 1.0, %v5165_v53  ;;  %v2555_v56 = vpop.permute.xlu1 %2554  ;;  %v7464_v38 = vld [vmem:[#allocation16_spill] sm:$0xff]  ;;  %v7465_v53 = vld [vmem:[#allocation47_spill] sm:$0xff] }
 0x3c5   : > { %v5169_v3 = vpop.eup %5168  ;;  %5188 = vrcp.f32 %v3257_v41  ;;  %v3263_v37 = vadd.f32 1.0, %v5167_v4  ;;  %v3003_v41 = vmul.f32 %v7465_v53, %v7464_v38  ;;  %v3897_v4 = vmul.f32 -1.442695, %v7094_v13 }
 0x3c6   : > { %v5171_v10 = vpop.eup %5170  ;;  %v3441_v26 = vmul.f32 %v5169_v3, %v2993_v16  ;;  %5190 = vrcp.f32 %v3262_v0  ;;  %v2549_v8 = vpop.permute.xlu0 %2548  ;;  %v7466_v16 = vld [vmem:[#allocation15_spill] sm:$0xff]  ;;  %v7467_v0 = vld [vmem:[#allocation44_spill] sm:$0xff]  ;;  %v3898_v3 = vmul.f32 -1.442695, %v7096_v46  ;;  %v3904_v21 = vmul.f32 -1.442695, %v2555_v56 }
 0x3c7   : > { %v5173_v22 = vpop.eup %5172  ;;  %5192 = vrcp.f32 %v3263_v37  ;;  %v3260_v60 = vadd.f32 1.0, %v5171_v10  ;;  %v7468_v10 = vld [vmem:[#allocation17_spill] sm:$0xff]  ;;  %v7474_v56 = vld [vmem:[#allocation20_spill] sm:$0xff] }
 0x3c8   : > { %v5175_v32 = vpop.eup %5174  ;;  %3505 = vst.msk [vmem:[%s6888_s17 + $0xa8] sm:$0xff] %vm394_vm0, %v3441_v26  ;;  %v3261_v55 = vadd.f32 1.0, %v5173_v22  ;;  %5194 = vpow2.f32 %v3895_v7  ;;  %v2551_v42 = vpop.permute.xlu1 %2550  ;;  %v3000_v7 = vmul.f32 %v7467_v0, %v7466_v16  ;;  %v7469_v26 = vld [vmem:[#allocation49_spill] sm:$0xff] }
 0x3c9   : > { %v5177_v12 = vpop.eup %5176  ;;  %v3446_v2 = vmul.f32 %v5175_v32, %v2998_v51  ;;  %5196 = vrcp.f32 %v3260_v60  ;;  %v3001_v22 = vmul.f32 %v7469_v26, %v7468_v10  ;;  %v7470_v60 = vld [vmem:[#allocation19_spill] sm:$0xff]  ;;  %v3902_v11 = vmul.f32 -1.442695, %v2551_v42 }
 0x3ca   : > { %v5179_v49 = vpop.eup %5178  ;;  %v3447_v1 = vmul.f32 %v5177_v12, %v2999_v52  ;;  %5198 = vrcp.f32 %v3261_v55  ;;  %v2561_v59 = vpop.permute.xlu0 %2560  ;;  %v7472_v52 = vld [vmem:[#allocation21_spill] sm:$0xff]  ;;  %v7473_v55 = vld [vmem:[#allocation56_spill] sm:$0xff]  ;;  %v3901_v12 = vmul.f32 -1.442695, %v2549_v8 }
 0x3cb   : > { %v5181_v20 = vpop.eup %5180  ;;  %3510 = vst.msk [vmem:[%s6888_s17 + $0xd0] sm:$0xff] %vm394_vm0, %v3446_v2  ;;  %v3444_v28 = vmul.f32 %v5179_v49, %v2996_v17  ;;  %5200 = vpow2.f32 %v3896_v29  ;;  %v7471_v29 = vld [vmem:[#allocation50_spill] sm:$0xff]  ;;  %v3907_v35 = vmul.f32 -1.442695, %v2561_v59 }
 0x3cc   : > { %v5183_v57 = vpop.eup %5182  ;;  %3511 = vst.msk [vmem:[%s6888_s17 + $0xd8] sm:$0xff] %vm394_vm0, %v3447_v1  ;;  %v3445_v48 = vmul.f32 %v5181_v20, %v2997_v61  ;;  %5202 = vpow2.f32 %v3893_v25  ;;  %v3006_v32 = vmul.f32 %v7471_v29, %v7470_v60  ;;  %v3007_v25 = vmul.f32 %v7473_v55, %v7472_v52  ;;  %v7476_v1 = vld [vmem:[#allocation23_spill] sm:$0xff] }
 0x3cd   : > { %v7127_v9 = vpop.permute.xlu1 %2562  ;;  %v5185_v24 = vpop.eup %5184  ;;  %3508 = vst.msk [vmem:[%s6888_s17 + $0xc0] sm:$0xff] %vm394_vm0, %v3444_v28  ;;  %v3450_v39 = vmul.f32 %v5183_v57, %v3002_v36  ;;  %5204 = vpow2.f32 %v3894_v23  ;;  %v7475_v23 = vld [vmem:[#allocation51_spill] sm:$0xff] }
 0x3ce   : > { %v5187_v37 = vpop.eup %5186  ;;  %3509 = vst.msk [vmem:[%s6888_s17 + $0xc8] sm:$0xff] %vm394_vm0, %v3445_v48  ;;  %v3451_v13 = vmul.f32 %v5185_v24, %v3003_v41  ;;  %5206 = vpow2.f32 %v3899_v58  ;;  %v7139_v62 = vpop.permute.xlu0 %2556  ;;  %v3004_v49 = vmul.f32 %v7475_v23, %v7474_v56  ;;  %v7477_v58 = vld [vmem:[#allocation58_spill] sm:$0xff]  ;;  %v7478_v29 = vld [vmem:[#allocation27_spill] sm:$0xff] }
 0x3cf   : > { %v5189_v51 = vpop.eup %5188  ;;  %3514 = vst.msk [vmem:[%s6888_s17 + $0xf0] sm:$0xff] %vm394_vm0, %v3450_v39  ;;  %v3448_v46 = vmul.f32 %v5187_v37, %v3000_v7  ;;  %5208 = vpow2.f32 %v3900_v47  ;;  %v3005_v20 = vmul.f32 %v7477_v58, %v7476_v1 }
 0x3d0   : > { %v5191_v18 = vpop.eup %5190  ;;  %3515 = vst.msk [vmem:[%s6888_s17 + $0xf8] sm:$0xff] %vm394_vm0, %v3451_v13  ;;  %v3449_v40 = vmul.f32 %v5189_v51, %v3001_v22  ;;  %5210 = vpow2.f32 %v3897_v4 }
 0x3d1   : > { %v7149_v6 = vpop.permute.xlu1 %2558  ;;  %v5193_v44 = vpop.eup %5192  ;;  %3512 = vst.msk [vmem:[%s6888_s17 + $0xe0] sm:$0xff] %vm394_vm0, %v3448_v46  ;;  %v3454_v17 = vmul.f32 %v5191_v18, %v3006_v32  ;;  %5212 = vpow2.f32 %v3898_v3  ;;  %v7479_v32 = vld [vmem:[#allocation59_spill] sm:$0xff]  ;;  %v3908_v18 = vmul.f32 -1.442695, %v7127_v9 }
 0x3d2   : > { %v5195_v2 = vpop.eup %5194  ;;  %3513 = vst.msk [vmem:[%s6888_s17 + $0xe8] sm:$0xff] %vm394_vm0, %v3449_v40  ;;  %v3455_v50 = vmul.f32 %v5193_v44, %v3007_v25  ;;  %5214 = vpow2.f32 %v3903_v27  ;;  %v7157_v61 = vpop.permute.xlu0 %2568  ;;  %v3010_v46 = vmul.f32 %v7479_v32, %v7478_v29  ;;  %v3906_v58 = vmul.f32 -1.442695, %v7149_v6  ;;  %v7493_v29 = vld [vmem:[#allocation73_spill] sm:$0xff] }
 0x3d3   : > { %v5197_v8 = vpop.eup %5196  ;;  %3518 = vst.msk [vmem:[%s6888_s17 + $0x110] sm:$0xff] %vm394_vm0, %v3454_v17  ;;  %v3266_v5 = vadd.f32 1.0, %v5195_v2  ;;  %5216 = vpow2.f32 %v3904_v21  ;;  %v7480_v17 = vld [vmem:[#allocation28_spill] sm:$0xff] }
 0x3d4   : > { %v5199_v36 = vpop.eup %5198  ;;  %3519 = vst.msk [vmem:[%s6888_s17 + $0x118] sm:$0xff] %vm394_vm0, %v3455_v50  ;;  %v3452_v28 = vmul.f32 %v5197_v8, %v3004_v49  ;;  %5218 = vpow2.f32 %v3901_v12  ;;  %v7481_v2 = vld [vmem:[#allocation64_spill] sm:$0xff]  ;;  %v3905_v49 = vmul.f32 -1.442695, %v7139_v62  ;;  %v7483_v8 = vld [vmem:[#allocation63_spill] sm:$0xff] }
 0x3d5   : > { %v7165_v47 = vpop.permute.xlu1 %2570  ;;  %v5201_v42 = vpop.eup %5200  ;;  %v3453_v57 = vmul.f32 %v5199_v36, %v3005_v20  ;;  %5220 = vrcp.f32 %v3266_v5  ;;  %v3011_v56 = vmul.f32 %v7481_v2, %v7480_v17  ;;  %v7484_v5 = vld [vmem:[#allocation31_spill] sm:$0xff] }
 0x3d6   : > { %v5203_v38 = vpop.eup %5202  ;;  %3516 = vst.msk [vmem:[%s6888_s17 + $0x100] sm:$0xff] %vm394_vm0, %v3452_v28  ;;  %v3267_v53 = vadd.f32 1.0, %v5201_v42  ;;  %5222 = vpow2.f32 %v3902_v11  ;;  %v2565_v59 = vpop.permute.xlu0 %2564  ;;  %v7482_v11 = vld [vmem:[#allocation29_spill] sm:$0xff]  ;;  %v3911_v42 = vmul.f32 -1.442695, %v7157_v61 }
 0x3d7   : > { %v5205_v41 = vpop.eup %5204  ;;  %3517 = vst.msk [vmem:[%s6888_s17 + $0x108] sm:$0xff] %vm394_vm0, %v3453_v57  ;;  %v3264_v48 = vadd.f32 1.0, %v5203_v38  ;;  %5224 = vpow2.f32 %v3907_v35  ;;  %v3008_v1 = vmul.f32 %v7483_v8, %v7482_v11  ;;  %v7485_v35 = vld [vmem:[#allocation65_spill] sm:$0xff]  ;;  %v3909_v61 = vmul.f32 -1.442695, %v2565_v59 }
 0x3d8   : > { %v5207_v4 = vpop.eup %5206  ;;  %5226 = vrcp.f32 %v3267_v53  ;;  %v3265_v24 = vadd.f32 1.0, %v5205_v41  ;;  %v3009_v36 = vmul.f32 %v7485_v35, %v7484_v5  ;;  %v7486_v38 = vld [vmem:[#allocation33_spill] sm:$0xff]  ;;  %v7487_v53 = vld [vmem:[#allocation67_spill] sm:$0xff] }
 0x3d9   : > { %v2567_v16 = vpop.permute.xlu1 %2566  ;;  %v5209_v0 = vpop.eup %5208  ;;  %5228 = vrcp.f32 %v3264_v48  ;;  %v3270_v7 = vadd.f32 1.0, %v5207_v4  ;;  %v3014_v41 = vmul.f32 %v7487_v53, %v7486_v38  ;;  %v3912_v4 = vmul.f32 -1.442695, %v7165_v47 }
 0x3da   : > { %v5211_v39 = vpop.eup %5210  ;;  %5230 = vrcp.f32 %v3265_v24  ;;  %v3271_v3 = vadd.f32 1.0, %v5209_v0  ;;  %v2577_v51 = vpop.permute.xlu0 %2576  ;;  %v7488_v0 = vld [vmem:[#allocation37_spill] sm:$0xff]  ;;  %v3910_v47 = vmul.f32 -1.442695, %v2567_v16 }
 0x3db   : > { %v5213_v37 = vpop.eup %5212  ;;  %5232 = vrcp.f32 %v3270_v7  ;;  %v3268_v10 = vadd.f32 1.0, %v5211_v39  ;;  %v7489_v7 = vld [vmem:[#allocation71_spill] sm:$0xff] }
 0x3dc   : > { %v5215_v26 = vpop.eup %5214  ;;  %5234 = vrcp.f32 %v3271_v3  ;;  %v3269_v22 = vadd.f32 1.0, %v5213_v37  ;;  %v3015_v39 = vmul.f32 %v7489_v7, %v7488_v0 }
 0x3dd   : > { %v5217_v13 = vpop.eup %5216  ;;  %5236 = vrcp.f32 %v3268_v10  ;;  %v3274_v27 = vadd.f32 1.0, %v5215_v26  ;;  %v2579_v52 = vpop.permute.xlu1 %2578  ;;  %v7490_v10 = vld [vmem:[#allocation35_spill] sm:$0xff]  ;;  %v7491_v26 = vld [vmem:[#allocation69_spill] sm:$0xff] }
 0x3de   : > { %v5219_v60 = vpop.eup %5218  ;;  %5238 = vrcp.f32 %v3269_v22  ;;  %v3275_v21 = vadd.f32 1.0, %v5217_v13  ;;  %v2573_v62 = vpop.permute.xlu0 %2572  ;;  %v3012_v22 = vmul.f32 %v7491_v26, %v7490_v10 }
 0x3df   : > { %v5221_v55 = vpop.eup %5220  ;;  %5240 = vrcp.f32 %v3274_v27  ;;  %v3272_v25 = vadd.f32 1.0, %v5219_v60  ;;  %v7492_v60 = vld [vmem:[#allocation39_spill] sm:$0xff] }
 0x3e0   : > { %v5223_v40 = vpop.eup %5222  ;;  %v3458_v12 = vmul.f32 %v5221_v55, %v3010_v46  ;;  %5242 = vrcp.f32 %v3275_v21  ;;  %v3013_v32 = vmul.f32 %v7493_v29, %v7492_v60  ;;  %v3915_v21 = vmul.f32 -1.442695, %v2577_v51  ;;  %v7495_v55 = vld [vmem:[#allocation74_spill] sm:$0xff] }
 0x3e1   : > { %v5225_v44 = vpop.eup %5224  ;;  %5244 = vrcp.f32 %v3272_v25  ;;  %v3273_v23 = vadd.f32 1.0, %v5223_v40  ;;  %v2575_v6 = vpop.permute.xlu1 %2574  ;;  %v3913_v51 = vmul.f32 -1.442695, %v2573_v62 }
 0x3e2   : > { %v5227_v50 = vpop.eup %5226  ;;  %3522 = vst.msk [vmem:[%s6888_s17 + $0x130] sm:$0xff] %vm394_vm0, %v3458_v12  ;;  %v3278_v9 = vadd.f32 1.0, %v5225_v44  ;;  %5246 = vpow2.f32 %v3908_v18  ;;  %v7494_v18 = vld [vmem:[#allocation43_spill] sm:$0xff]  ;;  %v3916_v12 = vmul.f32 -1.442695, %v2579_v52  ;;  %v7496_v44 = vld [vmem:[#allocation46_spill] sm:$0xff] }
 0x3e3   : > { %v5229_v20 = vpop.eup %5228  ;;  %v3459_v28 = vmul.f32 %v5227_v50, %v3011_v56  ;;  %5248 = vrcp.f32 %v3273_v23  ;;  %v3018_v25 = vmul.f32 %v7495_v55, %v7494_v18  ;;  %v3019_v17 = vmul.f32 %v6875_v15, %v7496_v44  ;;  %v2581_v56 = vpop.permute.xlu0 %2580  ;;  %v7498_v50 = vld [vmem:[#allocation75_spill] sm:$0xff]  ;;  %v7502_v44 = vld [vmem:[#allocation54_spill] sm:$0xff] }
 0x3e4   : > { %v5231_v57 = vpop.eup %5230  ;;  %v3456_v48 = vmul.f32 %v5229_v20, %v3008_v1  ;;  %5250 = vrcp.f32 %v3278_v9  ;;  %v3914_v52 = vmul.f32 -1.442695, %v2575_v6  ;;  %v7499_v20 = vld [vmem:[#allocation48_spill] sm:$0xff] }
 0x3e5   : > { %v5233_v24 = vpop.eup %5232  ;;  %3523 = vst.msk [vmem:[%s6888_s17 + $0x138] sm:$0xff] %vm394_vm0, %v3459_v28  ;;  %v3457_v3 = vmul.f32 %v5231_v57, %v3009_v36  ;;  %5252 = vpow2.f32 %v3905_v49  ;;  %v7497_v49 = vld [vmem:[#allocation45_spill] sm:$0xff]  ;;  %v3017_v5 = vmul.f32 %v6893_v43, %v7499_v20  ;;  %v3917_v36 = vmul.f32 -1.442695, %v2581_v56  ;;  %v7503_v56 = vld [vmem:[#allocation55_spill] sm:$0xff] }
 0x3e6   : > { %v5235_v37 = vpop.eup %5234  ;;  %3520 = vst.msk [vmem:[%s6888_s17 + $0x120] sm:$0xff] %vm394_vm0, %v3456_v48  ;;  %v3462_v13 = vmul.f32 %v5233_v24, %v3014_v41  ;;  %5254 = vpow2.f32 %v3906_v58  ;;  %v3016_v11 = vmul.f32 %v7498_v50, %v7497_v49  ;;  %v2583_v1 = vpop.permute.xlu1 %2582 }
 0x3e7   : > { %v5237_v27 = vpop.eup %5236  ;;  %3521 = vst.msk [vmem:[%s6888_s17 + $0x128] sm:$0xff] %vm394_vm0, %v3457_v3  ;;  %v3463_v46 = vmul.f32 %v5235_v37, %v3015_v39  ;;  %5256 = vpow2.f32 %v3911_v42  ;;  %v7500_v42 = vld [vmem:[#allocation52_spill] sm:$0xff]  ;;  %v3918_v38 = vmul.f32 -1.442695, %v2583_v1  ;;  %v7505_v1 = vld [vmem:[#allocation61_spill] sm:$0xff] }
 0x3e8   : > { %v5239_v59 = vpop.eup %5238  ;;  %3526 = vst.msk [vmem:[%s6888_s17 + $0x150] sm:$0xff] %vm394_vm0, %v3462_v13  ;;  %v3460_v40 = vmul.f32 %v5237_v27, %v3012_v22  ;;  %5258 = vpow2.f32 %v3912_v4  ;;  %v3022_v62 = vmul.f32 %v6896_v45, %v7500_v42  ;;  %v2585_v22 = vpop.permute.xlu0 %2584  ;;  %v7510_v42 = vld [vmem:[#allocation82_spill] sm:$0xff] }
 0x3e9   : > { %v5241_v16 = vpop.eup %5240  ;;  %3527 = vst.msk [vmem:[%s6888_s17 + $0x158] sm:$0xff] %vm394_vm0, %v3463_v46  ;;  %v3461_v2 = vmul.f32 %v5239_v59, %v3013_v32  ;;  %5260 = vpow2.f32 %v3909_v61  ;;  %v7501_v32 = vld [vmem:[#allocation53_spill] sm:$0xff]  ;;  %v3919_v59 = vmul.f32 -1.442695, %v2585_v22  ;;  %v7518_v22 = vld [vmem:[#allocation86_spill] sm:$0xff] }
 0x3ea   : > { %v5243_v23 = vpop.eup %5242  ;;  %3524 = vst.msk [vmem:[%s6888_s17 + $0x140] sm:$0xff] %vm394_vm0, %v3460_v40  ;;  %v3466_v8 = vmul.f32 %v5241_v16, %v3018_v25  ;;  %5262 = vpow2.f32 %v3910_v47  ;;  %v3023_v46 = vmul.f32 %v6903_v54, %v7501_v32  ;;  %v2587_v18 = vpop.permute.xlu1 %2586 }
 0x3eb   : > { %v5245_v9 = vpop.eup %5244  ;;  %3525 = vst.msk [vmem:[%s6888_s17 + $0x148] sm:$0xff] %vm394_vm0, %v3461_v2  ;;  %v3467_v15 = vmul.f32 %v5243_v23, %v3019_v17  ;;  %5264 = vpow2.f32 %v3915_v21  ;;  %v3020_v17 = vmul.f32 %v6898_v14, %v7502_v44  ;;  %v3021_v23 = vmul.f32 %v6908_v31, %v7503_v56  ;;  %v7507_v31 = vld [vmem:[#allocation60_spill] sm:$0xff] }
 0x3ec   : > { %v5247_v58 = vpop.eup %5246  ;;  %3530 = vst.msk [vmem:[%s6888_s17 + $0x170] sm:$0xff] %vm394_vm0, %v3466_v8  ;;  %v3464_v35 = vmul.f32 %v5245_v9, %v3016_v11  ;;  %5266 = vpow2.f32 %v3916_v12  ;;  %v7504_v11 = vld [vmem:[#allocation57_spill] sm:$0xff] }
 0x3ed   : > { %v5249_v28 = vpop.eup %5248  ;;  %3531 = vst.msk [vmem:[%s6888_s17 + $0x178] sm:$0xff] %vm394_vm0, %v3467_v15  ;;  %v3279_v57 = vadd.f32 1.0, %v5247_v58  ;;  %5268 = vpow2.f32 %v3913_v51  ;;  %v3920_v51 = vmul.f32 -1.442695, %v2587_v18  ;;  %v3026_v8 = vmul.f32 %v6911_v19, %v7504_v11  ;;  %v7506_v9 = vld [vmem:[#allocation81_spill] sm:$0xff] }
 0x3ee   : > { %v5251_v53 = vpop.eup %5250  ;;  %3528 = vst.msk [vmem:[%s6888_s17 + $0x160] sm:$0xff] %vm394_vm0, %v3464_v35  ;;  %v3465_v43 = vmul.f32 %v5249_v28, %v3017_v5  ;;  %5270 = vpow2.f32 %v3914_v52  ;;  %v3027_v15 = vmul.f32 %v7506_v9, %v7505_v1  ;;  %v7508_v5 = vld [vmem:[#allocation80_spill] sm:$0xff]  ;;  %v7509_v28 = vld [vmem:[#allocation62_spill] sm:$0xff] }
 0x3ef   : > { %v5253_v41 = vpop.eup %5252  ;;  %v3470_v48 = vmul.f32 %v5251_v53, %v3022_v62  ;;  %5272 = vrcp.f32 %v3279_v57  ;;  %v3024_v35 = vmul.f32 %v7508_v5, %v7507_v31  ;;  %v3025_v62 = vmul.f32 %v7510_v42, %v7509_v28  ;;  %v7511_v53 = vld [vmem:[#allocation66_spill] sm:$0xff] }
 0x3f0   : > { %v5255_v4 = vpop.eup %5254  ;;  %3529 = vst.msk [vmem:[%s6888_s17 + $0x168] sm:$0xff] %vm394_vm0, %v3465_v43  ;;  %v3276_v6 = vadd.f32 1.0, %v5253_v41  ;;  %5274 = vpow2.f32 %v3917_v36  ;;  %v7512_v43 = vld [vmem:[#allocation83_spill] sm:$0xff] }
 0x3f1   : > { %v5257_v45 = vpop.eup %5256  ;;  %3534 = vst.msk [vmem:[%s6888_s17 + $0x190] sm:$0xff] %vm394_vm0, %v3470_v48  ;;  %v3277_v24 = vadd.f32 1.0, %v5255_v4  ;;  %5276 = vpow2.f32 %v3918_v38  ;;  %v3030_v41 = vmul.f32 %v7512_v43, %v7511_v53  ;;  %v2842_v48 = vadd.f32 1.0, %v6952_v63 }
 0x3f2   : > { %v5259_v0 = vpop.eup %5258  ;;  %5278 = vrcp.f32 %v3276_v6  ;;  %v3282_v7 = vadd.f32 1.0, %v5257_v45  ;;  %v7513_v45 = vld [vmem:[#allocation70_spill] sm:$0xff] }
 0x3f3   : > { %v5261_v39 = vpop.eup %5260  ;;  %5280 = vrcp.f32 %v3277_v24  ;;  %v3283_v3 = vadd.f32 1.0, %v5259_v0  ;;  %v7514_v24 = vld [vmem:[#allocation85_spill] sm:$0xff] }
 0x3f4   : > { %v5263_v61 = vpop.eup %5262  ;;  %5282 = vrcp.f32 %v3282_v7  ;;  %v3280_v37 = vadd.f32 1.0, %v5261_v39  ;;  %v3031_v0 = vmul.f32 %v7514_v24, %v7513_v45 }
 0x3f5   : > { %v5265_v10 = vpop.eup %5264  ;;  %5284 = vrcp.f32 %v3283_v3  ;;  %v3281_v26 = vadd.f32 1.0, %v5263_v61  ;;  %v7515_v3 = vld [vmem:[#allocation68_spill] sm:$0xff] }
 0x3f6   : > { %v5267_v13 = vpop.eup %5266  ;;  %5286 = vrcp.f32 %v3280_v37  ;;  %v3286_v47 = vadd.f32 1.0, %v5265_v10  ;;  %v7516_v61 = vld [vmem:[#allocation84_spill] sm:$0xff] }
 0x3f7   : > { %v5269_v27 = vpop.eup %5268  ;;  %5288 = vrcp.f32 %v3281_v26  ;;  %v3287_v60 = vadd.f32 1.0, %v5267_v13  ;;  %v3028_v37 = vmul.f32 %v7516_v61, %v7515_v3  ;;  %v7517_v26 = vld [vmem:[#allocation72_spill] sm:$0xff] }
 0x3f8   : > { %v5271_v29 = vpop.eup %5270  ;;  %5290 = vrcp.f32 %v3286_v47  ;;  %v3284_v21 = vadd.f32 1.0, %v5269_v27  ;;  %v3029_v13 = vmul.f32 %v7518_v22, %v7517_v26  ;;  %v2843_v47 = vadd.f32 1.0, %v6960_v30  ;;  %v7520_v30 = vld [vmem:[#allocation77_spill] sm:$0xff] }
 0x3f9   : > { %v5273_v55 = vpop.eup %5272  ;;  %5292 = vrcp.f32 %v3287_v60  ;;  %v3285_v25 = vadd.f32 1.0, %v5271_v29 }
 0x3fa   : > { %v5275_v40 = vpop.eup %5274  ;;  %v3471_v12 = vmul.f32 %v5273_v55, %v3023_v46  ;;  %5294 = vrcp.f32 %v3284_v21  ;;  %v7519_v46 = vld [vmem:[#allocation76_spill] sm:$0xff]  ;;  %v3033_v55 = vmul.f32 %v6975_v34, %v7520_v30 }
 0x3fb   : > { %v5277_v16 = vpop.eup %5276  ;;  %5296 = vrcp.f32 %v3285_v25  ;;  %v3288_v2 = vadd.f32 1.0, %v5275_v40  ;;  %v3032_v21 = vmul.f32 %v6965_v33, %v7519_v46 }
 0x3fc   : > { %v5279_v54 = vpop.eup %5278  ;;  %3535 = vst.msk [vmem:[%s6888_s17 + $0x198] sm:$0xff] %vm394_vm0, %v3471_v12  ;;  %v3289_v49 = vadd.f32 1.0, %v5277_v16  ;;  %5298 = vpow2.f32 %v3919_v59 }
 0x3fd   : > { %v5281_v50 = vpop.eup %5280  ;;  %v3468_v52 = vmul.f32 %v5279_v54, %v3020_v17  ;;  %5300 = vrcp.f32 %v3288_v2  ;;  %v7521_v2 = vld [vmem:[#allocation78_spill] sm:$0xff] }
 0x3fe   : > { %v5283_v14 = vpop.eup %5282  ;;  %v3469_v58 = vmul.f32 %v5281_v50, %v3021_v23  ;;  %5302 = vrcp.f32 %v3289_v49  ;;  %v7522_v23 = vld [vmem:[#allocation79_spill] sm:$0xff] }
 0x3ff   : > { %v5285_v20 = vpop.eup %5284  ;;  %3532 = vst.msk [vmem:[%s6888_s17 + $0x180] sm:$0xff] %vm394_vm0, %v3468_v52  ;;  %v3474_v36 = vmul.f32 %v5283_v14, %v3026_v8  ;;  %5304 = vpow2.f32 %v3920_v51 }
 0x400   : > { %v5287_v19 = vpop.eup %5286  ;;  %3533 = vst.msk [vmem:[%s6888_s17 + $0x188] sm:$0xff] %vm394_vm0, %v3469_v58  ;;  %v3475_v57 = vmul.f32 %v5285_v20, %v3027_v15  ;;  %5306 = vrcp.f32 %v2842_v48 }
 0x401   : > { %v5289_v38 = vpop.eup %5288  ;;  %3538 = vst.msk [vmem:[%s6888_s17 + $0x1b0] sm:$0xff] %vm394_vm0, %v3474_v36  ;;  %v3472_v4 = vmul.f32 %v5287_v19, %v3024_v35  ;;  %5308 = vrcp.f32 %v2843_v47 }
 0x402   : > { %v5291_v6 = vpop.eup %5290  ;;  %3539 = vst.msk [vmem:[%s6888_s17 + $0x1b8] sm:$0xff] %vm394_vm0, %v3475_v57  ;;  %v3473_v7 = vmul.f32 %v5289_v38, %v3025_v62 }
 0x403   : > { %v5293_v39 = vpop.eup %5292  ;;  %3536 = vst.msk [vmem:[%s6888_s17 + $0x1a0] sm:$0xff] %vm394_vm0, %v3472_v4  ;;  %v3478_v10 = vmul.f32 %v5291_v6, %v3030_v41 }
 0x404   : > { %v5295_v63 = vpop.eup %5294  ;;  %3537 = vst.msk [vmem:[%s6888_s17 + $0x1a8] sm:$0xff] %vm394_vm0, %v3473_v7  ;;  %v3479_v27 = vmul.f32 %v5293_v39, %v3031_v0 }
 0x405   : > { %v5297_v60 = vpop.eup %5296  ;;  %3542 = vst.msk [vmem:[%s6888_s17 + $0x1d0] sm:$0xff] %vm394_vm0, %v3478_v10  ;;  %v3476_v29 = vmul.f32 %v5295_v63, %v3028_v37 }
 0x406   : > { %v5299_v32 = vpop.eup %5298  ;;  %3543 = vst.msk [vmem:[%s6888_s17 + $0x1d8] sm:$0xff] %vm394_vm0, %v3479_v27  ;;  %v3477_v59 = vmul.f32 %v5297_v60, %v3029_v13 }
 0x407   : > { %v5301_v18 = vpop.eup %5300  ;;  %3540 = vst.msk [vmem:[%s6888_s17 + $0x1c0] sm:$0xff] %vm394_vm0, %v3476_v29  ;;  %v3290_v25 = vadd.f32 1.0, %v5299_v32 }
 0x408   : > { %v5303_v40 = vpop.eup %5302  ;;  %3541 = vst.msk [vmem:[%s6888_s17 + $0x1c8] sm:$0xff] %vm394_vm0, %v3477_v59  ;;  %v3480_v12 = vmul.f32 %v5301_v18, %v3032_v21 }
 0x409   : > { %v5305_v16 = vpop.eup %5304  ;;  %v3481_v33 = vmul.f32 %v5303_v40, %v3033_v55  ;;  %5310 = vrcp.f32 %v3290_v25 }
 0x40a   : > { %3544 = vst.msk [vmem:[%s6888_s17 + $0x1e0] sm:$0xff] %vm394_vm0, %v3480_v12  ;;  %v3291_v44 = vadd.f32 1.0, %v5305_v16  ;;  %v5307_v34 = vpop.eup %5306 }
 0x40b   : > { %3545 = vst.msk [vmem:[%s6888_s17 + $0x1e8] sm:$0xff] %vm394_vm0, %v3481_v33  ;;  %v5309_v17 = vpop.eup %5308  ;;  %v3034_v51 = vmul.f32 %v5307_v34, %v7521_v2 }
 0x40c   : > { %5312 = vrcp.f32 %v3291_v44  ;;  %v3035_v49 = vmul.f32 %v5309_v17, %v7522_v23 }
 0x413   : > { %v5311_v54 = vpop.eup %5310 }
 0x414   : > { %v3482_v56 = vmul.f32 %v5311_v54, %v3034_v51 }
 0x416   : > { %v5313_v50 = vpop.eup %5312  ;;  %3546 = vst.msk [vmem:[%s6888_s17 + $0x1f0] sm:$0xff] %vm394_vm0, %v3482_v56 }
 0x417   : > { %v3483_v11 = vmul.f32 %v5313_v50, %v3035_v49 }
 0x419   : > { %3547 = vst.msk [vmem:[%s6888_s17 + $0x1f8] sm:$0xff] %vm394_vm0, %v3483_v11 }
 0x41a PF: > { %s17_s24 = sadd.s32 1, %s5323_s24  }
 0x41b   : > { %p14_p4 = scmp.ge.s32.totalorder %s17_s24, 6  }
 0x41d   :  { %16 = sbr.rel (!%p14_p4) target bundleno = 1 (0x1), region = 78 }

</bundles_post_ra>
